<compile_context>
chip_gen: v7x
topology: tpu7x:2x2x1
jax: 0.10.0
libtpu: 0.0.40
codegen_flags: <defaults>
</compile_context>

<pallas_src>
import jax
import jax.numpy as jnp
import numpy as np
from jax import lax
from jax.experimental import pallas as pl
from jax.experimental.pallas import tpu as pltpu


# ----------------------------------------------------------------------------- kernel

def _bilstm2_fc_kernel(x2_ref,
                       wih1_ref, whh1_ref, b1_ref,
                       wih2_ref, whh2_ref, b2_ref,
                       wfc_ref, bfc_ref,
                       out_ref,
                       xproj_ref, l2in_ref):
    """Fused bidirectional 2-layer LSTM + Linear.  Single grid point, all in VMEM.

    Shapes (T=seq, B=batch, D=input, H=hidden, H2=2H, G2=8H fused gates, O=output):
      x2_ref    (T, B, 2D)   row t = [x(t) | x(T-1-t)]
      wih1_ref  (2D, G2)     bf16, block structured (fwd rows feed fwd gate cols only)
      whh1_ref  (H2, G2)     bf16, block-diagonal per direction
      b1_ref    (1, G2)      f32  (b_ih + b_hh, both directions, interleaved layout)
      wih2_ref  (2*H2, G2)   bf16, block structured for the l2in LHS layout
      whh2_ref  (H2, G2), b2_ref (1, G2)
      wfc_ref   (1, H2) f32 when O == 1 else (H2, O)
      bfc_ref   (1, O)
      out_ref   (B, O)
      xproj_ref (T, B, G2)   scratch: hoisted input->gate projections (reused by L2)
      l2in_ref  (T, B, 2*H2) scratch: layer-2 projection LHS
    Gate-column layout everywhere: [i_f,i_b,f_f,f_b,o_f,o_b,g_f,g_b], each H wide.
    """
    T, B, D2 = x2_ref.shape
    H2, G2 = whh1_ref.shape           # 2H, 8H
    O = out_ref.shape[-1]
    f32 = jnp.float32
    bf16 = jnp.bfloat16

    def cell(gates, c_prev):
        # fused columns: [i(2H) | f(2H) | o(2H) | g(2H)], each 2H slab = [fwd | bwd]
        sig = jax.nn.sigmoid(gates[:, :3 * H2])     # one 384-lane EUP slab (i, f, o)
        g = jnp.tanh(gates[:, 3 * H2:])             # one 128-lane EUP slab (g)
        i = sig[:, :H2]
        f = sig[:, H2:2 * H2]
        o = sig[:, 2 * H2:]
        c = f * c_prev + i * g
        h = o * jnp.tanh(c)                         # one 128-lane tanh
        return h, c

    # ---- layer 1: hoisted input->gate projection (single matmul, off the chain) ----
    # wih1 is block structured, so xproj row t already holds the forward gates for
    # time t and the backward gates for time T-1-t in the fused column layout.
    x2 = x2_ref[...].reshape(T * B, D2).astype(bf16)
    xproj_ref[...] = (jnp.dot(x2, wih1_ref[...], preferred_element_type=f32)
                      + b1_ref[...]).reshape(T, B, G2)

    zeros = jnp.zeros((B, H2), f32)

    def layer1_step(t, carry):
        h, c = carry                                            # (B, 2H) = [fwd | bwd]
        gates = xproj_ref[t] + jnp.dot(h.astype(bf16), whh1_ref[...],
                                       preferred_element_type=f32)
        h, c = cell(gates, c)
        # Stash layer-1 hiddens as the layer-2 projection LHS (aligned full-row
        # stores, off the critical path):  l2in[t] = [step-t h | step-(T-1-t) h].
        tb = T - 1 - t
        l2in_ref[t, :, :H2] = h
        l2in_ref[tb, :, H2:] = h
        return h, c

    lax.fori_loop(0, T, layer1_step, (zeros, zeros), unroll=True)

    # ---- layer 2: hoisted input->gate projection (single matmul, off the chain) ----
    l2in = l2in_ref[...].reshape(T * B, 2 * H2).astype(bf16)
    xproj_ref[...] = (jnp.dot(l2in, wih2_ref[...], preferred_element_type=f32)
                      + b2_ref[...]).reshape(T, B, G2)

    def layer2_step(t, carry):
        h, c = carry
        gates = xproj_ref[t] + jnp.dot(h.astype(bf16), whh2_ref[...],
                                       preferred_element_type=f32)
        return cell(gates, c)

    h2, _ = lax.fori_loop(0, T, layer2_step, (zeros, zeros), unroll=True)

    # ---- final Linear on h2 = [h2_fwd(T-1) | h2_bwd(0)]
    #      == cat(out[:, -1, :H], out[:, 0, H:]) of the PyTorch module ----
    if O == 1:
        # O = 1: VPU multiply + lane reduction; avoids an MXU push/pop for 1 lane.
        out_ref[...] = (jnp.sum(h2 * wfc_ref[...], axis=-1, keepdims=True)
                        + bfc_ref[...])
    else:
        out_ref[...] = (jnp.dot(h2, wfc_ref[...], preferred_element_type=f32)
                        + bfc_ref[...])


# ----------------------------------------------------------------------------- packing
# One-time weight packing (PyTorch nn.LSTM / nn.Linear layout -> kernel layout).
# Call pack_params() ONCE and reuse the result; it is not per-call work.

def _gate_blocks(w, H):
    """PyTorch (4H, K) weight with gate rows [i, f, g, o] -> four (K, H) column
    blocks in the kernel gate order [i, f, o, g]."""
    wt = jnp.asarray(w, jnp.float32).T
    return [wt[:, :H], wt[:, H:2 * H], wt[:, 3 * H:], wt[:, 2 * H:3 * H]]


def _pack_w(w_f, w_b, H, dtype=jnp.bfloat16):
    """Fuse per-direction weights into one block-structured (K_f + K_b, 8H) matrix
    whose columns are interleaved per gate: [i_f,i_b,f_f,f_b,o_f,o_b,g_f,g_b].
    Rows [0:K_f] feed only the *_f columns, rows [K_f:] only the *_b columns."""
    K_f, K_b = w_f.shape[1], w_b.shape[1]
    bf, bb = _gate_blocks(w_f, H), _gate_blocks(w_b, H)
    zf = jnp.zeros((K_f, H), jnp.float32)
    zb = jnp.zeros((K_b, H), jnp.float32)
    cols = []
    for gf, gb in zip(bf, bb):
        cols.append(jnp.concatenate([gf, zb], axis=0))   # forward gate column block
        cols.append(jnp.concatenate([zf, gb], axis=0))   # backward gate column block
    return jnp.concatenate(cols, axis=1).astype(dtype)


def _pack_wih2(w_f, w_b, H, dtype=jnp.bfloat16):
    """Layer-2 input weights for the fused LHS layout
         LHS row t = [h1f(t), h1b(T-1-t), h1f(T-1-t), h1b(t)]   (4H wide)
       and fused gate columns [i_f,i_b,f_f,f_b,o_f,o_b,g_f,g_b]."""
    cf, cb = _gate_blocks(w_f, H), _gate_blocks(w_b, H)   # 4 x (2H, H), rows [h1f|h1b]
    z = jnp.zeros((H, H), jnp.float32)
    cols = []
    for gf, gb in zip(cf, cb):
        cols.append(jnp.concatenate([gf[:H], z, z, gf[H:]], axis=0))   # fwd gate col
        cols.append(jnp.concatenate([z, gb[H:], gb[:H], z], axis=0))   # bwd gate col
    return jnp.concatenate(cols, axis=1).astype(dtype)


def _pack_b(bih_f, bhh_f, bih_b, bhh_b, H):
    def blocks(b):
        return [b[:H], b[H:2 * H], b[3 * H:], b[2 * H:3 * H]]          # [i, f, o, g]
    bf = blocks(jnp.asarray(bih_f, jnp.float32) + jnp.asarray(bhh_f, jnp.float32))
    bb = blocks(jnp.asarray(bih_b, jnp.float32) + jnp.asarray(bhh_b, jnp.float32))
    parts = []
    for gf, gb in zip(bf, bb):
        parts += [gf, gb]
    return jnp.concatenate(parts).reshape(1, 8 * H)


def pack_params(params, fc_w, fc_b):
    """Pack PyTorch-layout LSTM/Linear weights into the fused-kernel layout (once)."""
    assert len(params) == 2, "kernel is specialized for num_layers=2, bidirectional"
    (wih1f, whh1f, bih1f, bhh1f), (wih1b, whh1b, bih1b, bhh1b) = params[0]
    (wih2f, whh2f, bih2f, bhh2f), (wih2b, whh2b, bih2b, bhh2b) = params[1]
    H = whh1f.shape[1]

    wih1 = _pack_w(wih1f, wih1b, H)                 # (2D, 8H)  bf16
    whh1 = _pack_w(whh1f, whh1b, H)                 # (2H, 8H)  bf16 block-diagonal
    b1 = _pack_b(bih1f, bhh1f, bih1b, bhh1b, H)     # (1, 8H)   f32
    wih2 = _pack_wih2(wih2f, wih2b, H)              # (4H, 8H)  bf16
    whh2 = _pack_w(whh2f, whh2b, H)                 # (2H, 8H)  bf16 block-diagonal
    b2 = _pack_b(bih2f, bhh2f, bih2b, bhh2b, H)     # (1, 8H)   f32

    fc_w = jnp.asarray(fc_w, jnp.float32)
    O = fc_w.shape[0]
    wfc = fc_w.reshape(1, -1) if O == 1 else fc_w.T           # reduction vs MXU path
    bfc = jnp.asarray(fc_b, jnp.float32).reshape(1, O)
    return (wih1, whh1, b1, wih2, whh2, b2, wfc, bfc)


# ----------------------------------------------------------------------------- wrapper

@jax.jit
def bidirectional_lstm_model(x, packed):
    """PyTorch-equivalent forward.  x: (B, T, input_size), batch_first."""
    wih1, whh1, b1, wih2, whh2, b2, wfc, bfc = packed
    B, T, _ = x.shape
    H2 = whh1.shape[0]                  # 2H
    O = bfc.shape[-1]

    x_tm = jnp.transpose(x, (1, 0, 2)).astype(jnp.float32)        # (T, B, D)
    x2 = jnp.concatenate([x_tm, x_tm[::-1]], axis=-1)             # (T, B, 2D)

    return pl.pallas_call(
        _bilstm2_fc_kernel,
        out_shape=jax.ShapeDtypeStruct((B, O), jnp.float32),
        scratch_shapes=[
            pltpu.VMEM((T, B, 4 * H2), jnp.float32),   # fused gate projections (8H)
            pltpu.VMEM((T, B, 2 * H2), jnp.float32),   # layer-2 projection LHS (4H)
        ],
    )(x2, wih1, whh1, b1, wih2, whh2, b2, wfc, bfc)


# ----------------------------------------------------------------------------- pure-JAX reference (f32)

def _ref_lstm_dir(x_seq, w_ih, w_hh, b_ih, b_hh, reverse):
    T, B, _ = x_seq.shape
    H = w_hh.shape[1]
    xs = x_seq[::-1] if reverse else x_seq

    def step(carry, x_t):
        h, c = carry
        gates = x_t @ w_ih.T + h @ w_hh.T + b_ih + b_hh
        i = jax.nn.sigmoid(gates[:, :H])
        f = jax.nn.sigmoid(gates[:, H:2 * H])
        g = jnp.tanh(gates[:, 2 * H:3 * H])
        o = jax.nn.sigmoid(gates[:, 3 * H:4 * H])
        c = f * c + i * g
        h = o * jnp.tanh(c)
        return (h, c), h

    (_, _), hs = jax.lax.scan(step, (jnp.zeros((B, H)), jnp.zeros((B, H))), xs)
    return hs[::-1] if reverse else hs


def _ref_model(x, params, fc_w, fc_b):
    layer_in = jnp.transpose(x, (1, 0, 2))
    fwd = bwd = None
    for layer_params in params:
        fwd = _ref_lstm_dir(layer_in, *layer_params[0], reverse=False)
        bwd = _ref_lstm_dir(layer_in, *layer_params[1], reverse=True)
        layer_in = jnp.concatenate([fwd, bwd], axis=-1)
    # == torch.cat((out[:, -1, :H], out[:, 0, H:]), dim=1)
    feat = jnp.concatenate([fwd[-1], bwd[0]], axis=-1)
    return feat @ fc_w.T + fc_b


# ----------------------------------------------------------------------------- main

if __name__ == "__main__":
    B, T = 8, 8
    INPUT_SIZE = 16
    HIDDEN = 64
    NUM_LAYERS = 2
    OUTPUT = 1

    key = jax.random.PRNGKey(0)
    k = 1.0 / np.sqrt(HIDDEN)

    def uni(key, shape):
        return jax.random.uniform(key, shape, jnp.float32, -k, k)

    # Deterministic parameter init matching nn.LSTM / nn.Linear shapes.
    params = []
    for layer in range(NUM_LAYERS):
        d_in = INPUT_SIZE if layer == 0 else 2 * HIDDEN
        per_dir = []
        for direction in range(2):
            key, k1, k2, k3, k4 = jax.random.split(key, 5)
            per_dir.append((uni(k1, (4 * HIDDEN, d_in)),    # weight_ih
                            uni(k2, (4 * HIDDEN, HIDDEN)),  # weight_hh
                            uni(k3, (4 * HIDDEN,)),         # bias_ih
                            uni(k4, (4 * HIDDEN,))))        # bias_hh
        params.append(per_dir)

    key, kfw, kfb, kx = jax.random.split(key, 4)
    fc_w = uni(kfw, (OUTPUT, 2 * HIDDEN))
    fc_b = uni(kfb, (OUTPUT,))

    x = jax.random.normal(kx, (B, T, INPUT_SIZE), jnp.float32)

    packed = pack_params(params, fc_w, fc_b)   # one-time packing (not per-call work)

    out = jax.block_until_ready(bidirectional_lstm_model(x, packed))
    ref = jax.block_until_ready(_ref_model(x, params, fc_w, fc_b))

    # Tolerance relaxed vs. the f32 reference because MXU operands are bf16
    # (accumulation stays f32); cell state / nonlinearities are f32.
    np.testing.assert_allclose(np.asarray(out), np.asarray(ref),
                               rtol=5e-2, atol=3e-2)
    assert out.shape == (B, OUTPUT)

    print("KERNEL_OK")
</pallas_src>

<mosaic_0001>
module attributes {stable_mosaic.version = 11 : i64} {
  func.func @_bilstm2_fc_kernel(%arg0: memref<8x8x32xf32, #tpu.memory_space<vmem>>, %arg1: memref<32x512xbf16, #tpu.memory_space<vmem>>, %arg2: memref<128x512xbf16, #tpu.memory_space<vmem>>, %arg3: memref<1x512xf32, #tpu.memory_space<vmem>>, %arg4: memref<256x512xbf16, #tpu.memory_space<vmem>>, %arg5: memref<128x512xbf16, #tpu.memory_space<vmem>>, %arg6: memref<1x512xf32, #tpu.memory_space<vmem>>, %arg7: memref<1x128xf32, #tpu.memory_space<vmem>>, %arg8: memref<1x1xf32, #tpu.memory_space<vmem>>, %arg9: memref<8x1xf32, #tpu.memory_space<vmem>>, %arg10: memref<8x8x512xf32, #tpu.memory_space<vmem>>, %arg11: memref<8x8x256xf32, #tpu.memory_space<vmem>>) attributes {dimension_semantics = [], scalar_prefetch = 0 : i64, scratch_operands = 2 : i64, tpu.core_type = #tpu.core_type<tc>} {
    %c0 = arith.constant 0 : index
    %c0_0 = arith.constant 0 : index
    %c0_1 = arith.constant 0 : index
    %0 = vector.load %arg0[%c0, %c0_0, %c0_1] : memref<8x8x32xf32, #tpu.memory_space<vmem>>, vector<8x8x32xf32>
    %1 = vector.shape_cast %0 : vector<8x8x32xf32> to vector<64x32xf32>
    %2 = arith.truncf %1 : vector<64x32xf32> to vector<64x32xbf16>
    %c0_2 = arith.constant 0 : index
    %c0_3 = arith.constant 0 : index
    %3 = vector.load %arg1[%c0_2, %c0_3] : memref<32x512xbf16, #tpu.memory_space<vmem>>, vector<32x512xbf16>
    %cst = arith.constant dense<0.000000e+00> : vector<64x512xf32>
    %4 = tpu.matmul %2, %3, %cst {dimension_numbers = #tpu.dot_dimension_numbers<[1], [0], [0], [1], [0, 0, 1, 1], [], []>} : vector<64x32xbf16>, vector<32x512xbf16>, vector<64x512xf32> -> vector<64x512xf32>
    %c0_4 = arith.constant 0 : index
    %c0_5 = arith.constant 0 : index
    %5 = vector.load %arg3[%c0_4, %c0_5] : memref<1x512xf32, #tpu.memory_space<vmem>>, vector<1x512xf32>
    %6 = vector.broadcast %5 : vector<1x512xf32> to vector<64x512xf32>
    %7 = arith.addf %4, %6 : vector<64x512xf32>
    %8 = vector.shape_cast %7 : vector<64x512xf32> to vector<8x8x512xf32>
    %c0_6 = arith.constant 0 : index
    %c0_7 = arith.constant 0 : index
    %c0_8 = arith.constant 0 : index
    %9 = vector.load %arg10[%c0_6, %c0_7, %c0_8] : memref<8x8x512xf32, #tpu.memory_space<vmem>>, vector<8x8x512xf32>
    tpu.vector_store %arg10[%c0_6, %c0_7, %c0_8], %8 {strides = array<i32>} : memref<8x8x512xf32, #tpu.memory_space<vmem>>, vector<8x8x512xf32>,
    %cst_9 = arith.constant 0.000000e+00 : f32
    %10 = vector.broadcast %cst_9 : f32 to vector<8x128xf32>
    %c0_i32 = arith.constant 0 : i32
    %11 = arith.index_cast %c0_i32 : i32 to index
    %c0_10 = arith.constant 0 : index
    %c0_11 = arith.constant 0 : index
    %12 = vector.load %arg10[%11, %c0_10, %c0_11] : memref<8x8x512xf32, #tpu.memory_space<vmem>>, vector<1x8x512xf32>
    %13 = vector.shape_cast %12 : vector<1x8x512xf32> to vector<8x512xf32>
    %14 = arith.truncf %10 : vector<8x128xf32> to vector<8x128xbf16>
    %c0_12 = arith.constant 0 : index
    %c0_13 = arith.constant 0 : index
    %15 = vector.load %arg2[%c0_12, %c0_13] : memref<128x512xbf16, #tpu.memory_space<vmem>>, vector<128x512xbf16>
    %cst_14 = arith.constant dense<0.000000e+00> : vector<8x512xf32>
    %16 = tpu.matmul %14, %15, %cst_14 {dimension_numbers = #tpu.dot_dimension_numbers<[1], [0], [0], [1], [0, 0, 1, 1], [], []>} : vector<8x128xbf16>, vector<128x512xbf16>, vector<8x512xf32> -> vector<8x512xf32>
    %17 = arith.addf %13, %16 : vector<8x512xf32>
    %18 = vector.extract_strided_slice %17 {offsets = [0, 0], sizes = [8, 384], strides = [1, 1]} : vector<8x512xf32> to vector<8x384xf32>
    %19 = arith.negf %18 : vector<8x384xf32>
    %20 = math.exp %19 : vector<8x384xf32>
    %cst_15 = arith.constant 1.000000e+00 : f32
    %21 = vector.broadcast %cst_15 : f32 to vector<8x384xf32>
    %22 = arith.addf %21, %20 : vector<8x384xf32>
    %23 = arith.divf %21, %22 : vector<8x384xf32>
    %24 = vector.extract_strided_slice %17 {offsets = [0, 384], sizes = [8, 128], strides = [1, 1]} : vector<8x512xf32> to vector<8x128xf32>
    %25 = math.tanh %24 : vector<8x128xf32>
    %26 = vector.extract_strided_slice %23 {offsets = [0, 0], sizes = [8, 128], strides = [1, 1]} : vector<8x384xf32> to vector<8x128xf32>
    %27 = vector.extract_strided_slice %23 {offsets = [0, 128], sizes = [8, 128], strides = [1, 1]} : vector<8x384xf32> to vector<8x128xf32>
    %28 = vector.extract_strided_slice %23 {offsets = [0, 256], sizes = [8, 128], strides = [1, 1]} : vector<8x384xf32> to vector<8x128xf32>
    %29 = arith.mulf %27, %10 : vector<8x128xf32>
    %30 = arith.mulf %26, %25 : vector<8x128xf32>
    %31 = arith.addf %29, %30 : vector<8x128xf32>
    %32 = math.tanh %31 : vector<8x128xf32>
    %33 = arith.mulf %28, %32 : vector<8x128xf32>
    %c7_i32 = arith.constant 7 : i32
    %34 = arith.subi %c7_i32, %c0_i32 : i32
    %35 = arith.index_cast %c0_i32 : i32 to index
    %c0_16 = arith.constant 0 : index
    %c0_17 = arith.constant 0 : index
    %36 = vector.load %arg11[%35, %c0_16, %c0_17] : memref<8x8x256xf32, #tpu.memory_space<vmem>>, vector<1x8x128xf32>
    %37 = vector.shape_cast %36 : vector<1x8x128xf32> to vector<8x128xf32>
    %38 = vector.shape_cast %33 : vector<8x128xf32> to vector<1x8x128xf32>
    tpu.vector_store %arg11[%35, %c0_16, %c0_17], %38 {strides = array<i32>} : memref<8x8x256xf32, #tpu.memory_space<vmem>>, vector<1x8x128xf32>,
    %39 = arith.index_cast %34 : i32 to index
    %c0_18 = arith.constant 0 : index
    %c128 = arith.constant 128 : index
    %40 = vector.load %arg11[%39, %c0_18, %c128] : memref<8x8x256xf32, #tpu.memory_space<vmem>>, vector<1x8x128xf32>
    %41 = vector.shape_cast %40 : vector<1x8x128xf32> to vector<8x128xf32>
    %42 = vector.shape_cast %33 : vector<8x128xf32> to vector<1x8x128xf32>
    tpu.vector_store %arg11[%39, %c0_18, %c128], %42 {strides = array<i32>} : memref<8x8x256xf32, #tpu.memory_space<vmem>>, vector<1x8x128xf32>,
    %c1_i32 = arith.constant 1 : i32
    %43 = arith.index_cast %c1_i32 : i32 to index
    %c0_19 = arith.constant 0 : index
    %c0_20 = arith.constant 0 : index
    %44 = vector.load %arg10[%43, %c0_19, %c0_20] : memref<8x8x512xf32, #tpu.memory_space<vmem>>, vector<1x8x512xf32>
    %45 = vector.shape_cast %44 : vector<1x8x512xf32> to vector<8x512xf32>
    %46 = arith.truncf %33 : vector<8x128xf32> to vector<8x128xbf16>
    %c0_21 = arith.constant 0 : index
    %c0_22 = arith.constant 0 : index
    %47 = vector.load %arg2[%c0_21, %c0_22] : memref<128x512xbf16, #tpu.memory_space<vmem>>, vector<128x512xbf16>
    %cst_23 = arith.constant dense<0.000000e+00> : vector<8x512xf32>
    %48 = tpu.matmul %46, %47, %cst_23 {dimension_numbers = #tpu.dot_dimension_numbers<[1], [0], [0], [1], [0, 0, 1, 1], [], []>} : vector<8x128xbf16>, vector<128x512xbf16>, vector<8x512xf32> -> vector<8x512xf32>
    %49 = arith.addf %45, %48 : vector<8x512xf32>
    %50 = vector.extract_strided_slice %49 {offsets = [0, 0], sizes = [8, 384], strides = [1, 1]} : vector<8x512xf32> to vector<8x384xf32>
    %51 = arith.negf %50 : vector<8x384xf32>
    %52 = math.exp %51 : vector<8x384xf32>
    %cst_24 = arith.constant 1.000000e+00 : f32
    %53 = vector.broadcast %cst_24 : f32 to vector<8x384xf32>
    %54 = arith.addf %53, %52 : vector<8x384xf32>
    %55 = arith.divf %53, %54 : vector<8x384xf32>
    %56 = vector.extract_strided_slice %49 {offsets = [0, 384], sizes = [8, 128], strides = [1, 1]} : vector<8x512xf32> to vector<8x128xf32>
    %57 = math.tanh %56 : vector<8x128xf32>
    %58 = vector.extract_strided_slice %55 {offsets = [0, 0], sizes = [8, 128], strides = [1, 1]} : vector<8x384xf32> to vector<8x128xf32>
    %59 = vector.extract_strided_slice %55 {offsets = [0, 128], sizes = [8, 128], strides = [1, 1]} : vector<8x384xf32> to vector<8x128xf32>
    %60 = vector.extract_strided_slice %55 {offsets = [0, 256], sizes = [8, 128], strides = [1, 1]} : vector<8x384xf32> to vector<8x128xf32>
    %61 = arith.mulf %59, %31 : vector<8x128xf32>
    %62 = arith.mulf %58, %57 : vector<8x128xf32>
    %63 = arith.addf %61, %62 : vector<8x128xf32>
    %64 = math.tanh %63 : vector<8x128xf32>
    %65 = arith.mulf %60, %64 : vector<8x128xf32>
    %c7_i32_25 = arith.constant 7 : i32
    %66 = arith.subi %c7_i32_25, %c1_i32 : i32
    %67 = arith.index_cast %c1_i32 : i32 to index
    %c0_26 = arith.constant 0 : index
    %c0_27 = arith.constant 0 : index
    %68 = vector.load %arg11[%67, %c0_26, %c0_27] : memref<8x8x256xf32, #tpu.memory_space<vmem>>, vector<1x8x128xf32>
    %69 = vector.shape_cast %68 : vector<1x8x128xf32> to vector<8x128xf32>
    %70 = vector.shape_cast %65 : vector<8x128xf32> to vector<1x8x128xf32>
    tpu.vector_store %arg11[%67, %c0_26, %c0_27], %70 {strides = array<i32>} : memref<8x8x256xf32, #tpu.memory_space<vmem>>, vector<1x8x128xf32>,
    %71 = arith.index_cast %66 : i32 to index
    %c0_28 = arith.constant 0 : index
    %c128_29 = arith.constant 128 : index
    %72 = vector.load %arg11[%71, %c0_28, %c128_29] : memref<8x8x256xf32, #tpu.memory_space<vmem>>, vector<1x8x128xf32>
    %73 = vector.shape_cast %72 : vector<1x8x128xf32> to vector<8x128xf32>
    %74 = vector.shape_cast %65 : vector<8x128xf32> to vector<1x8x128xf32>
    tpu.vector_store %arg11[%71, %c0_28, %c128_29], %74 {strides = array<i32>} : memref<8x8x256xf32, #tpu.memory_space<vmem>>, vector<1x8x128xf32>,
    %c2_i32 = arith.constant 2 : i32
    %75 = arith.index_cast %c2_i32 : i32 to index
    %c0_30 = arith.constant 0 : index
    %c0_31 = arith.constant 0 : index
    %76 = vector.load %arg10[%75, %c0_30, %c0_31] : memref<8x8x512xf32, #tpu.memory_space<vmem>>, vector<1x8x512xf32>
    %77 = vector.shape_cast %76 : vector<1x8x512xf32> to vector<8x512xf32>
    %78 = arith.truncf %65 : vector<8x128xf32> to vector<8x128xbf16>
    %c0_32 = arith.constant 0 : index
    %c0_33 = arith.constant 0 : index
    %79 = vector.load %arg2[%c0_32, %c0_33] : memref<128x512xbf16, #tpu.memory_space<vmem>>, vector<128x512xbf16>
    %cst_34 = arith.constant dense<0.000000e+00> : vector<8x512xf32>
    %80 = tpu.matmul %78, %79, %cst_34 {dimension_numbers = #tpu.dot_dimension_numbers<[1], [0], [0], [1], [0, 0, 1, 1], [], []>} : vector<8x128xbf16>, vector<128x512xbf16>, vector<8x512xf32> -> vector<8x512xf32>
    %81 = arith.addf %77, %80 : vector<8x512xf32>
    %82 = vector.extract_strided_slice %81 {offsets = [0, 0], sizes = [8, 384], strides = [1, 1]} : vector<8x512xf32> to vector<8x384xf32>
    %83 = arith.negf %82 : vector<8x384xf32>
    %84 = math.exp %83 : vector<8x384xf32>
    %cst_35 = arith.constant 1.000000e+00 : f32
    %85 = vector.broadcast %cst_35 : f32 to vector<8x384xf32>
    %86 = arith.addf %85, %84 : vector<8x384xf32>
    %87 = arith.divf %85, %86 : vector<8x384xf32>
    %88 = vector.extract_strided_slice %81 {offsets = [0, 384], sizes = [8, 128], strides = [1, 1]} : vector<8x512xf32> to vector<8x128xf32>
    %89 = math.tanh %88 : vector<8x128xf32>
    %90 = vector.extract_strided_slice %87 {offsets = [0, 0], sizes = [8, 128], strides = [1, 1]} : vector<8x384xf32> to vector<8x128xf32>
    %91 = vector.extract_strided_slice %87 {offsets = [0, 128], sizes = [8, 128], strides = [1, 1]} : vector<8x384xf32> to vector<8x128xf32>
    %92 = vector.extract_strided_slice %87 {offsets = [0, 256], sizes = [8, 128], strides = [1, 1]} : vector<8x384xf32> to vector<8x128xf32>
    %93 = arith.mulf %91, %63 : vector<8x128xf32>
    %94 = arith.mulf %90, %89 : vector<8x128xf32>
    %95 = arith.addf %93, %94 : vector<8x128xf32>
    %96 = math.tanh %95 : vector<8x128xf32>
    %97 = arith.mulf %92, %96 : vector<8x128xf32>
    %c7_i32_36 = arith.constant 7 : i32
    %98 = arith.subi %c7_i32_36, %c2_i32 : i32
    %99 = arith.index_cast %c2_i32 : i32 to index
    %c0_37 = arith.constant 0 : index
    %c0_38 = arith.constant 0 : index
    %100 = vector.load %arg11[%99, %c0_37, %c0_38] : memref<8x8x256xf32, #tpu.memory_space<vmem>>, vector<1x8x128xf32>
    %101 = vector.shape_cast %100 : vector<1x8x128xf32> to vector<8x128xf32>
    %102 = vector.shape_cast %97 : vector<8x128xf32> to vector<1x8x128xf32>
    tpu.vector_store %arg11[%99, %c0_37, %c0_38], %102 {strides = array<i32>} : memref<8x8x256xf32, #tpu.memory_space<vmem>>, vector<1x8x128xf32>,
    %103 = arith.index_cast %98 : i32 to index
    %c0_39 = arith.constant 0 : index
    %c128_40 = arith.constant 128 : index
    %104 = vector.load %arg11[%103, %c0_39, %c128_40] : memref<8x8x256xf32, #tpu.memory_space<vmem>>, vector<1x8x128xf32>
    %105 = vector.shape_cast %104 : vector<1x8x128xf32> to vector<8x128xf32>
    %106 = vector.shape_cast %97 : vector<8x128xf32> to vector<1x8x128xf32>
    tpu.vector_store %arg11[%103, %c0_39, %c128_40], %106 {strides = array<i32>} : memref<8x8x256xf32, #tpu.memory_space<vmem>>, vector<1x8x128xf32>,
    %c3_i32 = arith.constant 3 : i32
    %107 = arith.index_cast %c3_i32 : i32 to index
    %c0_41 = arith.constant 0 : index
    %c0_42 = arith.constant 0 : index
    %108 = vector.load %arg10[%107, %c0_41, %c0_42] : memref<8x8x512xf32, #tpu.memory_space<vmem>>, vector<1x8x512xf32>
    %109 = vector.shape_cast %108 : vector<1x8x512xf32> to vector<8x512xf32>
    %110 = arith.truncf %97 : vector<8x128xf32> to vector<8x128xbf16>
    %c0_43 = arith.constant 0 : index
    %c0_44 = arith.constant 0 : index
    %111 = vector.load %arg2[%c0_43, %c0_44] : memref<128x512xbf16, #tpu.memory_space<vmem>>, vector<128x512xbf16>
    %cst_45 = arith.constant dense<0.000000e+00> : vector<8x512xf32>
    %112 = tpu.matmul %110, %111, %cst_45 {dimension_numbers = #tpu.dot_dimension_numbers<[1], [0], [0], [1], [0, 0, 1, 1], [], []>} : vector<8x128xbf16>, vector<128x512xbf16>, vector<8x512xf32> -> vector<8x512xf32>
    %113 = arith.addf %109, %112 : vector<8x512xf32>
    %114 = vector.extract_strided_slice %113 {offsets = [0, 0], sizes = [8, 384], strides = [1, 1]} : vector<8x512xf32> to vector<8x384xf32>
    %115 = arith.negf %114 : vector<8x384xf32>
    %116 = math.exp %115 : vector<8x384xf32>
    %cst_46 = arith.constant 1.000000e+00 : f32
    %117 = vector.broadcast %cst_46 : f32 to vector<8x384xf32>
    %118 = arith.addf %117, %116 : vector<8x384xf32>
    %119 = arith.divf %117, %118 : vector<8x384xf32>
    %120 = vector.extract_strided_slice %113 {offsets = [0, 384], sizes = [8, 128], strides = [1, 1]} : vector<8x512xf32> to vector<8x128xf32>
    %121 = math.tanh %120 : vector<8x128xf32>
    %122 = vector.extract_strided_slice %119 {offsets = [0, 0], sizes = [8, 128], strides = [1, 1]} : vector<8x384xf32> to vector<8x128xf32>
    %123 = vector.extract_strided_slice %119 {offsets = [0, 128], sizes = [8, 128], strides = [1, 1]} : vector<8x384xf32> to vector<8x128xf32>
    %124 = vector.extract_strided_slice %119 {offsets = [0, 256], sizes = [8, 128], strides = [1, 1]} : vector<8x384xf32> to vector<8x128xf32>
    %125 = arith.mulf %123, %95 : vector<8x128xf32>
    %126 = arith.mulf %122, %121 : vector<8x128xf32>
    %127 = arith.addf %125, %126 : vector<8x128xf32>
    %128 = math.tanh %127 : vector<8x128xf32>
    %129 = arith.mulf %124, %128 : vector<8x128xf32>
    %c7_i32_47 = arith.constant 7 : i32
    %130 = arith.subi %c7_i32_47, %c3_i32 : i32
    %131 = arith.index_cast %c3_i32 : i32 to index
    %c0_48 = arith.constant 0 : index
    %c0_49 = arith.constant 0 : index
    %132 = vector.load %arg11[%131, %c0_48, %c0_49] : memref<8x8x256xf32, #tpu.memory_space<vmem>>, vector<1x8x128xf32>
    %133 = vector.shape_cast %132 : vector<1x8x128xf32> to vector<8x128xf32>
    %134 = vector.shape_cast %129 : vector<8x128xf32> to vector<1x8x128xf32>
    tpu.vector_store %arg11[%131, %c0_48, %c0_49], %134 {strides = array<i32>} : memref<8x8x256xf32, #tpu.memory_space<vmem>>, vector<1x8x128xf32>,
    %135 = arith.index_cast %130 : i32 to index
    %c0_50 = arith.constant 0 : index
    %c128_51 = arith.constant 128 : index
    %136 = vector.load %arg11[%135, %c0_50, %c128_51] : memref<8x8x256xf32, #tpu.memory_space<vmem>>, vector<1x8x128xf32>
    %137 = vector.shape_cast %136 : vector<1x8x128xf32> to vector<8x128xf32>
    %138 = vector.shape_cast %129 : vector<8x128xf32> to vector<1x8x128xf32>
    tpu.vector_store %arg11[%135, %c0_50, %c128_51], %138 {strides = array<i32>} : memref<8x8x256xf32, #tpu.memory_space<vmem>>, vector<1x8x128xf32>,
    %c4_i32 = arith.constant 4 : i32
    %139 = arith.index_cast %c4_i32 : i32 to index
    %c0_52 = arith.constant 0 : index
    %c0_53 = arith.constant 0 : index
    %140 = vector.load %arg10[%139, %c0_52, %c0_53] : memref<8x8x512xf32, #tpu.memory_space<vmem>>, vector<1x8x512xf32>
    %141 = vector.shape_cast %140 : vector<1x8x512xf32> to vector<8x512xf32>
    %142 = arith.truncf %129 : vector<8x128xf32> to vector<8x128xbf16>
    %c0_54 = arith.constant 0 : index
    %c0_55 = arith.constant 0 : index
    %143 = vector.load %arg2[%c0_54, %c0_55] : memref<128x512xbf16, #tpu.memory_space<vmem>>, vector<128x512xbf16>
    %cst_56 = arith.constant dense<0.000000e+00> : vector<8x512xf32>
    %144 = tpu.matmul %142, %143, %cst_56 {dimension_numbers = #tpu.dot_dimension_numbers<[1], [0], [0], [1], [0, 0, 1, 1], [], []>} : vector<8x128xbf16>, vector<128x512xbf16>, vector<8x512xf32> -> vector<8x512xf32>
    %145 = arith.addf %141, %144 : vector<8x512xf32>
    %146 = vector.extract_strided_slice %145 {offsets = [0, 0], sizes = [8, 384], strides = [1, 1]} : vector<8x512xf32> to vector<8x384xf32>
    %147 = arith.negf %146 : vector<8x384xf32>
    %148 = math.exp %147 : vector<8x384xf32>
    %cst_57 = arith.constant 1.000000e+00 : f32
    %149 = vector.broadcast %cst_57 : f32 to vector<8x384xf32>
    %150 = arith.addf %149, %148 : vector<8x384xf32>
    %151 = arith.divf %149, %150 : vector<8x384xf32>
    %152 = vector.extract_strided_slice %145 {offsets = [0, 384], sizes = [8, 128], strides = [1, 1]} : vector<8x512xf32> to vector<8x128xf32>
    %153 = math.tanh %152 : vector<8x128xf32>
    %154 = vector.extract_strided_slice %151 {offsets = [0, 0], sizes = [8, 128], strides = [1, 1]} : vector<8x384xf32> to vector<8x128xf32>
    %155 = vector.extract_strided_slice %151 {offsets = [0, 128], sizes = [8, 128], strides = [1, 1]} : vector<8x384xf32> to vector<8x128xf32>
    %156 = vector.extract_strided_slice %151 {offsets = [0, 256], sizes = [8, 128], strides = [1, 1]} : vector<8x384xf32> to vector<8x128xf32>
    %157 = arith.mulf %155, %127 : vector<8x128xf32>
    %158 = arith.mulf %154, %153 : vector<8x128xf32>
    %159 = arith.addf %157, %158 : vector<8x128xf32>
    %160 = math.tanh %159 : vector<8x128xf32>
    %161 = arith.mulf %156, %160 : vector<8x128xf32>
    %c7_i32_58 = arith.constant 7 : i32
    %162 = arith.subi %c7_i32_58, %c4_i32 : i32
    %163 = arith.index_cast %c4_i32 : i32 to index
    %c0_59 = arith.constant 0 : index
    %c0_60 = arith.constant 0 : index
    %164 = vector.load %arg11[%163, %c0_59, %c0_60] : memref<8x8x256xf32, #tpu.memory_space<vmem>>, vector<1x8x128xf32>
    %165 = vector.shape_cast %164 : vector<1x8x128xf32> to vector<8x128xf32>
    %166 = vector.shape_cast %161 : vector<8x128xf32> to vector<1x8x128xf32>
    tpu.vector_store %arg11[%163, %c0_59, %c0_60], %166 {strides = array<i32>} : memref<8x8x256xf32, #tpu.memory_space<vmem>>, vector<1x8x128xf32>,
    %167 = arith.index_cast %162 : i32 to index
    %c0_61 = arith.constant 0 : index
    %c128_62 = arith.constant 128 : index
    %168 = vector.load %arg11[%167, %c0_61, %c128_62] : memref<8x8x256xf32, #tpu.memory_space<vmem>>, vector<1x8x128xf32>
    %169 = vector.shape_cast %168 : vector<1x8x128xf32> to vector<8x128xf32>
    %170 = vector.shape_cast %161 : vector<8x128xf32> to vector<1x8x128xf32>
    tpu.vector_store %arg11[%167, %c0_61, %c128_62], %170 {strides = array<i32>} : memref<8x8x256xf32, #tpu.memory_space<vmem>>, vector<1x8x128xf32>,
    %c5_i32 = arith.constant 5 : i32
    %171 = arith.index_cast %c5_i32 : i32 to index
    %c0_63 = arith.constant 0 : index
    %c0_64 = arith.constant 0 : index
    %172 = vector.load %arg10[%171, %c0_63, %c0_64] : memref<8x8x512xf32, #tpu.memory_space<vmem>>, vector<1x8x512xf32>
    %173 = vector.shape_cast %172 : vector<1x8x512xf32> to vector<8x512xf32>
    %174 = arith.truncf %161 : vector<8x128xf32> to vector<8x128xbf16>
    %c0_65 = arith.constant 0 : index
    %c0_66 = arith.constant 0 : index
    %175 = vector.load %arg2[%c0_65, %c0_66] : memref<128x512xbf16, #tpu.memory_space<vmem>>, vector<128x512xbf16>
    %cst_67 = arith.constant dense<0.000000e+00> : vector<8x512xf32>
    %176 = tpu.matmul %174, %175, %cst_67 {dimension_numbers = #tpu.dot_dimension_numbers<[1], [0], [0], [1], [0, 0, 1, 1], [], []>} : vector<8x128xbf16>, vector<128x512xbf16>, vector<8x512xf32> -> vector<8x512xf32>
    %177 = arith.addf %173, %176 : vector<8x512xf32>
    %178 = vector.extract_strided_slice %177 {offsets = [0, 0], sizes = [8, 384], strides = [1, 1]} : vector<8x512xf32> to vector<8x384xf32>
    %179 = arith.negf %178 : vector<8x384xf32>
    %180 = math.exp %179 : vector<8x384xf32>
    %cst_68 = arith.constant 1.000000e+00 : f32
    %181 = vector.broadcast %cst_68 : f32 to vector<8x384xf32>
    %182 = arith.addf %181, %180 : vector<8x384xf32>
    %183 = arith.divf %181, %182 : vector<8x384xf32>
    %184 = vector.extract_strided_slice %177 {offsets = [0, 384], sizes = [8, 128], strides = [1, 1]} : vector<8x512xf32> to vector<8x128xf32>
    %185 = math.tanh %184 : vector<8x128xf32>
    %186 = vector.extract_strided_slice %183 {offsets = [0, 0], sizes = [8, 128], strides = [1, 1]} : vector<8x384xf32> to vector<8x128xf32>
    %187 = vector.extract_strided_slice %183 {offsets = [0, 128], sizes = [8, 128], strides = [1, 1]} : vector<8x384xf32> to vector<8x128xf32>
    %188 = vector.extract_strided_slice %183 {offsets = [0, 256], sizes = [8, 128], strides = [1, 1]} : vector<8x384xf32> to vector<8x128xf32>
    %189 = arith.mulf %187, %159 : vector<8x128xf32>
    %190 = arith.mulf %186, %185 : vector<8x128xf32>
    %191 = arith.addf %189, %190 : vector<8x128xf32>
    %192 = math.tanh %191 : vector<8x128xf32>
    %193 = arith.mulf %188, %192 : vector<8x128xf32>
    %c7_i32_69 = arith.constant 7 : i32
    %194 = arith.subi %c7_i32_69, %c5_i32 : i32
    %195 = arith.index_cast %c5_i32 : i32 to index
    %c0_70 = arith.constant 0 : index
    %c0_71 = arith.constant 0 : index
    %196 = vector.load %arg11[%195, %c0_70, %c0_71] : memref<8x8x256xf32, #tpu.memory_space<vmem>>, vector<1x8x128xf32>
    %197 = vector.shape_cast %196 : vector<1x8x128xf32> to vector<8x128xf32>
    %198 = vector.shape_cast %193 : vector<8x128xf32> to vector<1x8x128xf32>
    tpu.vector_store %arg11[%195, %c0_70, %c0_71], %198 {strides = array<i32>} : memref<8x8x256xf32, #tpu.memory_space<vmem>>, vector<1x8x128xf32>,
    %199 = arith.index_cast %194 : i32 to index
    %c0_72 = arith.constant 0 : index
    %c128_73 = arith.constant 128 : index
    %200 = vector.load %arg11[%199, %c0_72, %c128_73] : memref<8x8x256xf32, #tpu.memory_space<vmem>>, vector<1x8x128xf32>
    %201 = vector.shape_cast %200 : vector<1x8x128xf32> to vector<8x128xf32>
    %202 = vector.shape_cast %193 : vector<8x128xf32> to vector<1x8x128xf32>
    tpu.vector_store %arg11[%199, %c0_72, %c128_73], %202 {strides = array<i32>} : memref<8x8x256xf32, #tpu.memory_space<vmem>>, vector<1x8x128xf32>,
    %c6_i32 = arith.constant 6 : i32
    %203 = arith.index_cast %c6_i32 : i32 to index
    %c0_74 = arith.constant 0 : index
    %c0_75 = arith.constant 0 : index
    %204 = vector.load %arg10[%203, %c0_74, %c0_75] : memref<8x8x512xf32, #tpu.memory_space<vmem>>, vector<1x8x512xf32>
    %205 = vector.shape_cast %204 : vector<1x8x512xf32> to vector<8x512xf32>
    %206 = arith.truncf %193 : vector<8x128xf32> to vector<8x128xbf16>
    %c0_76 = arith.constant 0 : index
    %c0_77 = arith.constant 0 : index
    %207 = vector.load %arg2[%c0_76, %c0_77] : memref<128x512xbf16, #tpu.memory_space<vmem>>, vector<128x512xbf16>
    %cst_78 = arith.constant dense<0.000000e+00> : vector<8x512xf32>
    %208 = tpu.matmul %206, %207, %cst_78 {dimension_numbers = #tpu.dot_dimension_numbers<[1], [0], [0], [1], [0, 0, 1, 1], [], []>} : vector<8x128xbf16>, vector<128x512xbf16>, vector<8x512xf32> -> vector<8x512xf32>
    %209 = arith.addf %205, %208 : vector<8x512xf32>
    %210 = vector.extract_strided_slice %209 {offsets = [0, 0], sizes = [8, 384], strides = [1, 1]} : vector<8x512xf32> to vector<8x384xf32>
    %211 = arith.negf %210 : vector<8x384xf32>
    %212 = math.exp %211 : vector<8x384xf32>
    %cst_79 = arith.constant 1.000000e+00 : f32
    %213 = vector.broadcast %cst_79 : f32 to vector<8x384xf32>
    %214 = arith.addf %213, %212 : vector<8x384xf32>
    %215 = arith.divf %213, %214 : vector<8x384xf32>
    %216 = vector.extract_strided_slice %209 {offsets = [0, 384], sizes = [8, 128], strides = [1, 1]} : vector<8x512xf32> to vector<8x128xf32>
    %217 = math.tanh %216 : vector<8x128xf32>
    %218 = vector.extract_strided_slice %215 {offsets = [0, 0], sizes = [8, 128], strides = [1, 1]} : vector<8x384xf32> to vector<8x128xf32>
    %219 = vector.extract_strided_slice %215 {offsets = [0, 128], sizes = [8, 128], strides = [1, 1]} : vector<8x384xf32> to vector<8x128xf32>
    %220 = vector.extract_strided_slice %215 {offsets = [0, 256], sizes = [8, 128], strides = [1, 1]} : vector<8x384xf32> to vector<8x128xf32>
    %221 = arith.mulf %219, %191 : vector<8x128xf32>
    %222 = arith.mulf %218, %217 : vector<8x128xf32>
    %223 = arith.addf %221, %222 : vector<8x128xf32>
    %224 = math.tanh %223 : vector<8x128xf32>
    %225 = arith.mulf %220, %224 : vector<8x128xf32>
    %c7_i32_80 = arith.constant 7 : i32
    %226 = arith.subi %c7_i32_80, %c6_i32 : i32
    %227 = arith.index_cast %c6_i32 : i32 to index
    %c0_81 = arith.constant 0 : index
    %c0_82 = arith.constant 0 : index
    %228 = vector.load %arg11[%227, %c0_81, %c0_82] : memref<8x8x256xf32, #tpu.memory_space<vmem>>, vector<1x8x128xf32>
    %229 = vector.shape_cast %228 : vector<1x8x128xf32> to vector<8x128xf32>
    %230 = vector.shape_cast %225 : vector<8x128xf32> to vector<1x8x128xf32>
    tpu.vector_store %arg11[%227, %c0_81, %c0_82], %230 {strides = array<i32>} : memref<8x8x256xf32, #tpu.memory_space<vmem>>, vector<1x8x128xf32>,
    %231 = arith.index_cast %226 : i32 to index
    %c0_83 = arith.constant 0 : index
    %c128_84 = arith.constant 128 : index
    %232 = vector.load %arg11[%231, %c0_83, %c128_84] : memref<8x8x256xf32, #tpu.memory_space<vmem>>, vector<1x8x128xf32>
    %233 = vector.shape_cast %232 : vector<1x8x128xf32> to vector<8x128xf32>
    %234 = vector.shape_cast %225 : vector<8x128xf32> to vector<1x8x128xf32>
    tpu.vector_store %arg11[%231, %c0_83, %c128_84], %234 {strides = array<i32>} : memref<8x8x256xf32, #tpu.memory_space<vmem>>, vector<1x8x128xf32>,
    %c7_i32_85 = arith.constant 7 : i32
    %235 = arith.index_cast %c7_i32_85 : i32 to index
    %c0_86 = arith.constant 0 : index
    %c0_87 = arith.constant 0 : index
    %236 = vector.load %arg10[%235, %c0_86, %c0_87] : memref<8x8x512xf32, #tpu.memory_space<vmem>>, vector<1x8x512xf32>
    %237 = vector.shape_cast %236 : vector<1x8x512xf32> to vector<8x512xf32>
    %238 = arith.truncf %225 : vector<8x128xf32> to vector<8x128xbf16>
    %c0_88 = arith.constant 0 : index
    %c0_89 = arith.constant 0 : index
    %239 = vector.load %arg2[%c0_88, %c0_89] : memref<128x512xbf16, #tpu.memory_space<vmem>>, vector<128x512xbf16>
    %cst_90 = arith.constant dense<0.000000e+00> : vector<8x512xf32>
    %240 = tpu.matmul %238, %239, %cst_90 {dimension_numbers = #tpu.dot_dimension_numbers<[1], [0], [0], [1], [0, 0, 1, 1], [], []>} : vector<8x128xbf16>, vector<128x512xbf16>, vector<8x512xf32> -> vector<8x512xf32>
    %241 = arith.addf %237, %240 : vector<8x512xf32>
    %242 = vector.extract_strided_slice %241 {offsets = [0, 0], sizes = [8, 384], strides = [1, 1]} : vector<8x512xf32> to vector<8x384xf32>
    %243 = arith.negf %242 : vector<8x384xf32>
    %244 = math.exp %243 : vector<8x384xf32>
    %cst_91 = arith.constant 1.000000e+00 : f32
    %245 = vector.broadcast %cst_91 : f32 to vector<8x384xf32>
    %246 = arith.addf %245, %244 : vector<8x384xf32>
    %247 = arith.divf %245, %246 : vector<8x384xf32>
    %248 = vector.extract_strided_slice %241 {offsets = [0, 384], sizes = [8, 128], strides = [1, 1]} : vector<8x512xf32> to vector<8x128xf32>
    %249 = math.tanh %248 : vector<8x128xf32>
    %250 = vector.extract_strided_slice %247 {offsets = [0, 0], sizes = [8, 128], strides = [1, 1]} : vector<8x384xf32> to vector<8x128xf32>
    %251 = vector.extract_strided_slice %247 {offsets = [0, 128], sizes = [8, 128], strides = [1, 1]} : vector<8x384xf32> to vector<8x128xf32>
    %252 = vector.extract_strided_slice %247 {offsets = [0, 256], sizes = [8, 128], strides = [1, 1]} : vector<8x384xf32> to vector<8x128xf32>
    %253 = arith.mulf %251, %223 : vector<8x128xf32>
    %254 = arith.mulf %250, %249 : vector<8x128xf32>
    %255 = arith.addf %253, %254 : vector<8x128xf32>
    %256 = math.tanh %255 : vector<8x128xf32>
    %257 = arith.mulf %252, %256 : vector<8x128xf32>
    %c7_i32_92 = arith.constant 7 : i32
    %258 = arith.subi %c7_i32_92, %c7_i32_85 : i32
    %259 = arith.index_cast %c7_i32_85 : i32 to index
    %c0_93 = arith.constant 0 : index
    %c0_94 = arith.constant 0 : index
    %260 = vector.load %arg11[%259, %c0_93, %c0_94] : memref<8x8x256xf32, #tpu.memory_space<vmem>>, vector<1x8x128xf32>
    %261 = vector.shape_cast %260 : vector<1x8x128xf32> to vector<8x128xf32>
    %262 = vector.shape_cast %257 : vector<8x128xf32> to vector<1x8x128xf32>
    tpu.vector_store %arg11[%259, %c0_93, %c0_94], %262 {strides = array<i32>} : memref<8x8x256xf32, #tpu.memory_space<vmem>>, vector<1x8x128xf32>,
    %263 = arith.index_cast %258 : i32 to index
    %c0_95 = arith.constant 0 : index
    %c128_96 = arith.constant 128 : index
    %264 = vector.load %arg11[%263, %c0_95, %c128_96] : memref<8x8x256xf32, #tpu.memory_space<vmem>>, vector<1x8x128xf32>
    %265 = vector.shape_cast %264 : vector<1x8x128xf32> to vector<8x128xf32>
    %266 = vector.shape_cast %257 : vector<8x128xf32> to vector<1x8x128xf32>
    tpu.vector_store %arg11[%263, %c0_95, %c128_96], %266 {strides = array<i32>} : memref<8x8x256xf32, #tpu.memory_space<vmem>>, vector<1x8x128xf32>,
    %c8_i32 = arith.constant 8 : i32
    %c0_97 = arith.constant 0 : index
    %c0_98 = arith.constant 0 : index
    %c0_99 = arith.constant 0 : index
    %267 = vector.load %arg11[%c0_97, %c0_98, %c0_99] : memref<8x8x256xf32, #tpu.memory_space<vmem>>, vector<8x8x256xf32>
    %268 = vector.shape_cast %267 : vector<8x8x256xf32> to vector<64x256xf32>
    %269 = arith.truncf %268 : vector<64x256xf32> to vector<64x256xbf16>
    %c0_100 = arith.constant 0 : index
    %c0_101 = arith.constant 0 : index
    %270 = vector.load %arg4[%c0_100, %c0_101] : memref<256x512xbf16, #tpu.memory_space<vmem>>, vector<256x512xbf16>
    %cst_102 = arith.constant dense<0.000000e+00> : vector<64x512xf32>
    %271 = tpu.matmul %269, %270, %cst_102 {dimension_numbers = #tpu.dot_dimension_numbers<[1], [0], [0], [1], [0, 0, 1, 1], [], []>} : vector<64x256xbf16>, vector<256x512xbf16>, vector<64x512xf32> -> vector<64x512xf32>
    %c0_103 = arith.constant 0 : index
    %c0_104 = arith.constant 0 : index
    %272 = vector.load %arg6[%c0_103, %c0_104] : memref<1x512xf32, #tpu.memory_space<vmem>>, vector<1x512xf32>
    %273 = vector.broadcast %272 : vector<1x512xf32> to vector<64x512xf32>
    %274 = arith.addf %271, %273 : vector<64x512xf32>
    %275 = vector.shape_cast %274 : vector<64x512xf32> to vector<8x8x512xf32>
    %c0_105 = arith.constant 0 : index
    %c0_106 = arith.constant 0 : index
    %c0_107 = arith.constant 0 : index
    %276 = vector.load %arg10[%c0_105, %c0_106, %c0_107] : memref<8x8x512xf32, #tpu.memory_space<vmem>>, vector<8x8x512xf32>
    tpu.vector_store %arg10[%c0_105, %c0_106, %c0_107], %275 {strides = array<i32>} : memref<8x8x512xf32, #tpu.memory_space<vmem>>, vector<8x8x512xf32>,
    %c0_i32_108 = arith.constant 0 : i32
    %277 = arith.index_cast %c0_i32_108 : i32 to index
    %c0_109 = arith.constant 0 : index
    %c0_110 = arith.constant 0 : index
    %278 = vector.load %arg10[%277, %c0_109, %c0_110] : memref<8x8x512xf32, #tpu.memory_space<vmem>>, vector<1x8x512xf32>
    %279 = vector.shape_cast %278 : vector<1x8x512xf32> to vector<8x512xf32>
    %280 = arith.truncf %10 : vector<8x128xf32> to vector<8x128xbf16>
    %c0_111 = arith.constant 0 : index
    %c0_112 = arith.constant 0 : index
    %281 = vector.load %arg5[%c0_111, %c0_112] : memref<128x512xbf16, #tpu.memory_space<vmem>>, vector<128x512xbf16>
    %cst_113 = arith.constant dense<0.000000e+00> : vector<8x512xf32>
    %282 = tpu.matmul %280, %281, %cst_113 {dimension_numbers = #tpu.dot_dimension_numbers<[1], [0], [0], [1], [0, 0, 1, 1], [], []>} : vector<8x128xbf16>, vector<128x512xbf16>, vector<8x512xf32> -> vector<8x512xf32>
    %283 = arith.addf %279, %282 : vector<8x512xf32>
    %284 = vector.extract_strided_slice %283 {offsets = [0, 0], sizes = [8, 384], strides = [1, 1]} : vector<8x512xf32> to vector<8x384xf32>
    %285 = arith.negf %284 : vector<8x384xf32>
    %286 = math.exp %285 : vector<8x384xf32>
    %cst_114 = arith.constant 1.000000e+00 : f32
    %287 = vector.broadcast %cst_114 : f32 to vector<8x384xf32>
    %288 = arith.addf %287, %286 : vector<8x384xf32>
    %289 = arith.divf %287, %288 : vector<8x384xf32>
    %290 = vector.extract_strided_slice %283 {offsets = [0, 384], sizes = [8, 128], strides = [1, 1]} : vector<8x512xf32> to vector<8x128xf32>
    %291 = math.tanh %290 : vector<8x128xf32>
    %292 = vector.extract_strided_slice %289 {offsets = [0, 0], sizes = [8, 128], strides = [1, 1]} : vector<8x384xf32> to vector<8x128xf32>
    %293 = vector.extract_strided_slice %289 {offsets = [0, 128], sizes = [8, 128], strides = [1, 1]} : vector<8x384xf32> to vector<8x128xf32>
    %294 = vector.extract_strided_slice %289 {offsets = [0, 256], sizes = [8, 128], strides = [1, 1]} : vector<8x384xf32> to vector<8x128xf32>
    %295 = arith.mulf %293, %10 : vector<8x128xf32>
    %296 = arith.mulf %292, %291 : vector<8x128xf32>
    %297 = arith.addf %295, %296 : vector<8x128xf32>
    %298 = math.tanh %297 : vector<8x128xf32>
    %299 = arith.mulf %294, %298 : vector<8x128xf32>
    %c1_i32_115 = arith.constant 1 : i32
    %300 = arith.index_cast %c1_i32_115 : i32 to index
    %c0_116 = arith.constant 0 : index
    %c0_117 = arith.constant 0 : index
    %301 = vector.load %arg10[%300, %c0_116, %c0_117] : memref<8x8x512xf32, #tpu.memory_space<vmem>>, vector<1x8x512xf32>
    %302 = vector.shape_cast %301 : vector<1x8x512xf32> to vector<8x512xf32>
    %303 = arith.truncf %299 : vector<8x128xf32> to vector<8x128xbf16>
    %c0_118 = arith.constant 0 : index
    %c0_119 = arith.constant 0 : index
    %304 = vector.load %arg5[%c0_118, %c0_119] : memref<128x512xbf16, #tpu.memory_space<vmem>>, vector<128x512xbf16>
    %cst_120 = arith.constant dense<0.000000e+00> : vector<8x512xf32>
    %305 = tpu.matmul %303, %304, %cst_120 {dimension_numbers = #tpu.dot_dimension_numbers<[1], [0], [0], [1], [0, 0, 1, 1], [], []>} : vector<8x128xbf16>, vector<128x512xbf16>, vector<8x512xf32> -> vector<8x512xf32>
    %306 = arith.addf %302, %305 : vector<8x512xf32>
    %307 = vector.extract_strided_slice %306 {offsets = [0, 0], sizes = [8, 384], strides = [1, 1]} : vector<8x512xf32> to vector<8x384xf32>
    %308 = arith.negf %307 : vector<8x384xf32>
    %309 = math.exp %308 : vector<8x384xf32>
    %cst_121 = arith.constant 1.000000e+00 : f32
    %310 = vector.broadcast %cst_121 : f32 to vector<8x384xf32>
    %311 = arith.addf %310, %309 : vector<8x384xf32>
    %312 = arith.divf %310, %311 : vector<8x384xf32>
    %313 = vector.extract_strided_slice %306 {offsets = [0, 384], sizes = [8, 128], strides = [1, 1]} : vector<8x512xf32> to vector<8x128xf32>
    %314 = math.tanh %313 : vector<8x128xf32>
    %315 = vector.extract_strided_slice %312 {offsets = [0, 0], sizes = [8, 128], strides = [1, 1]} : vector<8x384xf32> to vector<8x128xf32>
    %316 = vector.extract_strided_slice %312 {offsets = [0, 128], sizes = [8, 128], strides = [1, 1]} : vector<8x384xf32> to vector<8x128xf32>
    %317 = vector.extract_strided_slice %312 {offsets = [0, 256], sizes = [8, 128], strides = [1, 1]} : vector<8x384xf32> to vector<8x128xf32>
    %318 = arith.mulf %316, %297 : vector<8x128xf32>
    %319 = arith.mulf %315, %314 : vector<8x128xf32>
    %320 = arith.addf %318, %319 : vector<8x128xf32>
    %321 = math.tanh %320 : vector<8x128xf32>
    %322 = arith.mulf %317, %321 : vector<8x128xf32>
    %c2_i32_122 = arith.constant 2 : i32
    %323 = arith.index_cast %c2_i32_122 : i32 to index
    %c0_123 = arith.constant 0 : index
    %c0_124 = arith.constant 0 : index
    %324 = vector.load %arg10[%323, %c0_123, %c0_124] : memref<8x8x512xf32, #tpu.memory_space<vmem>>, vector<1x8x512xf32>
    %325 = vector.shape_cast %324 : vector<1x8x512xf32> to vector<8x512xf32>
    %326 = arith.truncf %322 : vector<8x128xf32> to vector<8x128xbf16>
    %c0_125 = arith.constant 0 : index
    %c0_126 = arith.constant 0 : index
    %327 = vector.load %arg5[%c0_125, %c0_126] : memref<128x512xbf16, #tpu.memory_space<vmem>>, vector<128x512xbf16>
    %cst_127 = arith.constant dense<0.000000e+00> : vector<8x512xf32>
    %328 = tpu.matmul %326, %327, %cst_127 {dimension_numbers = #tpu.dot_dimension_numbers<[1], [0], [0], [1], [0, 0, 1, 1], [], []>} : vector<8x128xbf16>, vector<128x512xbf16>, vector<8x512xf32> -> vector<8x512xf32>
    %329 = arith.addf %325, %328 : vector<8x512xf32>
    %330 = vector.extract_strided_slice %329 {offsets = [0, 0], sizes = [8, 384], strides = [1, 1]} : vector<8x512xf32> to vector<8x384xf32>
    %331 = arith.negf %330 : vector<8x384xf32>
    %332 = math.exp %331 : vector<8x384xf32>
    %cst_128 = arith.constant 1.000000e+00 : f32
    %333 = vector.broadcast %cst_128 : f32 to vector<8x384xf32>
    %334 = arith.addf %333, %332 : vector<8x384xf32>
    %335 = arith.divf %333, %334 : vector<8x384xf32>
    %336 = vector.extract_strided_slice %329 {offsets = [0, 384], sizes = [8, 128], strides = [1, 1]} : vector<8x512xf32> to vector<8x128xf32>
    %337 = math.tanh %336 : vector<8x128xf32>
    %338 = vector.extract_strided_slice %335 {offsets = [0, 0], sizes = [8, 128], strides = [1, 1]} : vector<8x384xf32> to vector<8x128xf32>
    %339 = vector.extract_strided_slice %335 {offsets = [0, 128], sizes = [8, 128], strides = [1, 1]} : vector<8x384xf32> to vector<8x128xf32>
    %340 = vector.extract_strided_slice %335 {offsets = [0, 256], sizes = [8, 128], strides = [1, 1]} : vector<8x384xf32> to vector<8x128xf32>
    %341 = arith.mulf %339, %320 : vector<8x128xf32>
    %342 = arith.mulf %338, %337 : vector<8x128xf32>
    %343 = arith.addf %341, %342 : vector<8x128xf32>
    %344 = math.tanh %343 : vector<8x128xf32>
    %345 = arith.mulf %340, %344 : vector<8x128xf32>
    %c3_i32_129 = arith.constant 3 : i32
    %346 = arith.index_cast %c3_i32_129 : i32 to index
    %c0_130 = arith.constant 0 : index
    %c0_131 = arith.constant 0 : index
    %347 = vector.load %arg10[%346, %c0_130, %c0_131] : memref<8x8x512xf32, #tpu.memory_space<vmem>>, vector<1x8x512xf32>
    %348 = vector.shape_cast %347 : vector<1x8x512xf32> to vector<8x512xf32>
    %349 = arith.truncf %345 : vector<8x128xf32> to vector<8x128xbf16>
    %c0_132 = arith.constant 0 : index
    %c0_133 = arith.constant 0 : index
    %350 = vector.load %arg5[%c0_132, %c0_133] : memref<128x512xbf16, #tpu.memory_space<vmem>>, vector<128x512xbf16>
    %cst_134 = arith.constant dense<0.000000e+00> : vector<8x512xf32>
    %351 = tpu.matmul %349, %350, %cst_134 {dimension_numbers = #tpu.dot_dimension_numbers<[1], [0], [0], [1], [0, 0, 1, 1], [], []>} : vector<8x128xbf16>, vector<128x512xbf16>, vector<8x512xf32> -> vector<8x512xf32>
    %352 = arith.addf %348, %351 : vector<8x512xf32>
    %353 = vector.extract_strided_slice %352 {offsets = [0, 0], sizes = [8, 384], strides = [1, 1]} : vector<8x512xf32> to vector<8x384xf32>
    %354 = arith.negf %353 : vector<8x384xf32>
    %355 = math.exp %354 : vector<8x384xf32>
    %cst_135 = arith.constant 1.000000e+00 : f32
    %356 = vector.broadcast %cst_135 : f32 to vector<8x384xf32>
    %357 = arith.addf %356, %355 : vector<8x384xf32>
    %358 = arith.divf %356, %357 : vector<8x384xf32>
    %359 = vector.extract_strided_slice %352 {offsets = [0, 384], sizes = [8, 128], strides = [1, 1]} : vector<8x512xf32> to vector<8x128xf32>
    %360 = math.tanh %359 : vector<8x128xf32>
    %361 = vector.extract_strided_slice %358 {offsets = [0, 0], sizes = [8, 128], strides = [1, 1]} : vector<8x384xf32> to vector<8x128xf32>
    %362 = vector.extract_strided_slice %358 {offsets = [0, 128], sizes = [8, 128], strides = [1, 1]} : vector<8x384xf32> to vector<8x128xf32>
    %363 = vector.extract_strided_slice %358 {offsets = [0, 256], sizes = [8, 128], strides = [1, 1]} : vector<8x384xf32> to vector<8x128xf32>
    %364 = arith.mulf %362, %343 : vector<8x128xf32>
    %365 = arith.mulf %361, %360 : vector<8x128xf32>
    %366 = arith.addf %364, %365 : vector<8x128xf32>
    %367 = math.tanh %366 : vector<8x128xf32>
    %368 = arith.mulf %363, %367 : vector<8x128xf32>
    %c4_i32_136 = arith.constant 4 : i32
    %369 = arith.index_cast %c4_i32_136 : i32 to index
    %c0_137 = arith.constant 0 : index
    %c0_138 = arith.constant 0 : index
    %370 = vector.load %arg10[%369, %c0_137, %c0_138] : memref<8x8x512xf32, #tpu.memory_space<vmem>>, vector<1x8x512xf32>
    %371 = vector.shape_cast %370 : vector<1x8x512xf32> to vector<8x512xf32>
    %372 = arith.truncf %368 : vector<8x128xf32> to vector<8x128xbf16>
    %c0_139 = arith.constant 0 : index
    %c0_140 = arith.constant 0 : index
    %373 = vector.load %arg5[%c0_139, %c0_140] : memref<128x512xbf16, #tpu.memory_space<vmem>>, vector<128x512xbf16>
    %cst_141 = arith.constant dense<0.000000e+00> : vector<8x512xf32>
    %374 = tpu.matmul %372, %373, %cst_141 {dimension_numbers = #tpu.dot_dimension_numbers<[1], [0], [0], [1], [0, 0, 1, 1], [], []>} : vector<8x128xbf16>, vector<128x512xbf16>, vector<8x512xf32> -> vector<8x512xf32>
    %375 = arith.addf %371, %374 : vector<8x512xf32>
    %376 = vector.extract_strided_slice %375 {offsets = [0, 0], sizes = [8, 384], strides = [1, 1]} : vector<8x512xf32> to vector<8x384xf32>
    %377 = arith.negf %376 : vector<8x384xf32>
    %378 = math.exp %377 : vector<8x384xf32>
    %cst_142 = arith.constant 1.000000e+00 : f32
    %379 = vector.broadcast %cst_142 : f32 to vector<8x384xf32>
    %380 = arith.addf %379, %378 : vector<8x384xf32>
    %381 = arith.divf %379, %380 : vector<8x384xf32>
    %382 = vector.extract_strided_slice %375 {offsets = [0, 384], sizes = [8, 128], strides = [1, 1]} : vector<8x512xf32> to vector<8x128xf32>
    %383 = math.tanh %382 : vector<8x128xf32>
    %384 = vector.extract_strided_slice %381 {offsets = [0, 0], sizes = [8, 128], strides = [1, 1]} : vector<8x384xf32> to vector<8x128xf32>
    %385 = vector.extract_strided_slice %381 {offsets = [0, 128], sizes = [8, 128], strides = [1, 1]} : vector<8x384xf32> to vector<8x128xf32>
    %386 = vector.extract_strided_slice %381 {offsets = [0, 256], sizes = [8, 128], strides = [1, 1]} : vector<8x384xf32> to vector<8x128xf32>
    %387 = arith.mulf %385, %366 : vector<8x128xf32>
    %388 = arith.mulf %384, %383 : vector<8x128xf32>
    %389 = arith.addf %387, %388 : vector<8x128xf32>
    %390 = math.tanh %389 : vector<8x128xf32>
    %391 = arith.mulf %386, %390 : vector<8x128xf32>
    %c5_i32_143 = arith.constant 5 : i32
    %392 = arith.index_cast %c5_i32_143 : i32 to index
    %c0_144 = arith.constant 0 : index
    %c0_145 = arith.constant 0 : index
    %393 = vector.load %arg10[%392, %c0_144, %c0_145] : memref<8x8x512xf32, #tpu.memory_space<vmem>>, vector<1x8x512xf32>
    %394 = vector.shape_cast %393 : vector<1x8x512xf32> to vector<8x512xf32>
    %395 = arith.truncf %391 : vector<8x128xf32> to vector<8x128xbf16>
    %c0_146 = arith.constant 0 : index
    %c0_147 = arith.constant 0 : index
    %396 = vector.load %arg5[%c0_146, %c0_147] : memref<128x512xbf16, #tpu.memory_space<vmem>>, vector<128x512xbf16>
    %cst_148 = arith.constant dense<0.000000e+00> : vector<8x512xf32>
    %397 = tpu.matmul %395, %396, %cst_148 {dimension_numbers = #tpu.dot_dimension_numbers<[1], [0], [0], [1], [0, 0, 1, 1], [], []>} : vector<8x128xbf16>, vector<128x512xbf16>, vector<8x512xf32> -> vector<8x512xf32>
    %398 = arith.addf %394, %397 : vector<8x512xf32>
    %399 = vector.extract_strided_slice %398 {offsets = [0, 0], sizes = [8, 384], strides = [1, 1]} : vector<8x512xf32> to vector<8x384xf32>
    %400 = arith.negf %399 : vector<8x384xf32>
    %401 = math.exp %400 : vector<8x384xf32>
    %cst_149 = arith.constant 1.000000e+00 : f32
    %402 = vector.broadcast %cst_149 : f32 to vector<8x384xf32>
    %403 = arith.addf %402, %401 : vector<8x384xf32>
    %404 = arith.divf %402, %403 : vector<8x384xf32>
    %405 = vector.extract_strided_slice %398 {offsets = [0, 384], sizes = [8, 128], strides = [1, 1]} : vector<8x512xf32> to vector<8x128xf32>
    %406 = math.tanh %405 : vector<8x128xf32>
    %407 = vector.extract_strided_slice %404 {offsets = [0, 0], sizes = [8, 128], strides = [1, 1]} : vector<8x384xf32> to vector<8x128xf32>
    %408 = vector.extract_strided_slice %404 {offsets = [0, 128], sizes = [8, 128], strides = [1, 1]} : vector<8x384xf32> to vector<8x128xf32>
    %409 = vector.extract_strided_slice %404 {offsets = [0, 256], sizes = [8, 128], strides = [1, 1]} : vector<8x384xf32> to vector<8x128xf32>
    %410 = arith.mulf %408, %389 : vector<8x128xf32>
    %411 = arith.mulf %407, %406 : vector<8x128xf32>
    %412 = arith.addf %410, %411 : vector<8x128xf32>
    %413 = math.tanh %412 : vector<8x128xf32>
    %414 = arith.mulf %409, %413 : vector<8x128xf32>
    %c6_i32_150 = arith.constant 6 : i32
    %415 = arith.index_cast %c6_i32_150 : i32 to index
    %c0_151 = arith.constant 0 : index
    %c0_152 = arith.constant 0 : index
    %416 = vector.load %arg10[%415, %c0_151, %c0_152] : memref<8x8x512xf32, #tpu.memory_space<vmem>>, vector<1x8x512xf32>
    %417 = vector.shape_cast %416 : vector<1x8x512xf32> to vector<8x512xf32>
    %418 = arith.truncf %414 : vector<8x128xf32> to vector<8x128xbf16>
    %c0_153 = arith.constant 0 : index
    %c0_154 = arith.constant 0 : index
    %419 = vector.load %arg5[%c0_153, %c0_154] : memref<128x512xbf16, #tpu.memory_space<vmem>>, vector<128x512xbf16>
    %cst_155 = arith.constant dense<0.000000e+00> : vector<8x512xf32>
    %420 = tpu.matmul %418, %419, %cst_155 {dimension_numbers = #tpu.dot_dimension_numbers<[1], [0], [0], [1], [0, 0, 1, 1], [], []>} : vector<8x128xbf16>, vector<128x512xbf16>, vector<8x512xf32> -> vector<8x512xf32>
    %421 = arith.addf %417, %420 : vector<8x512xf32>
    %422 = vector.extract_strided_slice %421 {offsets = [0, 0], sizes = [8, 384], strides = [1, 1]} : vector<8x512xf32> to vector<8x384xf32>
    %423 = arith.negf %422 : vector<8x384xf32>
    %424 = math.exp %423 : vector<8x384xf32>
    %cst_156 = arith.constant 1.000000e+00 : f32
    %425 = vector.broadcast %cst_156 : f32 to vector<8x384xf32>
    %426 = arith.addf %425, %424 : vector<8x384xf32>
    %427 = arith.divf %425, %426 : vector<8x384xf32>
    %428 = vector.extract_strided_slice %421 {offsets = [0, 384], sizes = [8, 128], strides = [1, 1]} : vector<8x512xf32> to vector<8x128xf32>
    %429 = math.tanh %428 : vector<8x128xf32>
    %430 = vector.extract_strided_slice %427 {offsets = [0, 0], sizes = [8, 128], strides = [1, 1]} : vector<8x384xf32> to vector<8x128xf32>
    %431 = vector.extract_strided_slice %427 {offsets = [0, 128], sizes = [8, 128], strides = [1, 1]} : vector<8x384xf32> to vector<8x128xf32>
    %432 = vector.extract_strided_slice %427 {offsets = [0, 256], sizes = [8, 128], strides = [1, 1]} : vector<8x384xf32> to vector<8x128xf32>
    %433 = arith.mulf %431, %412 : vector<8x128xf32>
    %434 = arith.mulf %430, %429 : vector<8x128xf32>
    %435 = arith.addf %433, %434 : vector<8x128xf32>
    %436 = math.tanh %435 : vector<8x128xf32>
    %437 = arith.mulf %432, %436 : vector<8x128xf32>
    %c7_i32_157 = arith.constant 7 : i32
    %438 = arith.index_cast %c7_i32_157 : i32 to index
    %c0_158 = arith.constant 0 : index
    %c0_159 = arith.constant 0 : index
    %439 = vector.load %arg10[%438, %c0_158, %c0_159] : memref<8x8x512xf32, #tpu.memory_space<vmem>>, vector<1x8x512xf32>
    %440 = vector.shape_cast %439 : vector<1x8x512xf32> to vector<8x512xf32>
    %441 = arith.truncf %437 : vector<8x128xf32> to vector<8x128xbf16>
    %c0_160 = arith.constant 0 : index
    %c0_161 = arith.constant 0 : index
    %442 = vector.load %arg5[%c0_160, %c0_161] : memref<128x512xbf16, #tpu.memory_space<vmem>>, vector<128x512xbf16>
    %cst_162 = arith.constant dense<0.000000e+00> : vector<8x512xf32>
    %443 = tpu.matmul %441, %442, %cst_162 {dimension_numbers = #tpu.dot_dimension_numbers<[1], [0], [0], [1], [0, 0, 1, 1], [], []>} : vector<8x128xbf16>, vector<128x512xbf16>, vector<8x512xf32> -> vector<8x512xf32>
    %444 = arith.addf %440, %443 : vector<8x512xf32>
    %445 = vector.extract_strided_slice %444 {offsets = [0, 0], sizes = [8, 384], strides = [1, 1]} : vector<8x512xf32> to vector<8x384xf32>
    %446 = arith.negf %445 : vector<8x384xf32>
    %447 = math.exp %446 : vector<8x384xf32>
    %cst_163 = arith.constant 1.000000e+00 : f32
    %448 = vector.broadcast %cst_163 : f32 to vector<8x384xf32>
    %449 = arith.addf %448, %447 : vector<8x384xf32>
    %450 = arith.divf %448, %449 : vector<8x384xf32>
    %451 = vector.extract_strided_slice %444 {offsets = [0, 384], sizes = [8, 128], strides = [1, 1]} : vector<8x512xf32> to vector<8x128xf32>
    %452 = math.tanh %451 : vector<8x128xf32>
    %453 = vector.extract_strided_slice %450 {offsets = [0, 0], sizes = [8, 128], strides = [1, 1]} : vector<8x384xf32> to vector<8x128xf32>
    %454 = vector.extract_strided_slice %450 {offsets = [0, 128], sizes = [8, 128], strides = [1, 1]} : vector<8x384xf32> to vector<8x128xf32>
    %455 = vector.extract_strided_slice %450 {offsets = [0, 256], sizes = [8, 128], strides = [1, 1]} : vector<8x384xf32> to vector<8x128xf32>
    %456 = arith.mulf %454, %435 : vector<8x128xf32>
    %457 = arith.mulf %453, %452 : vector<8x128xf32>
    %458 = arith.addf %456, %457 : vector<8x128xf32>
    %459 = math.tanh %458 : vector<8x128xf32>
    %460 = arith.mulf %455, %459 : vector<8x128xf32>
    %c8_i32_164 = arith.constant 8 : i32
    %c0_165 = arith.constant 0 : index
    %c0_166 = arith.constant 0 : index
    %461 = vector.load %arg7[%c0_165, %c0_166] : memref<1x128xf32, #tpu.memory_space<vmem>>, vector<1x128xf32>
    %462 = vector.broadcast %461 : vector<1x128xf32> to vector<8x128xf32>
    %463 = arith.mulf %460, %462 : vector<8x128xf32>
    %cst_167 = arith.constant dense<0.000000e+00> : vector<8xf32>
    %464 = vector.multi_reduction <add>, %463, %cst_167 [1] : vector<8x128xf32> to vector<8xf32>
    %465 = vector.shape_cast %464 : vector<8xf32> to vector<8x1xf32>
    %c0_168 = arith.constant 0 : index
    %c0_169 = arith.constant 0 : index
    %466 = vector.load %arg8[%c0_168, %c0_169] : memref<1x1xf32, #tpu.memory_space<vmem>>, vector<1x1xf32>
    %467 = vector.broadcast %466 : vector<1x1xf32> to vector<8x1xf32>
    %468 = arith.addf %465, %467 : vector<8x1xf32>
    %c0_170 = arith.constant 0 : index
    %c0_171 = arith.constant 0 : index
    %469 = vector.load %arg9[%c0_170, %c0_171] : memref<8x1xf32, #tpu.memory_space<vmem>>, vector<8x1xf32>
    tpu.vector_store %arg9[%c0_170, %c0_171], %468 {strides = array<i32>} : memref<8x1xf32, #tpu.memory_space<vmem>>, vector<8x1xf32>,
    return
  }
}

</mosaic_0001>

<bundles_post_ra>
// kernel: bidirectional_lstm_model.1
= control target key start
LH: loop header
LB: loop body
LE: loop exit
PB: predicated region body
PF: predicated region fallthrough
CT: control target
= control target key end

     0   :  { %s6997_s0 = inlined_call_operand.vmem [shape: f32[8,8,32], index: 0, kind: input, shape index: {}]   ;;  %s6998_s1 = inlined_call_operand.vmem [shape: bf16[32,512], index: 1, kind: input, shape index: {}]   ;;  %s6999_s2 = inlined_call_operand.vmem [shape: bf16[128,512], index: 2, kind: input, shape index: {}]   ;;  %s7000_s3 = inlined_call_operand.vmem [shape: f32[1,512], index: 3, kind: input, shape index: {}]   ;;  %s7001_s4 = inlined_call_operand.hbm [shape: bf16[256,512], index: 4, kind: input, shape index: {}]   ;;  %s7002_s5 = inlined_call_operand.hbm [shape: bf16[128,512], index: 5, kind: input, shape index: {}]   ;;  %s7003_s6 = inlined_call_operand.vmem [shape: f32[1,512], index: 6, kind: input, shape index: {}]   ;;  %s7004_s7 = inlined_call_operand.vmem [shape: f32[1,128], index: 7, kind: input, shape index: {}]   ;;  %s7005_s8 = inlined_call_operand.<no memory space> [shape: f32[1,1], index: 8, kind: input, shape index: {}]   ;;  %s7006_s9 = inlined_call_operand.vmem [shape: f32[8,1], index: 9, kind: output, shape index: {}]  }
   0x1   :  { %v14_v0 = vstv %s7005_s8 }
   0x2   :  { %15 = vst [vmem:[#allocation4] sm:$0x1] %v14_v0 }
   0x3   :  { %16 = vsyncpa [#allocation6], 0 }
   0x4   :  { %17 = vsyncpa [#allocation8], 0  ;;  %s5577_s11 = smov [#allocation5]   ;;  %s5529_s15 = scalar_lea.hbm %s7001_s4, 8192 }
   0x5   :  { %s31_s12 = sshll.u32 %s5577_s11, 4  ;;  %p5530_p0 = scmp.ne.s32.totalorder %s7001_s4, %s5529_s15  ;;  %s32_s12 = int_to_ptr.vmem [resolvable:$true] %s31_s12 }
   0x6   :  { %p5533_p1 = scmp.lt.u32.totalorder %s5529_s15, %s7001_s4 }
   0x8   :  { %p5535_p2 = pnand %p5533_p1, %p5530_p0 }
   0xa   :  { %5538 = shalt.err (!%p5535_p2)
}
   0xb   :  { %s5539_s8 = scalar_lea.vmem %s32_s12, 8192  ;;  %p5544_p4 = scmp.lt.s32.totalorder %s32_s12, %s32_s12 }
   0xc   :  { %p5540_p3 = scmp.ne.s32.totalorder %s32_s12, %s5539_s8  ;;  %p5545_p5 = scmp.lt.s32.totalorder %s5539_s8, %s5539_s8 }
   0xe   :  { %p5546_p6 = por %p5545_p5, %p5544_p4 }
  0x10   :  { %p5547_p7 = pnand %p5546_p6, %p5540_p3 }
  0x12   :  { %5550 = shalt.err (!%p5547_p7)
}
  0x13   :  { %s5578_s20 = smov 256   ;;  %s5579_s21 = smov 16  }
  0x14   :  { %37 = dma.hbm_to_vmem [thread:$0]  %s7001_s4, 8192, %s32_s12, [#allocation6], %s5578_s20, %s5578_s20, %s5579_s21  }
  0x15   :  { %s5580_s24 = smov [#allocation7]   ;;  %s5551_s28 = scalar_lea.hbm %s7002_s5, 4096 }
  0x16   :  { %s43_s25 = sshll.u32 %s5580_s24, 4  ;;  %p5552_p8 = scmp.ne.s32.totalorder %s7002_s5, %s5551_s28  ;;  %s44_s25 = int_to_ptr.vmem [resolvable:$true] %s43_s25 }
  0x17   :  { %p5555_p9 = scmp.lt.u32.totalorder %s5551_s28, %s7002_s5 }
  0x19   :  { %p5557_p10 = pnand %p5555_p9, %p5552_p8 }
  0x1b   :  { %5560 = shalt.err (!%p5557_p10)
}
  0x1c   :  { %s5561_s13 = scalar_lea.vmem %s44_s25, 4096  ;;  %p5566_p12 = scmp.lt.s32.totalorder %s44_s25, %s44_s25 }
  0x1d   :  { %p5562_p11 = scmp.ne.s32.totalorder %s44_s25, %s5561_s13  ;;  %p5567_p13 = scmp.lt.s32.totalorder %s5561_s13, %s5561_s13 }
  0x1f   :  { %p5568_p0 = por %p5567_p13, %p5566_p12 }
  0x21   :  { %p5569_p1 = pnand %p5568_p0, %p5562_p11 }
  0x23   :  { %5572 = shalt.err (!%p5569_p1)
}
  0x24   :  { %49 = dma.hbm_to_vmem [thread:$0]  %s7002_s5, 4096, %s44_s25, [#allocation8], %s5578_s20, %s5578_s20, %s5579_s21  }
  0x25   :  { %5573 = dma.done.wait [#allocation6], 8192  }
  0x26   :  { %5574 = vsyncadd [#allocation6], 4294959104 }
  0x27   :  { %5575 = dma.done.wait [#allocation8], 4096  }
  0x28   :  { %5576 = vsyncadd [#allocation8], 4294963200  ;;  %v7011_v1 = vmov 0   ;;  %v4989_v2 = vld [vmem:[%s6998_s1 + $0x4] ss:$16 sps:$4 sm:$0xff]   ;;  %v64_v11 = vld [vmem:[%s6997_s0 + $0x8] sm:$0xff]  ;;  %v85_v54 = vlaneseq }
  0x29   :  { %190 = vmatprep.mubr.bf16.mxu0 %v7011_v1  ;;  %263 = vmatprep.mubr.bf16.mxu1 %v7011_v1  ;;  %v4991_v3 = vld [vmem:[%s6998_s1 + $0xc] ss:$16 sps:$4 sm:$0xff]   ;;  %v4993_v4 = vld [vmem:[%s6998_s1] ss:$16 sps:$4 sm:$0xff]   ;;  %v4994_v5 = vld [vmem:[%s6998_s1 + $0x8] ss:$16 sps:$4 sm:$0xff]  }
  0x2a   :  { %158 = vmatprep.subr.bf16.mxu0 %v4989_v2  ;;  %231 = vmatprep.subr.bf16.mxu1 %v4991_v3  ;;  %v4995_v6 = vld [vmem:[%s6998_s1 + $0x24] ss:$16 sps:$4 sm:$0xff]   ;;  %v4997_v7 = vld [vmem:[%s6998_s1 + $0x2c] ss:$16 sps:$4 sm:$0xff]   ;;  %v4999_v8 = vld [vmem:[%s6998_s1 + $0x20] ss:$16 sps:$4 sm:$0xff]  }
  0x2b   :  { %159 = vmatpush1.bf16.msra.mxu0 %v4993_v4  ;;  %232 = vmatpush1.bf16.msra.mxu1 %v4994_v5  ;;  %v5000_v9 = vld [vmem:[%s6998_s1 + $0x28] ss:$16 sps:$4 sm:$0xff]   ;;  %v63_v10 = vld [vmem:[%s6997_s0] sm:$0xff]  ;;  %vm145_vm0 = vcmask 261120   ;;  %v5709_v16 = vld [vmem:[%s6999_s2 + $0xc] ss:$16 sps:$4 sm:$0xff]  }
  0x2c   :  { %160 = vmatprep.subr.bf16.mxu0 %v4995_v6  ;;  %233 = vmatprep.subr.bf16.mxu1 %v4997_v7  ;;  %v5694_v12 = vld [vmem:[%s6999_s2] ss:$16 sps:$4 sm:$0xff]   ;;  %v71_v13 = vpack.c.bf16 %v64_v11, %v63_v10  ;;  %v5699_v14 = vld [vmem:[%s6999_s2 + $0x4] ss:$16 sps:$4 sm:$0xff]   ;;  %v5704_v15 = vld [vmem:[%s6999_s2 + $0x8] ss:$16 sps:$4 sm:$0xff]  }
  0x2d   :  { %v5715_v17 = vld [vmem:[%s6999_s2 + $0x24] ss:$16 sps:$4 sm:$0xff]   ;;  %v5721_v18 = vld [vmem:[%s6999_s2 + $0x20] ss:$16 sps:$4 sm:$0xff]   ;;  %v5728_v19 = vld [vmem:[%s6999_s2 + $0x28] ss:$16 sps:$4 sm:$0xff]  }
  0x2e   :  { %v5733_v20 = vld [vmem:[%s6999_s2 + $0x2c] ss:$16 sps:$4 sm:$0xff]   ;;  %v65_v21 = vld [vmem:[%s6997_s0 + $0x10] sm:$0xff]  ;;  %v5767_v27 = vld [vmem:[%s6999_s2 + $0x48] ss:$16 sps:$4 sm:$0xff]   ;;  %v5955_v55 = vshrl.u32 %v85_v54, 7 }
  0x2f   :  { %161 = vmatpush1.bf16.msra.mxu0 %v4999_v8  ;;  %234 = vmatpush1.bf16.msra.mxu1 %v5000_v9  ;;  %v66_v22 = vld [vmem:[%s6997_s0 + $0x18] sm:$0xff]  ;;  %v5748_v23 = vld [vmem:[%s6999_s2 + $0x44] ss:$16 sps:$4 sm:$0xff]   ;;  %v5760_v26 = vld [vmem:[%s6999_s2 + $0x40] ss:$16 sps:$4 sm:$0xff]   ;;  %vm4558_vm1 = vcmask 7168  }
  0x30   :  { %532 = vmatprep.subr.bf16.mxu0 %v5699_v14  ;;  %573 = vmatprep.subr.bf16.mxu1 %v5709_v16  ;;  %v5755_v24 = vld [vmem:[%s6999_s2 + $0x4c] ss:$16 sps:$4 sm:$0xff]   ;;  %v72_v25 = vpack.c.bf16 %v66_v22, %v65_v21  ;;  %v5774_v28 = vld [vmem:[%s6999_s2 + $0x64] ss:$16 sps:$4 sm:$0xff]   ;;  %v5784_v30 = vld [vmem:[%s6999_s2 + $0x60] ss:$16 sps:$4 sm:$0xff]  }
  0x31   :  { %v5779_v29 = vld [vmem:[%s6999_s2 + $0x6c] ss:$16 sps:$4 sm:$0xff]   ;;  %v5791_v31 = vld [vmem:[%s6999_s2 + $0x68] ss:$16 sps:$4 sm:$0xff]   ;;  %v67_v32 = vld [vmem:[%s6997_s0 + $0x20] sm:$0xff]  ;;  %7015 = vst [vmem:[#allocation11_spill] sm:$0xff] %v5955_v55 }
  0x32   :  { %4574 = vmatmul.mubr.msk.bf16.vlgmr.msra.gmra.mrb[0].mxu0 %vm145_vm0, %v71_v13  ;;  %4578 = vmatmul.mubr.msk.bf16.vlgmr.msra.gmra.mrb[0].mxu1 %vm145_vm0, %v71_v13  ;;  %v68_v33 = vld [vmem:[%s6997_s0 + $0x28] sm:$0xff]  ;;  %v5806_v34 = vld [vmem:[%s6999_s2 + $0x84] ss:$16 sps:$4 sm:$0xff]   ;;  %v5818_v37 = vld [vmem:[%s6999_s2 + $0x80] ss:$16 sps:$4 sm:$0xff]   ;;  %v7009_v56 = vsub.s32 2, %v5955_v55 }
  0x33   :  { %533 = vmatpush1.bf16.msra.mxu0 %v5694_v12  ;;  %574 = vmatpush1.bf16.msra.mxu1 %v5704_v15  ;;  %v5811_v35 = vld [vmem:[%s6999_s2 + $0x8c] ss:$16 sps:$4 sm:$0xff]   ;;  %v73_v36 = vpack.c.bf16 %v68_v33, %v67_v32  ;;  %v5823_v38 = vld [vmem:[%s6999_s2 + $0x88] ss:$16 sps:$4 sm:$0xff]   ;;  %v5830_v39 = vld [vmem:[%s6999_s2 + $0xa4] ss:$16 sps:$4 sm:$0xff]  }
  0x34   :  { %534 = vmatprep.subr.bf16.mxu0 %v5715_v17  ;;  %575 = vmatprep.subr.bf16.mxu1 %v5733_v20  ;;  %v5837_v40 = vld [vmem:[%s6999_s2 + $0xac] ss:$16 sps:$4 sm:$0xff]   ;;  %v5842_v41 = vld [vmem:[%s6999_s2 + $0xa0] ss:$16 sps:$4 sm:$0xff]   ;;  %v5849_v42 = vld [vmem:[%s6999_s2 + $0xa8] ss:$16 sps:$4 sm:$0xff]  }
  0x35   :  { %200 = vmatprep.mubr.bf16.mxu0 %v7011_v1  ;;  %273 = vmatprep.mubr.bf16.mxu1 %v7011_v1  ;;  %v69_v43 = vld [vmem:[%s6997_s0 + $0x30] sm:$0xff]  ;;  %v70_v44 = vld [vmem:[%s6997_s0 + $0x38] sm:$0xff]  ;;  %v7007_v57 = vsub.s32 3, %v5955_v55  ;;  %v7010_v58 = vsub.s32 0, %v5955_v55  ;;  %v83_v59 = vld [vmem:[%s7000_s3] sm:$0xf] }
  0x36   :  { %v5864_v45 = vld [vmem:[%s6999_s2 + $0xc4] ss:$16 sps:$4 sm:$0xff]   ;;  %v5869_v46 = vld [vmem:[%s6999_s2 + $0xcc] ss:$16 sps:$4 sm:$0xff]   ;;  %v5876_v47 = vld [vmem:[%s6999_s2 + $0xc0] ss:$16 sps:$4 sm:$0xff]   ;;  %v74_v49 = vpack.c.bf16 %v70_v44, %v69_v43  ;;  %v5966_v61 = vrot.slane %v83_v59, %v7009_v56 }
  0x37   :  { %535 = vmatpush1.bf16.msra.mxu0 %v5721_v18  ;;  %576 = vmatpush1.bf16.msra.mxu1 %v5728_v19  ;;  %v5881_v48 = vld [vmem:[%s6999_s2 + $0xc8] ss:$16 sps:$4 sm:$0xff]   ;;  %v5886_v50 = vld [vmem:[%s6999_s2 + $0xe4] ss:$16 sps:$4 sm:$0xff]   ;;  %v5891_v51 = vld [vmem:[%s6999_s2 + $0xec] ss:$16 sps:$4 sm:$0xff]   ;;  %v5974_v0 = vrot.slane %v83_v59, %v7007_v57  ;;  %v88_v2 = vrot.slane %v83_v59, %v7010_v58 }
  0x38   :  { %536 = vmatprep.subr.bf16.mxu0 %v5748_v23  ;;  %577 = vmatprep.subr.bf16.mxu1 %v5755_v24  ;;  %v5900_v52 = vld [vmem:[%s6999_s2 + $0xe0] ss:$16 sps:$4 sm:$0xff]   ;;  %v5905_v53 = vld [vmem:[%s6999_s2 + $0xe8] ss:$16 sps:$4 sm:$0xff]   ;;  %v7008_v60 = vsub.s32 1, %v5955_v55 }
  0x3a   :  { %4575 = vmatmul.mubr.msk.bf16.gmra.mrb[4].mxu0 %vm145_vm0, %v72_v25  ;;  %4579 = vmatmul.mubr.msk.bf16.gmra.mrb[4].mxu1 %vm145_vm0, %v72_v25  ;;  %v92_v5 = vrot.slane %v83_v59, %v7008_v60 }
  0x3b   :  { %537 = vmatpush1.bf16.msra.mxu0 %v5760_v26  ;;  %578 = vmatpush1.bf16.msra.mxu1 %v5767_v27 }
  0x3c   :  { %538 = vmatprep.subr.bf16.mxu0 %v5774_v28  ;;  %579 = vmatprep.subr.bf16.mxu1 %v5779_v29 }
  0x3d   :  { %210 = vmatprep.mubr.bf16.mxu0 %v7011_v1  ;;  %283 = vmatprep.mubr.bf16.mxu1 %v7011_v1 }
  0x3f   :  { %539 = vmatpush1.bf16.msra.mxu0 %v5784_v30  ;;  %580 = vmatpush1.bf16.msra.mxu1 %v5791_v31 }
  0x40   :  { %540 = vmatprep.subr.bf16.mxu0 %v5806_v34  ;;  %581 = vmatprep.subr.bf16.mxu1 %v5811_v35 }
  0x42   :  { %4576 = vmatmul.mubr.msk.bf16.gmra.mrb[8].mxu0 %vm145_vm0, %v73_v36  ;;  %4580 = vmatmul.mubr.msk.bf16.gmra.mrb[8].mxu1 %vm145_vm0, %v73_v36 }
  0x43   :  { %541 = vmatpush1.bf16.msra.mxu0 %v5818_v37  ;;  %582 = vmatpush1.bf16.msra.mxu1 %v5823_v38 }
  0x44   :  { %542 = vmatprep.subr.bf16.mxu0 %v5830_v39  ;;  %583 = vmatprep.subr.bf16.mxu1 %v5837_v40 }
  0x45   :  { %220 = vmatprep.mubr.bf16.mxu0 %v7011_v1  ;;  %293 = vmatprep.mubr.bf16.mxu1 %v7011_v1 }
  0x47   :  { %543 = vmatpush1.bf16.msra.mxu0 %v5842_v41  ;;  %584 = vmatpush1.bf16.msra.mxu1 %v5849_v42 }
  0x48   :  { %544 = vmatprep.subr.bf16.mxu0 %v5864_v45  ;;  %585 = vmatprep.subr.bf16.mxu1 %v5869_v46 }
  0x4a   :  { %4577 = vmatmul.mubr.msk.bf16.gmra.mrb[12].mxu0 %vm145_vm0, %v74_v49  ;;  %4581 = vmatmul.mubr.msk.bf16.gmra.mrb[12].mxu1 %vm145_vm0, %v74_v49 }
  0x4b   :  { %545 = vmatpush1.bf16.msra.mxu0 %v5876_v47  ;;  %586 = vmatpush1.bf16.msra.mxu1 %v5881_v48 }
  0x4c   :  { %546 = vmatprep.subr.bf16.mxu0 %v5886_v50  ;;  %587 = vmatprep.subr.bf16.mxu1 %v5891_v51 }
  0x4d   :  { %564 = vmatprep.mubr.bf16.mxu0 %v7011_v1  ;;  %605 = vmatprep.mubr.bf16.mxu1 %v7011_v1 }
  0x4f   :  { %547 = vmatpush1.bf16.msra.mxu0 %v5900_v52  ;;  %588 = vmatpush1.bf16.msra.mxu1 %v5905_v53 }
  0x50   :  { %843 = vmatprep.subr.bf16.mxu0 %v5699_v14  ;;  %884 = vmatprep.subr.bf16.mxu1 %v5709_v16 }
  0x52   :  { %565 = vmatmul.mubr.bf16.vlgmr.msra.gmra.mrb[16].mxu0 %v7011_v1  ;;  %606 = vmatmul.mubr.bf16.vlgmr.msra.gmra.mrb[16].mxu1 %v7011_v1 }
  0x53   :  { %844 = vmatpush1.bf16.msra.mxu0 %v5694_v12  ;;  %885 = vmatpush1.bf16.msra.mxu1 %v5704_v15 }
  0x54   :  { %845 = vmatprep.subr.bf16.mxu0 %v5715_v17  ;;  %886 = vmatprep.subr.bf16.mxu1 %v5733_v20 }
  0x55   :  { %875 = vmatprep.mubr.bf16.mxu0 %v7011_v1  ;;  %916 = vmatprep.mubr.bf16.mxu1 %v7011_v1 }
  0x57   :  { %846 = vmatpush1.bf16.msra.mxu0 %v5721_v18  ;;  %887 = vmatpush1.bf16.msra.mxu1 %v5728_v19 }
  0x58   :  { %847 = vmatprep.subr.bf16.mxu0 %v5748_v23  ;;  %888 = vmatprep.subr.bf16.mxu1 %v5755_v24 }
  0x5b   :  { %848 = vmatpush1.bf16.msra.mxu0 %v5760_v26  ;;  %889 = vmatpush1.bf16.msra.mxu1 %v5767_v27 }
  0x5c   :  { %849 = vmatprep.subr.bf16.mxu0 %v5774_v28  ;;  %890 = vmatprep.subr.bf16.mxu1 %v5779_v29 }
  0x5f   :  { %850 = vmatpush1.bf16.msra.mxu0 %v5784_v30  ;;  %891 = vmatpush1.bf16.msra.mxu1 %v5791_v31 }
  0x60   :  { %851 = vmatprep.subr.bf16.mxu0 %v5806_v34  ;;  %892 = vmatprep.subr.bf16.mxu1 %v5811_v35 }
  0x63   :  { %852 = vmatpush1.bf16.msra.mxu0 %v5818_v37  ;;  %893 = vmatpush1.bf16.msra.mxu1 %v5823_v38 }
  0x64   :  { %853 = vmatprep.subr.bf16.mxu0 %v5830_v39  ;;  %894 = vmatprep.subr.bf16.mxu1 %v5837_v40 }
  0x67   :  { %854 = vmatpush1.bf16.msra.mxu0 %v5842_v41  ;;  %895 = vmatpush1.bf16.msra.mxu1 %v5849_v42 }
  0x68   :  { %855 = vmatprep.subr.bf16.mxu0 %v5864_v45  ;;  %896 = vmatprep.subr.bf16.mxu1 %v5869_v46 }
  0x6b   :  { %856 = vmatpush1.bf16.msra.mxu0 %v5876_v47  ;;  %897 = vmatpush1.bf16.msra.mxu1 %v5881_v48 }
  0x6c   :  { %857 = vmatprep.subr.bf16.mxu0 %v5886_v50  ;;  %898 = vmatprep.subr.bf16.mxu1 %v5891_v51 }
  0x6f   :  { %858 = vmatpush1.bf16.msra.mxu0 %v5900_v52  ;;  %899 = vmatpush1.bf16.msra.mxu1 %v5905_v53 }
  0x70   :  { %1155 = vmatprep.subr.bf16.mxu0 %v5699_v14  ;;  %1196 = vmatprep.subr.bf16.mxu1 %v5709_v16 }
 0x105   :  { %v5968_v62 = vpop.f32.mrb[0].mxu0  ;;  %v5970_v63 = vpop.f32.mrb[0].mxu1 }
 0x106   :  { %v194_v3 = vpop.f32.mrb[1].mxu0  ;;  %v267_v4 = vpop.f32.mrb[1].mxu1 }
 0x107   :  { %v196_v6 = vpop.f32.mrb[2].mxu0  ;;  %v269_v7 = vpop.f32.mrb[2].mxu1 }
 0x108   :  { %v5980_v8 = vadd.f32 %v196_v6, %v88_v2  ;;  %v198_v9 = vpop.f32.mrb[3].mxu0  ;;  %v5983_v10 = vadd.f32 %v269_v7, %v5966_v61  ;;  %v271_v11 = vpop.f32.mrb[3].mxu1 }
 0x109   :  { %v5985_v13 = vadd.f32 %v198_v9, %v92_v5  ;;  %v5988_v21 = vadd.f32 %v271_v11, %v5974_v0 }
 0x10d   :  { %v202_v22 = vpop.f32.mrb[4].mxu0  ;;  %v275_v25 = vpop.f32.mrb[4].mxu1 }
 0x10e   :  { %v5990_v32 = vadd.f32 %v202_v22, %v88_v2  ;;  %v204_v33 = vpop.f32.mrb[5].mxu0  ;;  %v5993_v36 = vadd.f32 %v275_v25, %v5966_v61  ;;  %v277_v43 = vpop.f32.mrb[5].mxu1 }
 0x10f   :  { %v5995_v44 = vadd.f32 %v204_v33, %v92_v5  ;;  %v206_v49 = vpop.f32.mrb[6].mxu0  ;;  %v5998_v54 = vadd.f32 %v277_v43, %v5974_v0  ;;  %v279_v59 = vpop.f32.mrb[6].mxu1 }
 0x110   :  { %v6000_v6 = vadd.f32 %v206_v49, %v88_v2  ;;  %v208_v7 = vpop.f32.mrb[7].mxu0  ;;  %v6003_v9 = vadd.f32 %v279_v59, %v5966_v61  ;;  %v281_v11 = vpop.f32.mrb[7].mxu1 }
 0x111   :  { %7016 = vst [vmem:[#allocation12_spill] sm:$0xff] %v5998_v54  ;;  %v6005_v22 = vadd.f32 %v208_v7, %v92_v5  ;;  %v6008_v25 = vadd.f32 %v281_v11, %v5974_v0 }
 0x112   :  { %7017 = vst [vmem:[#allocation13_spill] sm:$0xff] %v6000_v6  ;;  %7018 = vst [vmem:[#allocation14_spill] sm:$0xff] %v6003_v9 }
 0x113   :  { %7019 = vst [vmem:[#allocation15_spill] sm:$0xff] %v6005_v22  ;;  %7020 = vst [vmem:[#allocation16_spill] sm:$0xff] %v6008_v25 }
 0x115   :  { %v212_v57 = vpop.f32.mrb[8].mxu0  ;;  %v285_v33 = vpop.f32.mrb[8].mxu1 }
 0x116   :  { %v6010_v60 = vadd.f32 %v212_v57, %v88_v2  ;;  %v214_v56 = vpop.f32.mrb[9].mxu0  ;;  %v6013_v43 = vadd.f32 %v285_v33, %v5966_v61  ;;  %v287_v49 = vpop.f32.mrb[9].mxu1 }
 0x117   :  { %v6015_v58 = vadd.f32 %v214_v56, %v92_v5  ;;  %v216_v1 = vpop.f32.mrb[10].mxu0  ;;  %v6018_v59 = vadd.f32 %v287_v49, %v5974_v0  ;;  %v289_v7 = vpop.f32.mrb[10].mxu1 }
 0x118   :  { %7021 = vst [vmem:[#allocation17_spill] sm:$0xff] %v6010_v60  ;;  %7022 = vst [vmem:[#allocation18_spill] sm:$0xff] %v6013_v43  ;;  %v6020_v55 = vadd.f32 %v216_v1, %v88_v2  ;;  %v218_v11 = vpop.f32.mrb[11].mxu0  ;;  %v6023_v25 = vadd.f32 %v289_v7, %v5966_v61  ;;  %v291_v57 = vpop.f32.mrb[11].mxu1 }
 0x119   :  { %7023 = vst [vmem:[#allocation19_spill] sm:$0xff] %v6015_v58  ;;  %7024 = vst [vmem:[#allocation20_spill] sm:$0xff] %v6018_v59  ;;  %v6025_v60 = vadd.f32 %v218_v11, %v92_v5  ;;  %v6028_v33 = vadd.f32 %v291_v57, %v5974_v0 }
 0x11a   :  { %7025 = vst [vmem:[#allocation21_spill] sm:$0xff] %v6020_v55  ;;  %7026 = vst [vmem:[#allocation22_spill] sm:$0xff] %v6023_v25 }
 0x11b   :  { %7027 = vst [vmem:[#allocation23_spill] sm:$0xff] %v6025_v60  ;;  %7028 = vst [vmem:[#allocation24_spill] sm:$0xff] %v6028_v33 }
 0x11d   :  { %v222_v43 = vpop.f32.mrb[12].mxu0  ;;  %v295_v56 = vpop.f32.mrb[12].mxu1 }
 0x11e   :  { %v6030_v58 = vadd.f32 %v222_v43, %v88_v2  ;;  %v224_v22 = vpop.f32.mrb[13].mxu0  ;;  %v6033_v49 = vadd.f32 %v295_v56, %v5966_v61  ;;  %v297_v1 = vpop.f32.mrb[13].mxu1 }
 0x11f   :  { %v6035_v55 = vadd.f32 %v224_v22, %v92_v5  ;;  %v226_v59 = vpop.f32.mrb[14].mxu0  ;;  %v6038_v7 = vadd.f32 %v297_v1, %v5974_v0  ;;  %v299_v11 = vpop.f32.mrb[14].mxu1  ;;  %v193_v22 = vadd.f32 %v5968_v62, %v88_v2  ;;  %v195_v1 = vadd.f32 %v194_v3, %v92_v5 }
 0x120   :  { %7029 = vst [vmem:[#allocation25_spill] sm:$0xff] %v6030_v58  ;;  %7030 = vst [vmem:[#allocation26_spill] sm:$0xff] %v6033_v49  ;;  %v6040_v60 = vadd.f32 %v226_v59, %v88_v2  ;;  %v228_v57 = vpop.f32.mrb[15].mxu0  ;;  %v6043_v33 = vadd.f32 %v299_v11, %v5966_v61  ;;  %v301_v43 = vpop.f32.mrb[15].mxu1 }
 0x121   :  { %7031 = vst [vmem:[#allocation27_spill] sm:$0xff] %v6035_v55  ;;  %7032 = vst [vmem:[#allocation28_spill] sm:$0xff] %v6038_v7  ;;  %v6045_v58 = vadd.f32 %v228_v57, %v92_v5  ;;  %v6048_v56 = vadd.f32 %v301_v43, %v5974_v0  ;;  %v266_v55 = vadd.f32 %v5970_v63, %v5966_v61 }
 0x122   :  { %7033 = vst [vmem:[#allocation29_spill] sm:$0xff] %v6040_v60  ;;  %7034 = vst [vmem:[#allocation30_spill] sm:$0xff] %v6043_v33  ;;  %v268_v7 = vadd.f32 %v267_v4, %v5974_v0 }
 0x123   :  { %7035 = vst [vmem:[#allocation31_spill] sm:$0xff] %v6045_v58  ;;  %7036 = vst [vmem:[#allocation32_spill] sm:$0xff] %v6048_v56 }
 0x125   :  { %v566_v59 = vpop.f32.mrb[16].mxu0  ;;  %v607_v60 = vpop.f32.mrb[16].mxu1 }
 0x126   :  { %v614_v49 = vadd.f32 %v566_v59, %v193_v22  ;;  %v616_v25 = vadd.f32 %v607_v60, %v266_v55  ;;  %v568_v11 = vpop.f32.mrb[17].mxu0  ;;  %v609_v33 = vpop.f32.mrb[17].mxu1 }
 0x127   :  { %v615_v9 = vadd.f32 %v568_v11, %v195_v1  ;;  %v617_v57 = vadd.f32 %v609_v33, %v268_v7  ;;  %v570_v58 = vpop.f32.mrb[18].mxu0  ;;  %v611_v6 = vpop.f32.mrb[18].mxu1 }
 0x128   :  { %v4614_v43 = vmul.f32 -1.442695, %v614_v49  ;;  %v571_v56 = vpop.f32.mrb[19].mxu0  ;;  %v612_v54 = vpop.f32.mrb[19].mxu1  ;;  %v4616_v61 = vmul.f32 -1.442695, %v616_v25 }
 0x129   :  { %v4615_v62 = vmul.f32 -1.442695, %v615_v9  ;;  %v7037_v56 = vmov 0  }
 0x12a   :  { %5241 = vpow2.f32 %v4614_v43 }
 0x12b   :  { %5243 = vpow2.f32 %v4615_v62 }
 0x12c   :  { %5245 = vtanh.f32 %v617_v57 }
 0x12d   :  { %5247 = vpow2.f32 %v4616_v61 }
 0x134   :  { %v5242_v63 = vpop.eup %5241 }
 0x135   :  { %v627_v2 = vadd.f32 1.0, %v5242_v63  ;;  %v5244_v0 = vpop.eup %5243 }
 0x136   :  { %v628_v55 = vadd.f32 1.0, %v5244_v0  ;;  %v5246_v60 = vpop.eup %5245 }
 0x137   :  { %5249 = vrcp.f32 %v627_v2  ;;  %v5248_v3 = vpop.eup %5247 }
 0x138   :  { %5251 = vrcp.f32 %v628_v55  ;;  %v629_v6 = vadd.f32 1.0, %v5248_v3 }
 0x13a   :  { %5253 = vrcp.f32 %v629_v6 }
 0x141   :  { %v5250_v4 = vpop.eup %5249 }
 0x142   :  { %v638_v58 = vmul.f32 %v5250_v4, %v5246_v60  ;;  %v5252_v5 = vpop.eup %5251 }
 0x143   :  { %v637_v33 = vmul.f32 0.0, %v5252_v5 }
 0x144   :  { %v5254_v9 = vpop.eup %5253 }
 0x145   :  { %v6054_v54 = vadd.f32 %v638_v58, %v637_v33 }
 0x147   :  { %5255 = vtanh.f32 %v6054_v54 }
 0x151   :  { %v5256_v25 = vpop.eup %5255 }
 0x152   :  { %v6057_v49 = vmul.f32 %v5256_v25, %v5254_v9 }
 0x154   :  { %v650_v7 = vpack.c.bf16 %v6057_v49, %v6057_v49 }
 0x156   :  { %876 = vmatmul.mubr.bf16.vlgmr.msra.gmra.mrb[20].mxu0 %v650_v7  ;;  %917 = vmatmul.mubr.bf16.vlgmr.msra.gmra.mrb[20].mxu1 %v650_v7 }
 0x157   :  { %1156 = vmatpush1.bf16.msra.mxu0 %v5694_v12  ;;  %1197 = vmatpush1.bf16.msra.mxu1 %v5704_v15 }
 0x158   :  { %1157 = vmatprep.subr.bf16.mxu0 %v5715_v17  ;;  %1198 = vmatprep.subr.bf16.mxu1 %v5733_v20 }
 0x159   :  { %1187 = vmatprep.mubr.bf16.mxu0 %v7037_v56  ;;  %1228 = vmatprep.mubr.bf16.mxu1 %v7037_v56 }
 0x15b   :  { %1158 = vmatpush1.bf16.msra.mxu0 %v5721_v18  ;;  %1199 = vmatpush1.bf16.msra.mxu1 %v5728_v19 }
 0x15c   :  { %1159 = vmatprep.subr.bf16.mxu0 %v5748_v23  ;;  %1200 = vmatprep.subr.bf16.mxu1 %v5755_v24 }
 0x15f   :  { %1160 = vmatpush1.bf16.msra.mxu0 %v5760_v26  ;;  %1201 = vmatpush1.bf16.msra.mxu1 %v5767_v27 }
 0x160   :  { %1161 = vmatprep.subr.bf16.mxu0 %v5774_v28  ;;  %1202 = vmatprep.subr.bf16.mxu1 %v5779_v29 }
 0x163   :  { %1162 = vmatpush1.bf16.msra.mxu0 %v5784_v30  ;;  %1203 = vmatpush1.bf16.msra.mxu1 %v5791_v31 }
 0x164   :  { %1163 = vmatprep.subr.bf16.mxu0 %v5806_v34  ;;  %1204 = vmatprep.subr.bf16.mxu1 %v5811_v35 }
 0x167   :  { %1164 = vmatpush1.bf16.msra.mxu0 %v5818_v37  ;;  %1205 = vmatpush1.bf16.msra.mxu1 %v5823_v38 }
 0x168   :  { %1165 = vmatprep.subr.bf16.mxu0 %v5830_v39  ;;  %1206 = vmatprep.subr.bf16.mxu1 %v5837_v40 }
 0x16b   :  { %1166 = vmatpush1.bf16.msra.mxu0 %v5842_v41  ;;  %1207 = vmatpush1.bf16.msra.mxu1 %v5849_v42 }
 0x16c   :  { %1167 = vmatprep.subr.bf16.mxu0 %v5864_v45  ;;  %1208 = vmatprep.subr.bf16.mxu1 %v5869_v46 }
 0x16f   :  { %1168 = vmatpush1.bf16.msra.mxu0 %v5876_v47  ;;  %1209 = vmatpush1.bf16.msra.mxu1 %v5881_v48 }
 0x170   :  { %1169 = vmatprep.subr.bf16.mxu0 %v5886_v50  ;;  %1210 = vmatprep.subr.bf16.mxu1 %v5891_v51 }
 0x173   :  { %1170 = vmatpush1.bf16.msra.mxu0 %v5900_v52  ;;  %1211 = vmatpush1.bf16.msra.mxu1 %v5905_v53 }
 0x174   :  { %1467 = vmatprep.subr.bf16.mxu0 %v5699_v14  ;;  %1508 = vmatprep.subr.bf16.mxu1 %v5709_v16 }
 0x229   :  { %v877_v22 = vpop.f32.mrb[20].mxu0  ;;  %v918_v1 = vpop.f32.mrb[20].mxu1 }
 0x22a   :  { %v925_v59 = vadd.f32 %v877_v22, %v5980_v8  ;;  %v927_v11 = vadd.f32 %v918_v1, %v5983_v10  ;;  %v879_v57 = vpop.f32.mrb[21].mxu0  ;;  %v920_v43 = vpop.f32.mrb[21].mxu1 }
 0x22b   :  { %v926_v62 = vadd.f32 %v879_v57, %v5985_v13  ;;  %v928_v61 = vadd.f32 %v920_v43, %v5988_v21  ;;  %v881_v63 = vpop.f32.mrb[22].mxu0  ;;  %v922_v2 = vpop.f32.mrb[22].mxu1  ;;  %v6171_v57 = vld [vmem:[%s6999_s2 + $0x8] ss:$16 sps:$4 sm:$0xff]   ;;  %v6180_v43 = vld [vmem:[%s6999_s2 + $0x24] ss:$16 sps:$4 sm:$0xff]  }
 0x22c   :  { %v4649_v0 = vmul.f32 -1.442695, %v925_v59  ;;  %v882_v55 = vpop.f32.mrb[23].mxu0  ;;  %v923_v60 = vpop.f32.mrb[23].mxu1  ;;  %v4651_v16 = vmul.f32 -1.442695, %v927_v11 }
 0x22d   :  { %v4650_v14 = vmul.f32 -1.442695, %v926_v62  ;;  %v6166_v11 = vld [vmem:[%s6999_s2] ss:$16 sps:$4 sm:$0xff]   ;;  %v6185_v62 = vld [vmem:[%s6999_s2 + $0x2c] ss:$16 sps:$4 sm:$0xff]  }
 0x22e   :  { %5257 = vpow2.f32 %v4649_v0  ;;  %v6195_v63 = vld [vmem:[%s6999_s2 + $0x28] ss:$16 sps:$4 sm:$0xff]   ;;  %v6204_v2 = vld [vmem:[%s6999_s2 + $0x44] ss:$16 sps:$4 sm:$0xff]   ;;  %v6209_v0 = vld [vmem:[%s6999_s2 + $0x4c] ss:$16 sps:$4 sm:$0xff]  }
 0x22f   :  { %5259 = vpow2.f32 %v4650_v14  ;;  %v6214_v55 = vld [vmem:[%s6999_s2 + $0x40] ss:$16 sps:$4 sm:$0xff]   ;;  %v6219_v60 = vld [vmem:[%s6999_s2 + $0x48] ss:$16 sps:$4 sm:$0xff]   ;;  %v6228_v14 = vld [vmem:[%s6999_s2 + $0x64] ss:$16 sps:$4 sm:$0xff]  }
 0x230   :  { %5261 = vtanh.f32 %v928_v61  ;;  %v6190_v61 = vld [vmem:[%s6999_s2 + $0x20] ss:$16 sps:$4 sm:$0xff]  }
 0x231   :  { %5263 = vpow2.f32 %v4651_v16  ;;  %v6233_v16 = vld [vmem:[%s6999_s2 + $0x6c] ss:$16 sps:$4 sm:$0xff]  }
 0x238   :  { %v5258_v3 = vpop.eup %5257 }
 0x239   :  { %v938_v4 = vadd.f32 1.0, %v5258_v3  ;;  %v5260_v8 = vpop.eup %5259  ;;  %v6238_v3 = vld [vmem:[%s6999_s2 + $0x60] ss:$16 sps:$4 sm:$0xff]  }
 0x23a   :  { %v939_v10 = vadd.f32 1.0, %v5260_v8  ;;  %v5262_v13 = vpop.eup %5261  ;;  %v6252_v8 = vld [vmem:[%s6999_s2 + $0x84] ss:$16 sps:$4 sm:$0xff]  }
 0x23b   :  { %5265 = vrcp.f32 %v938_v4  ;;  %v5264_v58 = vpop.eup %5263  ;;  %v6243_v4 = vld [vmem:[%s6999_s2 + $0x68] ss:$16 sps:$4 sm:$0xff]  }
 0x23c   :  { %5267 = vrcp.f32 %v939_v10  ;;  %v940_v33 = vadd.f32 1.0, %v5264_v58  ;;  %v6257_v10 = vld [vmem:[%s6999_s2 + $0x8c] ss:$16 sps:$4 sm:$0xff]   ;;  %v6267_v58 = vld [vmem:[%s6999_s2 + $0x88] ss:$16 sps:$4 sm:$0xff]  }
 0x23e   :  { %5269 = vrcp.f32 %v940_v33  ;;  %v6291_v33 = vld [vmem:[%s6999_s2 + $0xac] ss:$16 sps:$4 sm:$0xff]  }
 0x245   :  { %v5266_v21 = vpop.eup %5265 }
 0x246   :  { %v949_v5 = vmul.f32 %v5266_v21, %v5262_v13  ;;  %v5268_v6 = vpop.eup %5267  ;;  %v6262_v13 = vld [vmem:[%s6999_s2 + $0x80] ss:$16 sps:$4 sm:$0xff]  }
 0x247   :  { %v948_v9 = vmul.f32 %v5268_v6, %v6054_v54  ;;  %v6161_v54 = vld [vmem:[%s6999_s2 + $0xc] ss:$16 sps:$4 sm:$0xff]   ;;  %v6276_v21 = vld [vmem:[%s6999_s2 + $0xa0] ss:$16 sps:$4 sm:$0xff]   ;;  %v6286_v6 = vld [vmem:[%s6999_s2 + $0xa8] ss:$16 sps:$4 sm:$0xff]  }
 0x248   :  { %v5270_v7 = vpop.eup %5269 }
 0x249   :  { %v6100_v25 = vadd.f32 %v949_v5, %v948_v9  ;;  %v6281_v5 = vld [vmem:[%s6999_s2 + $0xa4] ss:$16 sps:$4 sm:$0xff]  }
 0x24a   :  { %v6296_v9 = vld [vmem:[%s6999_s2 + $0xc4] ss:$16 sps:$4 sm:$0xff]  }
 0x24b   :  { %5271 = vtanh.f32 %v6100_v25 }
 0x255   :  { %v5272_v22 = vpop.eup %5271 }
 0x256   :  { %v6103_v1 = vmul.f32 %v5272_v22, %v5270_v7  ;;  %v6310_v7 = vld [vmem:[%s6999_s2 + $0xc0] ss:$16 sps:$4 sm:$0xff]   ;;  %v6315_v22 = vld [vmem:[%s6999_s2 + $0xc8] ss:$16 sps:$4 sm:$0xff]  }
 0x258   :  { %v962_v59 = vpack.c.bf16 %v6103_v1, %v6103_v1 }
 0x25a   :  { %1188 = vmatmul.mubr.bf16.vlgmr.msra.gmra.mrb[24].mxu0 %v962_v59  ;;  %1229 = vmatmul.mubr.bf16.vlgmr.msra.gmra.mrb[24].mxu1 %v962_v59  ;;  %v6322_v59 = vld [vmem:[%s6999_s2 + $0xe4] ss:$16 sps:$4 sm:$0xff]  }
 0x25b   :  { %1468 = vmatpush1.bf16.msra.mxu0 %v5694_v12  ;;  %1509 = vmatpush1.bf16.msra.mxu1 %v5704_v15 }
 0x25c   :  { %1469 = vmatprep.subr.bf16.mxu0 %v5715_v17  ;;  %1510 = vmatprep.subr.bf16.mxu1 %v5733_v20 }
 0x25d   :  { %1499 = vmatprep.mubr.bf16.mxu0 %v7037_v56  ;;  %1540 = vmatprep.mubr.bf16.mxu1 %v7037_v56 }
 0x25f   :  { %1470 = vmatpush1.bf16.msra.mxu0 %v5721_v18  ;;  %1511 = vmatpush1.bf16.msra.mxu1 %v5728_v19 }
 0x260   :  { %1471 = vmatprep.subr.bf16.mxu0 %v5748_v23  ;;  %1512 = vmatprep.subr.bf16.mxu1 %v5755_v24  ;;  %v7038_v24 = vld [vmem:[#allocation12_spill] sm:$0xff] }
 0x263   :  { %1472 = vmatpush1.bf16.msra.mxu0 %v5760_v26  ;;  %1513 = vmatpush1.bf16.msra.mxu1 %v5767_v27 }
 0x264   :  { %1473 = vmatprep.subr.bf16.mxu0 %v5774_v28  ;;  %1514 = vmatprep.subr.bf16.mxu1 %v5779_v29 }
 0x267   :  { %1474 = vmatpush1.bf16.msra.mxu0 %v5784_v30  ;;  %1515 = vmatpush1.bf16.msra.mxu1 %v5791_v31 }
 0x268   :  { %1475 = vmatprep.subr.bf16.mxu0 %v5806_v34  ;;  %1516 = vmatprep.subr.bf16.mxu1 %v5811_v35 }
 0x26b   :  { %1476 = vmatpush1.bf16.msra.mxu0 %v5818_v37  ;;  %1517 = vmatpush1.bf16.msra.mxu1 %v5823_v38 }
 0x26c   :  { %1477 = vmatprep.subr.bf16.mxu0 %v5830_v39  ;;  %1518 = vmatprep.subr.bf16.mxu1 %v5837_v40 }
 0x26f   :  { %1478 = vmatpush1.bf16.msra.mxu0 %v5842_v41  ;;  %1519 = vmatpush1.bf16.msra.mxu1 %v5849_v42 }
 0x270   :  { %1479 = vmatprep.subr.bf16.mxu0 %v5864_v45  ;;  %1520 = vmatprep.subr.bf16.mxu1 %v5869_v46 }
 0x273   :  { %1480 = vmatpush1.bf16.msra.mxu0 %v5876_v47  ;;  %1521 = vmatpush1.bf16.msra.mxu1 %v5881_v48 }
 0x274   :  { %1481 = vmatprep.subr.bf16.mxu0 %v5886_v50  ;;  %1522 = vmatprep.subr.bf16.mxu1 %v5891_v51 }
 0x277   :  { %1482 = vmatpush1.bf16.msra.mxu0 %v5900_v52  ;;  %1523 = vmatpush1.bf16.msra.mxu1 %v5905_v53 }
 0x278   :  { %1820 = vmatprep.subr.bf16.mxu1 %v6161_v54 }
 0x32d   :  { %v1189_v12 = vpop.f32.mrb[24].mxu0  ;;  %v1230_v15 = vpop.f32.mrb[24].mxu1 }
 0x32e   :  { %v1237_v17 = vadd.f32 %v1189_v12, %v5990_v32  ;;  %v1239_v18 = vadd.f32 %v1230_v15, %v5993_v36  ;;  %v1191_v19 = vpop.f32.mrb[25].mxu0  ;;  %v1232_v20 = vpop.f32.mrb[25].mxu1  ;;  %v6327_v12 = vld [vmem:[%s6999_s2 + $0xec] ss:$16 sps:$4 sm:$0xff]   ;;  %v6334_v15 = vld [vmem:[%s6999_s2 + $0xe0] ss:$16 sps:$4 sm:$0xff]  }
 0x32f   :  { %v1238_v23 = vadd.f32 %v1191_v19, %v5995_v44  ;;  %v1240_v26 = vadd.f32 %v1232_v20, %v7038_v24  ;;  %v1193_v27 = vpop.f32.mrb[26].mxu0  ;;  %v1234_v28 = vpop.f32.mrb[26].mxu1  ;;  %v6156_v44 = vld [vmem:[%s6999_s2 + $0x4] ss:$16 sps:$4 sm:$0xff]   ;;  %v7040_v24 = vld [vmem:[#allocation14_spill] sm:$0xff] }
 0x330   :  { %v4684_v29 = vmul.f32 -1.442695, %v1237_v17  ;;  %v1194_v30 = vpop.f32.mrb[27].mxu0  ;;  %v1235_v31 = vpop.f32.mrb[27].mxu1  ;;  %v4686_v35 = vmul.f32 -1.442695, %v1239_v18  ;;  %1779 = vmatprep.subr.bf16.mxu0 %v6156_v44 }
 0x331   :  { %v4685_v34 = vmul.f32 -1.442695, %v1238_v23  ;;  %v6339_v17 = vld [vmem:[%s6999_s2 + $0xe8] ss:$16 sps:$4 sm:$0xff]  }
 0x332   :  { %5273 = vpow2.f32 %v4684_v29  ;;  %v7039_v20 = vld [vmem:[#allocation13_spill] sm:$0xff]  ;;  %v7041_v29 = vld [vmem:[#allocation15_spill] sm:$0xff]  ;;  %v7042_v31 = vld [vmem:[#allocation16_spill] sm:$0xff] }
 0x333   :  { %5275 = vpow2.f32 %v4685_v34 }
 0x334   :  { %5277 = vtanh.f32 %v1240_v26 }
 0x335   :  { %5279 = vpow2.f32 %v4686_v35 }
 0x33c   :  { %v5274_v37 = vpop.eup %5273 }
 0x33d   :  { %v1250_v38 = vadd.f32 1.0, %v5274_v37  ;;  %v5276_v39 = vpop.eup %5275 }
 0x33e   :  { %v1251_v40 = vadd.f32 1.0, %v5276_v39  ;;  %v5278_v41 = vpop.eup %5277 }
 0x33f   :  { %5281 = vrcp.f32 %v1250_v38  ;;  %v5280_v42 = vpop.eup %5279 }
 0x340   :  { %5283 = vrcp.f32 %v1251_v40  ;;  %v1252_v48 = vadd.f32 1.0, %v5280_v42 }
 0x342   :  { %5285 = vrcp.f32 %v1252_v48 }
 0x349   :  { %v5282_v45 = vpop.eup %5281 }
 0x34a   :  { %v1261_v46 = vmul.f32 %v5282_v45, %v5278_v41  ;;  %v5284_v47 = vpop.eup %5283 }
 0x34b   :  { %v1260_v50 = vmul.f32 %v5284_v47, %v6100_v25  ;;  %v6302_v25 = vld [vmem:[%s6999_s2 + $0xcc] ss:$16 sps:$4 sm:$0xff]  }
 0x34c   :  { %v5286_v52 = vpop.eup %5285 }
 0x34d   :  { %v6144_v51 = vadd.f32 %v1261_v46, %v1260_v50 }
 0x34f   :  { %5287 = vtanh.f32 %v6144_v51 }
 0x359   :  { %v5288_v53 = vpop.eup %5287 }
 0x35a   :  { %v6147_v32 = vmul.f32 %v5288_v53, %v5286_v52 }
 0x35c   :  { %v1274_v36 = vpack.c.bf16 %v6147_v32, %v6147_v32 }
 0x35e   :  { %1500 = vmatmul.mubr.bf16.vlgmr.msra.gmra.mrb[28].mxu0 %v1274_v36  ;;  %1541 = vmatmul.mubr.bf16.vlgmr.msra.gmra.mrb[28].mxu1 %v1274_v36 }
 0x35f   :  { %1811 = vmatprep.mubr.bf16.mxu0 %v7037_v56  ;;  %1852 = vmatprep.mubr.bf16.mxu1 %v7037_v56 }
 0x360   :  { %1780 = vmatpush1.bf16.msra.mxu0 %v6166_v11  ;;  %1821 = vmatpush1.bf16.msra.mxu1 %v6171_v57 }
 0x361   :  { %1781 = vmatprep.subr.bf16.mxu0 %v6180_v43  ;;  %1822 = vmatprep.subr.bf16.mxu1 %v6185_v62 }
 0x364   :  { %1782 = vmatpush1.bf16.msra.mxu0 %v6190_v61  ;;  %1823 = vmatpush1.bf16.msra.mxu1 %v6195_v63 }
 0x365   :  { %1783 = vmatprep.subr.bf16.mxu0 %v6204_v2  ;;  %1824 = vmatprep.subr.bf16.mxu1 %v6209_v0 }
 0x368   :  { %1784 = vmatpush1.bf16.msra.mxu0 %v6214_v55  ;;  %1825 = vmatpush1.bf16.msra.mxu1 %v6219_v60 }
 0x369   :  { %1785 = vmatprep.subr.bf16.mxu0 %v6228_v14  ;;  %1826 = vmatprep.subr.bf16.mxu1 %v6233_v16 }
 0x36c   :  { %1786 = vmatpush1.bf16.msra.mxu0 %v6238_v3  ;;  %1827 = vmatpush1.bf16.msra.mxu1 %v6243_v4 }
 0x36d   :  { %1787 = vmatprep.subr.bf16.mxu0 %v6252_v8  ;;  %1828 = vmatprep.subr.bf16.mxu1 %v6257_v10 }
 0x370   :  { %1788 = vmatpush1.bf16.msra.mxu0 %v6262_v13  ;;  %1829 = vmatpush1.bf16.msra.mxu1 %v6267_v58 }
 0x371   :  { %1789 = vmatprep.subr.bf16.mxu0 %v6281_v5  ;;  %1830 = vmatprep.subr.bf16.mxu1 %v6291_v33 }
 0x374   :  { %1790 = vmatpush1.bf16.msra.mxu0 %v6276_v21  ;;  %1831 = vmatpush1.bf16.msra.mxu1 %v6286_v6 }
 0x375   :  { %1791 = vmatprep.subr.bf16.mxu0 %v6296_v9  ;;  %1832 = vmatprep.subr.bf16.mxu1 %v6302_v25 }
 0x378   :  { %1792 = vmatpush1.bf16.msra.mxu0 %v6310_v7  ;;  %1833 = vmatpush1.bf16.msra.mxu1 %v6315_v22 }
 0x379   :  { %1793 = vmatprep.subr.bf16.mxu0 %v6322_v59  ;;  %1834 = vmatprep.subr.bf16.mxu1 %v6327_v12 }
 0x37c   :  { %1794 = vmatpush1.bf16.msra.mxu0 %v6334_v15  ;;  %1835 = vmatpush1.bf16.msra.mxu1 %v6339_v17 }
 0x37d   :  { %2089 = vmatprep.subr.bf16.mxu0 %v6156_v44  ;;  %2130 = vmatprep.subr.bf16.mxu1 %v6161_v54 }
 0x431   :  { %v1501_v18 = vpop.f32.mrb[28].mxu0  ;;  %v1542_v19 = vpop.f32.mrb[28].mxu1 }
 0x432   :  { %v1549_v23 = vadd.f32 %v1501_v18, %v7039_v20  ;;  %v1551_v26 = vadd.f32 %v1542_v19, %v7040_v24  ;;  %v1503_v27 = vpop.f32.mrb[29].mxu0  ;;  %v1544_v28 = vpop.f32.mrb[29].mxu1 }
 0x433   :  { %v1550_v30 = vadd.f32 %v1503_v27, %v7041_v29  ;;  %v1552_v34 = vadd.f32 %v1544_v28, %v7042_v31  ;;  %v1505_v35 = vpop.f32.mrb[30].mxu0  ;;  %v1546_v37 = vpop.f32.mrb[30].mxu1 }
 0x434   :  { %v4719_v38 = vmul.f32 -1.442695, %v1549_v23  ;;  %v1506_v39 = vpop.f32.mrb[31].mxu0  ;;  %v1547_v40 = vpop.f32.mrb[31].mxu1  ;;  %v4721_v42 = vmul.f32 -1.442695, %v1551_v26 }
 0x435   :  { %v4720_v41 = vmul.f32 -1.442695, %v1550_v30  ;;  %v7043_v30 = vld [vmem:[#allocation17_spill] sm:$0xff]  ;;  %v7045_v39 = vld [vmem:[#allocation19_spill] sm:$0xff] }
 0x436   :  { %5289 = vpow2.f32 %v4719_v38 }
 0x437   :  { %5291 = vpow2.f32 %v4720_v41  ;;  %v7046_v41 = vld [vmem:[#allocation20_spill] sm:$0xff] }
 0x438   :  { %5293 = vtanh.f32 %v1552_v34  ;;  %v7044_v34 = vld [vmem:[#allocation18_spill] sm:$0xff] }
 0x439   :  { %5295 = vpow2.f32 %v4721_v42 }
 0x440   :  { %v5290_v45 = vpop.eup %5289 }
 0x441   :  { %v1562_v46 = vadd.f32 1.0, %v5290_v45  ;;  %v5292_v47 = vpop.eup %5291 }
 0x442   :  { %v1563_v48 = vadd.f32 1.0, %v5292_v47  ;;  %v5294_v50 = vpop.eup %5293 }
 0x443   :  { %5297 = vrcp.f32 %v1562_v46  ;;  %v5296_v52 = vpop.eup %5295 }
 0x444   :  { %5299 = vrcp.f32 %v1563_v48  ;;  %v1564_v19 = vadd.f32 1.0, %v5296_v52 }
 0x446   :  { %5301 = vrcp.f32 %v1564_v19 }
 0x44d   :  { %v5298_v53 = vpop.eup %5297 }
 0x44e   :  { %v1573_v36 = vmul.f32 %v5298_v53, %v5294_v50  ;;  %v5300_v18 = vpop.eup %5299 }
 0x44f   :  { %v1572_v20 = vmul.f32 %v5300_v18, %v6144_v51 }
 0x450   :  { %v5302_v24 = vpop.eup %5301 }
 0x451   :  { %v6352_v23 = vadd.f32 %v1573_v36, %v1572_v20 }
 0x453   :  { %5303 = vtanh.f32 %v6352_v23 }
 0x45d   :  { %v5304_v26 = vpop.eup %5303 }
 0x45e   :  { %v6355_v27 = vmul.f32 %v5304_v26, %v5302_v24 }
 0x460   :  { %v1586_v28 = vpack.c.bf16 %v6355_v27, %v6355_v27 }
 0x462   :  { %1812 = vmatmul.mubr.bf16.vlgmr.msra.gmra.mrb[32].mxu0 %v1586_v28  ;;  %1853 = vmatmul.mubr.bf16.vlgmr.msra.gmra.mrb[32].mxu1 %v1586_v28 }
 0x463   :  { %2090 = vmatpush1.bf16.msra.mxu0 %v6166_v11  ;;  %2131 = vmatpush1.bf16.msra.mxu1 %v6171_v57 }
 0x464   :  { %2091 = vmatprep.subr.bf16.mxu0 %v6180_v43  ;;  %2132 = vmatprep.subr.bf16.mxu1 %v6185_v62 }
 0x465   :  { %2121 = vmatprep.mubr.bf16.mxu0 %v7037_v56  ;;  %2162 = vmatprep.mubr.bf16.mxu1 %v7037_v56 }
 0x467   :  { %2092 = vmatpush1.bf16.msra.mxu0 %v6190_v61  ;;  %2133 = vmatpush1.bf16.msra.mxu1 %v6195_v63 }
 0x468   :  { %2093 = vmatprep.subr.bf16.mxu0 %v6204_v2  ;;  %2134 = vmatprep.subr.bf16.mxu1 %v6209_v0 }
 0x46b   :  { %2094 = vmatpush1.bf16.msra.mxu0 %v6214_v55  ;;  %2135 = vmatpush1.bf16.msra.mxu1 %v6219_v60 }
 0x46c   :  { %2095 = vmatprep.subr.bf16.mxu0 %v6228_v14  ;;  %2136 = vmatprep.subr.bf16.mxu1 %v6233_v16 }
 0x46f   :  { %2096 = vmatpush1.bf16.msra.mxu0 %v6238_v3  ;;  %2137 = vmatpush1.bf16.msra.mxu1 %v6243_v4 }
 0x470   :  { %2097 = vmatprep.subr.bf16.mxu0 %v6252_v8  ;;  %2138 = vmatprep.subr.bf16.mxu1 %v6257_v10 }
 0x473   :  { %2098 = vmatpush1.bf16.msra.mxu0 %v6262_v13  ;;  %2139 = vmatpush1.bf16.msra.mxu1 %v6267_v58 }
 0x474   :  { %2099 = vmatprep.subr.bf16.mxu0 %v6281_v5  ;;  %2140 = vmatprep.subr.bf16.mxu1 %v6291_v33 }
 0x477   :  { %2100 = vmatpush1.bf16.msra.mxu0 %v6276_v21  ;;  %2141 = vmatpush1.bf16.msra.mxu1 %v6286_v6 }
 0x478   :  { %2101 = vmatprep.subr.bf16.mxu0 %v6296_v9  ;;  %2142 = vmatprep.subr.bf16.mxu1 %v6302_v25 }
 0x47b   :  { %2102 = vmatpush1.bf16.msra.mxu0 %v6310_v7  ;;  %2143 = vmatpush1.bf16.msra.mxu1 %v6315_v22 }
 0x47c   :  { %2103 = vmatprep.subr.bf16.mxu0 %v6322_v59  ;;  %2144 = vmatprep.subr.bf16.mxu1 %v6327_v12 }
 0x47f   :  { %2104 = vmatpush1.bf16.msra.mxu0 %v6334_v15  ;;  %2145 = vmatpush1.bf16.msra.mxu1 %v6339_v17 }
 0x480   :  { %2399 = vmatprep.subr.bf16.mxu0 %v6156_v44  ;;  %2440 = vmatprep.subr.bf16.mxu1 %v6161_v54 }
 0x535   :  { %v1813_v51 = vpop.f32.mrb[32].mxu0  ;;  %v1854_v29 = vpop.f32.mrb[32].mxu1 }
 0x536   :  { %v1861_v31 = vadd.f32 %v1813_v51, %v7043_v30  ;;  %v1863_v35 = vadd.f32 %v1854_v29, %v7044_v34  ;;  %v1815_v37 = vpop.f32.mrb[33].mxu0  ;;  %v1856_v38 = vpop.f32.mrb[33].mxu1 }
 0x537   :  { %v1862_v40 = vadd.f32 %v1815_v37, %v7045_v39  ;;  %v1864_v42 = vadd.f32 %v1856_v38, %v7046_v41  ;;  %v1817_v45 = vpop.f32.mrb[34].mxu0  ;;  %v1858_v46 = vpop.f32.mrb[34].mxu1  ;;  %v7047_v41 = vld [vmem:[#allocation21_spill] sm:$0xff] }
 0x538   :  { %v4754_v47 = vmul.f32 -1.442695, %v1861_v31  ;;  %v1818_v48 = vpop.f32.mrb[35].mxu0  ;;  %v1859_v50 = vpop.f32.mrb[35].mxu1  ;;  %v4756_v53 = vmul.f32 -1.442695, %v1863_v35 }
 0x539   :  { %v4755_v52 = vmul.f32 -1.442695, %v1862_v40  ;;  %v7048_v45 = vld [vmem:[#allocation22_spill] sm:$0xff]  ;;  %v7049_v50 = vld [vmem:[#allocation23_spill] sm:$0xff] }
 0x53a   :  { %5305 = vpow2.f32 %v4754_v47 }
 0x53b   :  { %5307 = vpow2.f32 %v4755_v52 }
 0x53c   :  { %5309 = vtanh.f32 %v1864_v42 }
 0x53d   :  { %5311 = vpow2.f32 %v4756_v53  ;;  %v7050_v53 = vld [vmem:[#allocation24_spill] sm:$0xff] }
 0x544   :  { %v5306_v36 = vpop.eup %5305 }
 0x545   :  { %v1874_v18 = vadd.f32 1.0, %v5306_v36  ;;  %v5308_v19 = vpop.eup %5307 }
 0x546   :  { %v1875_v20 = vadd.f32 1.0, %v5308_v19  ;;  %v5310_v24 = vpop.eup %5309 }
 0x547   :  { %5313 = vrcp.f32 %v1874_v18  ;;  %v5312_v26 = vpop.eup %5311 }
 0x548   :  { %5315 = vrcp.f32 %v1875_v20  ;;  %v1876_v30 = vadd.f32 1.0, %v5312_v26 }
 0x54a   :  { %5317 = vrcp.f32 %v1876_v30 }
 0x551   :  { %v5314_v28 = vpop.eup %5313 }
 0x552   :  { %v1885_v51 = vmul.f32 %v5314_v28, %v5310_v24  ;;  %v5316_v29 = vpop.eup %5315 }
 0x553   :  { %v1884_v31 = vmul.f32 %v5316_v29, %v6352_v23 }
 0x554   :  { %v5318_v35 = vpop.eup %5317 }
 0x555   :  { %v6398_v34 = vadd.f32 %v1885_v51, %v1884_v31 }
 0x557   :  { %5319 = vtanh.f32 %v6398_v34 }
 0x561   :  { %v5320_v37 = vpop.eup %5319 }
 0x562   :  { %v6401_v38 = vmul.f32 %v5320_v37, %v5318_v35 }
 0x564   :  { %v1896_v39 = vpack.c.bf16 %v6401_v38, %v6401_v38 }
 0x566   :  { %2122 = vmatmul.mubr.bf16.vlgmr.msra.gmra.mrb[36].mxu0 %v1896_v39  ;;  %2163 = vmatmul.mubr.bf16.vlgmr.msra.gmra.mrb[36].mxu1 %v1896_v39 }
 0x567   :  { %2400 = vmatpush1.bf16.msra.mxu0 %v6166_v11  ;;  %2441 = vmatpush1.bf16.msra.mxu1 %v6171_v57 }
 0x568   :  { %2401 = vmatprep.subr.bf16.mxu0 %v6180_v43  ;;  %2442 = vmatprep.subr.bf16.mxu1 %v6185_v62 }
 0x569   :  { %2431 = vmatprep.mubr.bf16.mxu0 %v7037_v56  ;;  %2472 = vmatprep.mubr.bf16.mxu1 %v7037_v56 }
 0x56b   :  { %2402 = vmatpush1.bf16.msra.mxu0 %v6190_v61  ;;  %2443 = vmatpush1.bf16.msra.mxu1 %v6195_v63 }
 0x56c   :  { %2403 = vmatprep.subr.bf16.mxu0 %v6204_v2  ;;  %2444 = vmatprep.subr.bf16.mxu1 %v6209_v0 }
 0x56f   :  { %2404 = vmatpush1.bf16.msra.mxu0 %v6214_v55  ;;  %2445 = vmatpush1.bf16.msra.mxu1 %v6219_v60 }
 0x570   :  { %2405 = vmatprep.subr.bf16.mxu0 %v6228_v14  ;;  %2446 = vmatprep.subr.bf16.mxu1 %v6233_v16 }
 0x573   :  { %2406 = vmatpush1.bf16.msra.mxu0 %v6238_v3  ;;  %2447 = vmatpush1.bf16.msra.mxu1 %v6243_v4 }
 0x574   :  { %2407 = vmatprep.subr.bf16.mxu0 %v6252_v8  ;;  %2448 = vmatprep.subr.bf16.mxu1 %v6257_v10 }
 0x577   :  { %2408 = vmatpush1.bf16.msra.mxu0 %v6262_v13  ;;  %2449 = vmatpush1.bf16.msra.mxu1 %v6267_v58 }
 0x578   :  { %2409 = vmatprep.subr.bf16.mxu0 %v6281_v5  ;;  %2450 = vmatprep.subr.bf16.mxu1 %v6291_v33 }
 0x57b   :  { %2410 = vmatpush1.bf16.msra.mxu0 %v6276_v21  ;;  %2451 = vmatpush1.bf16.msra.mxu1 %v6286_v6 }
 0x57c   :  { %2411 = vmatprep.subr.bf16.mxu0 %v6296_v9  ;;  %2452 = vmatprep.subr.bf16.mxu1 %v6302_v25 }
 0x57f   :  { %2412 = vmatpush1.bf16.msra.mxu0 %v6310_v7  ;;  %2453 = vmatpush1.bf16.msra.mxu1 %v6315_v22 }
 0x580   :  { %2413 = vmatprep.subr.bf16.mxu0 %v6322_v59  ;;  %2454 = vmatprep.subr.bf16.mxu1 %v6327_v12 }
 0x583   :  { %2414 = vmatpush1.bf16.msra.mxu0 %v6334_v15  ;;  %2455 = vmatpush1.bf16.msra.mxu1 %v6339_v17 }
 0x584   :  { %2709 = vmatprep.subr.bf16.mxu0 %v6156_v44  ;;  %2750 = vmatprep.subr.bf16.mxu1 %v6161_v54 }
 0x639   :  { %v2123_v23 = vpop.f32.mrb[36].mxu0  ;;  %v2164_v40 = vpop.f32.mrb[36].mxu1 }
 0x63a   :  { %v2171_v42 = vadd.f32 %v2123_v23, %v7047_v41  ;;  %v2173_v46 = vadd.f32 %v2164_v40, %v7048_v45  ;;  %v2125_v47 = vpop.f32.mrb[37].mxu0  ;;  %v2166_v48 = vpop.f32.mrb[37].mxu1 }
 0x63b   :  { %v2172_v52 = vadd.f32 %v2125_v47, %v7049_v50  ;;  %v2174_v36 = vadd.f32 %v2166_v48, %v7050_v53  ;;  %v2127_v18 = vpop.f32.mrb[38].mxu0  ;;  %v2168_v19 = vpop.f32.mrb[38].mxu1 }
 0x63c   :  { %v4789_v20 = vmul.f32 -1.442695, %v2171_v42  ;;  %v2128_v24 = vpop.f32.mrb[39].mxu0  ;;  %v2169_v26 = vpop.f32.mrb[39].mxu1  ;;  %v4791_v54 = vmul.f32 -1.442695, %v2173_v46 }
 0x63d   :  { %v4790_v44 = vmul.f32 -1.442695, %v2172_v52  ;;  %v5097_v19 = vld [vmem:[#allocation5] ss:$16 sps:$4 sm:$0xff]   ;;  %v5105_v26 = vld [vmem:[#allocation5 + $0x24] ss:$16 sps:$4 sm:$0xff]  }
 0x63e   :  { %5321 = vpow2.f32 %v4789_v20  ;;  %v5100_v20 = vld [vmem:[#allocation5 + $0x8] ss:$16 sps:$4 sm:$0xff]  }
 0x63f   :  { %5323 = vpow2.f32 %v4790_v44  ;;  %v5108_v44 = vld [vmem:[#allocation5 + $0x2c] ss:$16 sps:$4 sm:$0xff]  }
 0x640   :  { %5325 = vtanh.f32 %v2174_v36 }
 0x641   :  { %5327 = vpow2.f32 %v4791_v54  ;;  %v5103_v54 = vld [vmem:[#allocation5 + $0x20] ss:$16 sps:$4 sm:$0xff]  }
 0x648   :  { %v5322_v28 = vpop.eup %5321 }
 0x649   :  { %v2184_v51 = vadd.f32 1.0, %v5322_v28  ;;  %v5324_v29 = vpop.eup %5323  ;;  %v5106_v28 = vld [vmem:[#allocation5 + $0x28] ss:$16 sps:$4 sm:$0xff]  }
 0x64a   :  { %v2185_v30 = vadd.f32 1.0, %v5324_v29  ;;  %v5326_v31 = vpop.eup %5325  ;;  %v5114_v29 = vld [vmem:[#allocation5 + $0x4c] ss:$16 sps:$4 sm:$0xff]  }
 0x64b   :  { %5329 = vrcp.f32 %v2184_v51  ;;  %v5328_v35 = vpop.eup %5327  ;;  %v5111_v51 = vld [vmem:[#allocation5 + $0x44] ss:$16 sps:$4 sm:$0xff]  }
 0x64c   :  { %5331 = vrcp.f32 %v2185_v30  ;;  %v2186_v40 = vadd.f32 1.0, %v5328_v35  ;;  %v5109_v30 = vld [vmem:[#allocation5 + $0x40] ss:$16 sps:$4 sm:$0xff]   ;;  %v5117_v35 = vld [vmem:[#allocation5 + $0x64] ss:$16 sps:$4 sm:$0xff]  }
 0x64e   :  { %5333 = vrcp.f32 %v2186_v40  ;;  %v5123_v40 = vld [vmem:[#allocation5 + $0x84] ss:$16 sps:$4 sm:$0xff]  }
 0x655   :  { %v5330_v37 = vpop.eup %5329 }
 0x656   :  { %v2195_v39 = vmul.f32 %v5330_v37, %v5326_v31  ;;  %v5332_v23 = vpop.eup %5331  ;;  %v5112_v31 = vld [vmem:[#allocation5 + $0x48] ss:$16 sps:$4 sm:$0xff]   ;;  %v5120_v37 = vld [vmem:[#allocation5 + $0x6c] ss:$16 sps:$4 sm:$0xff]  }
 0x657   :  { %v2194_v41 = vmul.f32 %v5332_v23, %v6398_v34  ;;  %v5118_v23 = vld [vmem:[#allocation5 + $0x68] ss:$16 sps:$4 sm:$0xff]  }
 0x658   :  { %v5334_v45 = vpop.eup %5333 }
 0x659   :  { %v6444_v42 = vadd.f32 %v2195_v39, %v2194_v41  ;;  %v5115_v39 = vld [vmem:[#allocation5 + $0x60] ss:$16 sps:$4 sm:$0xff]   ;;  %v5126_v41 = vld [vmem:[#allocation5 + $0x8c] ss:$16 sps:$4 sm:$0xff]  }
 0x65b   :  { %5335 = vtanh.f32 %v6444_v42 }
 0x665   :  { %v5336_v46 = vpop.eup %5335 }
 0x666   :  { %v6447_v47 = vmul.f32 %v5336_v46, %v5334_v45  ;;  %v5124_v45 = vld [vmem:[#allocation5 + $0x88] ss:$16 sps:$4 sm:$0xff]   ;;  %v5129_v46 = vld [vmem:[#allocation5 + $0xa4] ss:$16 sps:$4 sm:$0xff]  }
 0x668   :  { %v2206_v48 = vpack.c.bf16 %v6447_v47, %v6447_v47 }
 0x66a   :  { %2432 = vmatmul.mubr.bf16.vlgmr.msra.gmra.mrb[40].mxu0 %v2206_v48  ;;  %2473 = vmatmul.mubr.bf16.vlgmr.msra.gmra.mrb[40].mxu1 %v2206_v48  ;;  %v5132_v48 = vld [vmem:[#allocation5 + $0xac] ss:$16 sps:$4 sm:$0xff]  }
 0x66b   :  { %2710 = vmatpush1.bf16.msra.mxu0 %v6166_v11  ;;  %2751 = vmatpush1.bf16.msra.mxu1 %v6171_v57  ;;  %v5099_v11 = vld [vmem:[#allocation5 + $0x4] ss:$16 sps:$4 sm:$0xff]   ;;  %v5102_v57 = vld [vmem:[#allocation5 + $0xc] ss:$16 sps:$4 sm:$0xff]  }
 0x66c   :  { %2711 = vmatprep.subr.bf16.mxu0 %v6180_v43  ;;  %2752 = vmatprep.subr.bf16.mxu1 %v6185_v62 }
 0x66d   :  { %2741 = vmatprep.mubr.bf16.mxu0 %v7037_v56  ;;  %2782 = vmatprep.mubr.bf16.mxu1 %v7037_v56 }
 0x66f   :  { %2712 = vmatpush1.bf16.msra.mxu0 %v6190_v61  ;;  %2753 = vmatpush1.bf16.msra.mxu1 %v6195_v63  ;;  %v7051_v61 = vld [vmem:[#allocation25_spill] sm:$0xff] }
 0x670   :  { %2713 = vmatprep.subr.bf16.mxu0 %v6204_v2  ;;  %2754 = vmatprep.subr.bf16.mxu1 %v6209_v0  ;;  %v7052_v2 = vld [vmem:[#allocation26_spill] sm:$0xff] }
 0x673   :  { %2714 = vmatpush1.bf16.msra.mxu0 %v6214_v55  ;;  %2755 = vmatpush1.bf16.msra.mxu1 %v6219_v60 }
 0x674   :  { %2715 = vmatprep.subr.bf16.mxu0 %v6228_v14  ;;  %2756 = vmatprep.subr.bf16.mxu1 %v6233_v16  ;;  %v7053_v14 = vld [vmem:[#allocation27_spill] sm:$0xff] }
 0x677   :  { %2716 = vmatpush1.bf16.msra.mxu0 %v6238_v3  ;;  %2757 = vmatpush1.bf16.msra.mxu1 %v6243_v4  ;;  %v7054_v3 = vld [vmem:[#allocation28_spill] sm:$0xff] }
 0x678   :  { %2717 = vmatprep.subr.bf16.mxu0 %v6252_v8  ;;  %2758 = vmatprep.subr.bf16.mxu1 %v6257_v10 }
 0x67b   :  { %2718 = vmatpush1.bf16.msra.mxu0 %v6262_v13  ;;  %2759 = vmatpush1.bf16.msra.mxu1 %v6267_v58 }
 0x67c   :  { %2719 = vmatprep.subr.bf16.mxu0 %v6281_v5  ;;  %2760 = vmatprep.subr.bf16.mxu1 %v6291_v33 }
 0x67f   :  { %2720 = vmatpush1.bf16.msra.mxu0 %v6276_v21  ;;  %2761 = vmatpush1.bf16.msra.mxu1 %v6286_v6 }
 0x680   :  { %2721 = vmatprep.subr.bf16.mxu0 %v6296_v9  ;;  %2762 = vmatprep.subr.bf16.mxu1 %v6302_v25 }
 0x683   :  { %2722 = vmatpush1.bf16.msra.mxu0 %v6310_v7  ;;  %2763 = vmatpush1.bf16.msra.mxu1 %v6315_v22 }
 0x684   :  { %2723 = vmatprep.subr.bf16.mxu0 %v6322_v59  ;;  %2764 = vmatprep.subr.bf16.mxu1 %v6327_v12 }
 0x687   :  { %2724 = vmatpush1.bf16.msra.mxu0 %v6334_v15  ;;  %2765 = vmatpush1.bf16.msra.mxu1 %v6339_v17 }
 0x688   :  { %3251 = vmatprep.subr.bf16.mxu0 %v5099_v11  ;;  %3324 = vmatprep.subr.bf16.mxu1 %v5102_v57  ;;  %v5127_v11 = vld [vmem:[#allocation5 + $0xa0] ss:$16 sps:$4 sm:$0xff]   ;;  %v5130_v57 = vld [vmem:[#allocation5 + $0xa8] ss:$16 sps:$4 sm:$0xff]  }
 0x73d   :  { %v2433_v43 = vpop.f32.mrb[40].mxu0  ;;  %v2474_v62 = vpop.f32.mrb[40].mxu1 }
 0x73e   :  { %v2481_v63 = vadd.f32 %v2433_v43, %v7051_v61  ;;  %v2483_v0 = vadd.f32 %v2474_v62, %v7052_v2  ;;  %v2435_v55 = vpop.f32.mrb[41].mxu0  ;;  %v2476_v60 = vpop.f32.mrb[41].mxu1  ;;  %v5135_v43 = vld [vmem:[#allocation5 + $0xc4] ss:$16 sps:$4 sm:$0xff]   ;;  %v5138_v62 = vld [vmem:[#allocation5 + $0xcc] ss:$16 sps:$4 sm:$0xff]  }
 0x73f   :  { %v2482_v16 = vadd.f32 %v2435_v55, %v7053_v14  ;;  %v2484_v4 = vadd.f32 %v2476_v60, %v7054_v3  ;;  %v2437_v8 = vpop.f32.mrb[42].mxu0  ;;  %v2478_v10 = vpop.f32.mrb[42].mxu1  ;;  %v5133_v61 = vld [vmem:[#allocation5 + $0xc0] ss:$16 sps:$4 sm:$0xff]   ;;  %v5141_v2 = vld [vmem:[#allocation5 + $0xe4] ss:$16 sps:$4 sm:$0xff]  }
 0x740   :  { %v4824_v13 = vmul.f32 -1.442695, %v2481_v63  ;;  %v2438_v58 = vpop.f32.mrb[43].mxu0  ;;  %v2479_v21 = vpop.f32.mrb[43].mxu1  ;;  %v4826_v6 = vmul.f32 -1.442695, %v2483_v0 }
 0x741   :  { %v4825_v5 = vmul.f32 -1.442695, %v2482_v16  ;;  %v5136_v63 = vld [vmem:[#allocation5 + $0xc8] ss:$16 sps:$4 sm:$0xff]   ;;  %v5144_v0 = vld [vmem:[#allocation5 + $0xec] ss:$16 sps:$4 sm:$0xff]  }
 0x742   :  { %5337 = vpow2.f32 %v4824_v13  ;;  %v5139_v55 = vld [vmem:[#allocation5 + $0xe0] ss:$16 sps:$4 sm:$0xff]   ;;  %v5142_v60 = vld [vmem:[#allocation5 + $0xe8] ss:$16 sps:$4 sm:$0xff]   ;;  %v5147_v14 = vld [vmem:[#allocation5 + $0x104] ss:$16 sps:$4 sm:$0xff]  }
 0x743   :  { %5339 = vpow2.f32 %v4825_v5  ;;  %v5150_v16 = vld [vmem:[#allocation5 + $0x10c] ss:$16 sps:$4 sm:$0xff]   ;;  %v5145_v3 = vld [vmem:[#allocation5 + $0x100] ss:$16 sps:$4 sm:$0xff]   ;;  %v5153_v8 = vld [vmem:[#allocation5 + $0x124] ss:$16 sps:$4 sm:$0xff]  }
 0x744   :  { %5341 = vtanh.f32 %v2484_v4  ;;  %v5148_v4 = vld [vmem:[#allocation5 + $0x108] ss:$16 sps:$4 sm:$0xff]   ;;  %v5156_v10 = vld [vmem:[#allocation5 + $0x12c] ss:$16 sps:$4 sm:$0xff]   ;;  %v5151_v13 = vld [vmem:[#allocation5 + $0x120] ss:$16 sps:$4 sm:$0xff]  }
 0x745   :  { %5343 = vpow2.f32 %v4826_v6  ;;  %v5154_v58 = vld [vmem:[#allocation5 + $0x128] ss:$16 sps:$4 sm:$0xff]   ;;  %v5159_v21 = vld [vmem:[#allocation5 + $0x144] ss:$16 sps:$4 sm:$0xff]   ;;  %v5162_v5 = vld [vmem:[#allocation5 + $0x14c] ss:$16 sps:$4 sm:$0xff]  }
 0x746   :  { %v5157_v6 = vld [vmem:[#allocation5 + $0x140] ss:$16 sps:$4 sm:$0xff]  }
 0x74c   :  { %v5338_v33 = vpop.eup %5337 }
 0x74d   :  { %v2494_v9 = vadd.f32 1.0, %v5338_v33  ;;  %v5340_v25 = vpop.eup %5339  ;;  %v5160_v33 = vld [vmem:[#allocation5 + $0x148] ss:$16 sps:$4 sm:$0xff]  }
 0x74e   :  { %v2495_v7 = vadd.f32 1.0, %v5340_v25  ;;  %v5342_v22 = vpop.eup %5341  ;;  %v5168_v25 = vld [vmem:[#allocation5 + $0x16c] ss:$16 sps:$4 sm:$0xff]  }
 0x74f   :  { %5345 = vrcp.f32 %v2494_v9  ;;  %v5344_v59 = vpop.eup %5343  ;;  %v5165_v9 = vld [vmem:[#allocation5 + $0x164] ss:$16 sps:$4 sm:$0xff]  }
 0x750   :  { %5347 = vrcp.f32 %v2495_v7  ;;  %v2496_v34 = vadd.f32 1.0, %v5344_v59  ;;  %v5163_v7 = vld [vmem:[#allocation5 + $0x160] ss:$16 sps:$4 sm:$0xff]   ;;  %v5171_v59 = vld [vmem:[#allocation5 + $0x184] ss:$16 sps:$4 sm:$0xff]  }
 0x752   :  { %5349 = vrcp.f32 %v2496_v34  ;;  %v5177_v34 = vld [vmem:[#allocation5 + $0x1a4] ss:$16 sps:$4 sm:$0xff]  }
 0x759   :  { %v5346_v12 = vpop.eup %5345 }
 0x75a   :  { %v2505_v15 = vmul.f32 %v5346_v12, %v5342_v22  ;;  %v5348_v17 = vpop.eup %5347  ;;  %v5166_v22 = vld [vmem:[#allocation5 + $0x168] ss:$16 sps:$4 sm:$0xff]   ;;  %v5174_v12 = vld [vmem:[#allocation5 + $0x18c] ss:$16 sps:$4 sm:$0xff]  }
 0x75b   :  { %v2504_v50 = vmul.f32 %v5348_v17, %v6444_v42  ;;  %v5121_v42 = vld [vmem:[#allocation5 + $0x80] ss:$16 sps:$4 sm:$0xff]   ;;  %v5172_v17 = vld [vmem:[#allocation5 + $0x188] ss:$16 sps:$4 sm:$0xff]  }
 0x75c   :  { %v5350_v53 = vpop.eup %5349 }
 0x75d   :  { %v6488_v52 = vadd.f32 %v2505_v15, %v2504_v50  ;;  %v5169_v15 = vld [vmem:[#allocation5 + $0x180] ss:$16 sps:$4 sm:$0xff]  }
 0x75e   :  { %v5175_v50 = vld [vmem:[#allocation5 + $0x1a0] ss:$16 sps:$4 sm:$0xff]  }
 0x75f   :  { %5351 = vtanh.f32 %v6488_v52 }
 0x769   :  { %v5352_v36 = vpop.eup %5351 }
 0x76a   :  { %v6491_v18 = vmul.f32 %v5352_v36, %v5350_v53  ;;  %v5178_v53 = vld [vmem:[#allocation5 + $0x1a8] ss:$16 sps:$4 sm:$0xff]   ;;  %v5180_v36 = vld [vmem:[#allocation5 + $0x1ac] ss:$16 sps:$4 sm:$0xff]  }
 0x76c   :  { %v2516_v24 = vpack.c.bf16 %v6491_v18, %v6491_v18 }
 0x76e   :  { %2742 = vmatmul.mubr.bf16.vlgmr.msra.gmra.mrb[44].mxu0 %v2516_v24  ;;  %2783 = vmatmul.mubr.bf16.vlgmr.msra.gmra.mrb[44].mxu1 %v2516_v24  ;;  %v5181_v24 = vld [vmem:[#allocation5 + $0x1c0] ss:$16 sps:$4 sm:$0xff]  }
 0x76f   :  { %3252 = vmatpush1.bf16.msra.mxu0 %v5097_v19  ;;  %3325 = vmatpush1.bf16.msra.mxu1 %v5100_v20  ;;  %v5183_v19 = vld [vmem:[#allocation5 + $0x1c4] ss:$16 sps:$4 sm:$0xff]   ;;  %v5186_v20 = vld [vmem:[#allocation5 + $0x1cc] ss:$16 sps:$4 sm:$0xff]  }
 0x770   :  { %3253 = vmatprep.subr.bf16.mxu0 %v5105_v26  ;;  %3326 = vmatprep.subr.bf16.mxu1 %v5108_v44  ;;  %v5184_v26 = vld [vmem:[#allocation5 + $0x1c8] ss:$16 sps:$4 sm:$0xff]   ;;  %v5189_v44 = vld [vmem:[#allocation5 + $0x1e4] ss:$16 sps:$4 sm:$0xff]  }
 0x773   :  { %3254 = vmatpush1.bf16.msra.mxu0 %v5103_v54  ;;  %3327 = vmatpush1.bf16.msra.mxu1 %v5106_v28  ;;  %v5192_v54 = vld [vmem:[#allocation5 + $0x1ec] ss:$16 sps:$4 sm:$0xff]   ;;  %v5187_v28 = vld [vmem:[#allocation5 + $0x1e0] ss:$16 sps:$4 sm:$0xff]  }
 0x774   :  { %3255 = vmatprep.subr.bf16.mxu0 %v5111_v51  ;;  %3328 = vmatprep.subr.bf16.mxu1 %v5114_v29  ;;  %v5190_v51 = vld [vmem:[#allocation5 + $0x1e8] ss:$16 sps:$4 sm:$0xff]   ;;  %v6495_v29 = vld [vmem:[#allocation7 + $0x4] ss:$16 sps:$4 sm:$0xff]  }
 0x777   :  { %3256 = vmatpush1.bf16.msra.mxu0 %v5109_v30  ;;  %3329 = vmatpush1.bf16.msra.mxu1 %v5112_v31  ;;  %v6497_v30 = vld [vmem:[#allocation7 + $0xc] ss:$16 sps:$4 sm:$0xff]  }
 0x778   :  { %3257 = vmatprep.subr.bf16.mxu0 %v5117_v35  ;;  %3330 = vmatprep.subr.bf16.mxu1 %v5120_v37  ;;  %v7055_v37 = vld [vmem:[#allocation29_spill] sm:$0xff] }
 0x77b   :  { %3258 = vmatpush1.bf16.msra.mxu0 %v5115_v39  ;;  %3331 = vmatpush1.bf16.msra.mxu1 %v5118_v23  ;;  %v7056_v23 = vld [vmem:[#allocation30_spill] sm:$0xff] }
 0x77c   :  { %3259 = vmatprep.subr.bf16.mxu0 %v5123_v40  ;;  %3332 = vmatprep.subr.bf16.mxu1 %v5126_v41 }
 0x77f   :  { %3260 = vmatpush1.bf16.msra.mxu0 %v5121_v42  ;;  %3333 = vmatpush1.bf16.msra.mxu1 %v5124_v45  ;;  %v7057_v45 = vld [vmem:[#allocation31_spill] sm:$0xff] }
 0x780   :  { %3261 = vmatprep.subr.bf16.mxu0 %v5129_v46  ;;  %3334 = vmatprep.subr.bf16.mxu1 %v5132_v48  ;;  %v7058_v48 = vld [vmem:[#allocation32_spill] sm:$0xff] }
 0x783   :  { %3262 = vmatpush1.bf16.msra.mxu0 %v5127_v11  ;;  %3335 = vmatpush1.bf16.msra.mxu1 %v5130_v57 }
 0x784   :  { %3263 = vmatprep.subr.bf16.mxu0 %v5135_v43  ;;  %3336 = vmatprep.subr.bf16.mxu1 %v5138_v62 }
 0x787   :  { %3264 = vmatpush1.bf16.msra.mxu0 %v5133_v61  ;;  %3337 = vmatpush1.bf16.msra.mxu1 %v5136_v63 }
 0x788   :  { %3265 = vmatprep.subr.bf16.mxu0 %v5141_v2  ;;  %3338 = vmatprep.subr.bf16.mxu1 %v5144_v0 }
 0x78b   :  { %3266 = vmatpush1.bf16.msra.mxu0 %v5139_v55  ;;  %3339 = vmatpush1.bf16.msra.mxu1 %v5142_v60 }
 0x78c   :  { %3267 = vmatprep.subr.bf16.mxu0 %v5147_v14  ;;  %3340 = vmatprep.subr.bf16.mxu1 %v5150_v16 }
 0x78f   :  { %3268 = vmatpush1.bf16.msra.mxu0 %v5145_v3  ;;  %3341 = vmatpush1.bf16.msra.mxu1 %v5148_v4 }
 0x790   :  { %3269 = vmatprep.subr.bf16.mxu0 %v5153_v8  ;;  %3342 = vmatprep.subr.bf16.mxu1 %v5156_v10 }
 0x793   :  { %3270 = vmatpush1.bf16.msra.mxu0 %v5151_v13  ;;  %3343 = vmatpush1.bf16.msra.mxu1 %v5154_v58 }
 0x794   :  { %3271 = vmatprep.subr.bf16.mxu0 %v5159_v21  ;;  %3344 = vmatprep.subr.bf16.mxu1 %v5162_v5 }
 0x797   :  { %3272 = vmatpush1.bf16.msra.mxu0 %v5157_v6  ;;  %3345 = vmatpush1.bf16.msra.mxu1 %v5160_v33 }
 0x798   :  { %3273 = vmatprep.subr.bf16.mxu0 %v5165_v9  ;;  %3346 = vmatprep.subr.bf16.mxu1 %v5168_v25 }
 0x79b   :  { %3274 = vmatpush1.bf16.msra.mxu0 %v5163_v7  ;;  %3347 = vmatpush1.bf16.msra.mxu1 %v5166_v22  ;;  %v2837_v7 = vpack.c.bf16 %v6103_v1, %v6057_v49  ;;  %v6512_v22 = vld [vmem:[#allocation7] ss:$16 sps:$4 sm:$0xff]  }
 0x79c   :  { %3275 = vmatprep.subr.bf16.mxu0 %v5171_v59  ;;  %3348 = vmatprep.subr.bf16.mxu1 %v5174_v12  ;;  %v6514_v59 = vld [vmem:[#allocation7 + $0x8] ss:$16 sps:$4 sm:$0xff]   ;;  %v6518_v12 = vld [vmem:[#allocation7 + $0x24] ss:$16 sps:$4 sm:$0xff]  }
 0x79f   :  { %3276 = vmatpush1.bf16.msra.mxu0 %v5169_v15  ;;  %3349 = vmatpush1.bf16.msra.mxu1 %v5172_v17  ;;  %v6520_v15 = vld [vmem:[#allocation7 + $0x2c] ss:$16 sps:$4 sm:$0xff]   ;;  %v6524_v17 = vld [vmem:[#allocation7 + $0x20] ss:$16 sps:$4 sm:$0xff]  }
 0x7a0   :  { %3277 = vmatprep.subr.bf16.mxu0 %v5177_v34  ;;  %3350 = vmatprep.subr.bf16.mxu1 %v5180_v36  ;;  %v6526_v34 = vld [vmem:[#allocation7 + $0x28] ss:$16 sps:$4 sm:$0xff]   ;;  %v2839_v36 = vpack.c.bf16 %v6355_v27, %v6147_v32 }
 0x7a3   :  { %3278 = vmatpush1.bf16.msra.mxu0 %v5175_v50  ;;  %3351 = vmatpush1.bf16.msra.mxu1 %v5178_v53  ;;  %v6530_v50 = vld [vmem:[#allocation7 + $0x44] ss:$16 sps:$4 sm:$0xff]   ;;  %v6532_v53 = vld [vmem:[#allocation7 + $0x4c] ss:$16 sps:$4 sm:$0xff]  }
 0x7a4   :  { %3279 = vmatprep.subr.bf16.mxu0 %v5183_v19  ;;  %3352 = vmatprep.subr.bf16.mxu1 %v5186_v20  ;;  %v6538_v19 = vld [vmem:[#allocation7 + $0x40] ss:$16 sps:$4 sm:$0xff]   ;;  %v6540_v20 = vld [vmem:[#allocation7 + $0x48] ss:$16 sps:$4 sm:$0xff]  }
 0x7a7   :  { %3280 = vmatpush1.bf16.msra.mxu0 %v5181_v24  ;;  %3353 = vmatpush1.bf16.msra.mxu1 %v5184_v26  ;;  %v2842_v24 = vpack.c.bf16 %v6147_v32, %v6355_v27  ;;  %v6546_v26 = vld [vmem:[#allocation7 + $0x64] ss:$16 sps:$4 sm:$0xff]   ;;  %v6560_v27 = vld [vmem:[#allocation7 + $0x8c] ss:$16 sps:$4 sm:$0xff]  }
 0x7a8   :  { %3281 = vmatprep.subr.bf16.mxu0 %v5189_v44  ;;  %3354 = vmatprep.subr.bf16.mxu1 %v5192_v54  ;;  %v6548_v44 = vld [vmem:[#allocation7 + $0x6c] ss:$16 sps:$4 sm:$0xff]   ;;  %v6552_v54 = vld [vmem:[#allocation7 + $0x60] ss:$16 sps:$4 sm:$0xff]   ;;  %v6558_v32 = vld [vmem:[#allocation7 + $0x84] ss:$16 sps:$4 sm:$0xff]  }
 0x7ab   :  { %3282 = vmatpush1.bf16.msra.mxu0 %v5187_v28  ;;  %3355 = vmatpush1.bf16.msra.mxu1 %v5190_v51  ;;  %v6554_v28 = vld [vmem:[#allocation7 + $0x68] ss:$16 sps:$4 sm:$0xff]   ;;  %v2841_v51 = vpack.c.bf16 %v6447_v47, %v6401_v38 }
 0x7ac   :  { %3625 = vmatprep.subr.bf16.mxu0 %v6495_v29  ;;  %3666 = vmatprep.subr.bf16.mxu1 %v6497_v30 }
 0x841   :  { %v2743_v31 = vpop.f32.mrb[44].mxu0  ;;  %v2784_v35 = vpop.f32.mrb[44].mxu1 }
 0x842   :  { %v2791_v39 = vadd.f32 %v2743_v31, %v7055_v37  ;;  %v2793_v40 = vadd.f32 %v2784_v35, %v7056_v23  ;;  %v2745_v41 = vpop.f32.mrb[45].mxu0  ;;  %v2786_v42 = vpop.f32.mrb[45].mxu1  ;;  %v6566_v31 = vld [vmem:[#allocation7 + $0x80] ss:$16 sps:$4 sm:$0xff]   ;;  %v6568_v35 = vld [vmem:[#allocation7 + $0x88] ss:$16 sps:$4 sm:$0xff]   ;;  %v2844_v37 = vpack.c.bf16 %v6057_v49, %v6103_v1 }
 0x843   :  { %v2792_v46 = vadd.f32 %v2745_v41, %v7057_v45  ;;  %v2794_v11 = vadd.f32 %v2786_v42, %v7058_v48  ;;  %v2747_v57 = vpop.f32.mrb[46].mxu0  ;;  %v2788_v43 = vpop.f32.mrb[46].mxu1  ;;  %v6576_v23 = vld [vmem:[#allocation7 + $0xac] ss:$16 sps:$4 sm:$0xff]   ;;  %v6586_v49 = vld [vmem:[#allocation7 + $0xc4] ss:$16 sps:$4 sm:$0xff]  }
 0x844   :  { %v4859_v62 = vmul.f32 -1.442695, %v2791_v39  ;;  %v2748_v61 = vpop.f32.mrb[47].mxu0  ;;  %v2789_v63 = vpop.f32.mrb[47].mxu1  ;;  %v4861_v0 = vmul.f32 -1.442695, %v2793_v40 }
 0x845   :  { %v4860_v2 = vmul.f32 -1.442695, %v2792_v46  ;;  %v6574_v39 = vld [vmem:[#allocation7 + $0xa4] ss:$16 sps:$4 sm:$0xff]   ;;  %v6588_v1 = vld [vmem:[#allocation7 + $0xcc] ss:$16 sps:$4 sm:$0xff]  }
 0x846   :  { %5353 = vpow2.f32 %v4859_v62  ;;  %v6594_v41 = vld [vmem:[#allocation7 + $0xc0] ss:$16 sps:$4 sm:$0xff]   ;;  %v6596_v42 = vld [vmem:[#allocation7 + $0xc8] ss:$16 sps:$4 sm:$0xff]   ;;  %v6600_v45 = vld [vmem:[#allocation7 + $0xe4] ss:$16 sps:$4 sm:$0xff]  }
 0x847   :  { %5355 = vpow2.f32 %v4860_v2  ;;  %v6602_v46 = vld [vmem:[#allocation7 + $0xec] ss:$16 sps:$4 sm:$0xff]   ;;  %v6610_v48 = vld [vmem:[#allocation7 + $0xe8] ss:$16 sps:$4 sm:$0xff]   ;;  %v7059_v62 = vld [vmem:[#allocation11_spill] sm:$0xff] }
 0x848   :  { %5357 = vtanh.f32 %v2794_v11  ;;  %v2909_v11 = vld [vmem:[%s7003_s6] sm:$0xf]  ;;  %v7060_v61 = vsub.s32 0, %v7059_v62  ;;  %v7061_v2 = vsub.s32 2, %v7059_v62 }
 0x849   :  { %5359 = vpow2.f32 %v4861_v0 }
 0x84a   :  { %v2914_v63 = vrot.slane %v2909_v11, %v7060_v61  ;;  %v2922_v0 = vrot.slane %v2909_v11, %v7061_v2 }
 0x850   :  { %v5354_v55 = vpop.eup %5353 }
 0x851   :  { %v2804_v60 = vadd.f32 1.0, %v5354_v55  ;;  %v5356_v14 = vpop.eup %5355 }
 0x852   :  { %v2805_v16 = vadd.f32 1.0, %v5356_v14  ;;  %v5358_v3 = vpop.eup %5357  ;;  %v7062_v14 = vsub.s32 1, %v7059_v62 }
 0x853   :  { %5361 = vrcp.f32 %v2804_v60  ;;  %v5360_v4 = vpop.eup %5359 }
 0x854   :  { %5363 = vrcp.f32 %v2805_v16  ;;  %v2806_v58 = vadd.f32 1.0, %v5360_v4  ;;  %v2918_v16 = vrot.slane %v2909_v11, %v7062_v14 }
 0x856   :  { %5365 = vrcp.f32 %v2806_v58 }
 0x85d   :  { %v5362_v8 = vpop.eup %5361 }
 0x85e   :  { %v2815_v10 = vmul.f32 %v5362_v8, %v5358_v3  ;;  %v5364_v13 = vpop.eup %5363  ;;  %v7063_v3 = vsub.s32 3, %v7059_v62 }
 0x85f   :  { %v2814_v21 = vmul.f32 %v5364_v13, %v6488_v52  ;;  %v2840_v52 = vpack.c.bf16 %v6401_v38, %v6447_v47  ;;  %v6580_v38 = vld [vmem:[#allocation7 + $0xa0] ss:$16 sps:$4 sm:$0xff]   ;;  %v6582_v47 = vld [vmem:[#allocation7 + $0xa8] ss:$16 sps:$4 sm:$0xff]  }
 0x860   :  { %v5366_v6 = vpop.eup %5365  ;;  %v2926_v4 = vrot.slane %v2909_v11, %v7063_v3 }
 0x861   :  { %v2816_v5 = vadd.f32 %v2815_v10, %v2814_v21 }
 0x863   :  { %5367 = vtanh.f32 %v2816_v5 }
 0x86d   :  { %v5368_v33 = vpop.eup %5367 }
 0x86e   :  { %v6506_v9 = vmul.f32 %v5368_v33, %v5366_v6 }
 0x870   :  { %v2838_v25 = vpack.c.bf16 %v6491_v18, %v6506_v9  ;;  %v2843_v40 = vpack.c.bf16 %v6506_v9, %v6491_v18  ;;  %v6608_v18 = vld [vmem:[#allocation7 + $0xe0] ss:$16 sps:$4 sm:$0xff]  }
 0x872   :  { %3283 = vmatprep.mubr.bf16.mxu0 %v2838_v25  ;;  %3356 = vmatprep.mubr.bf16.mxu1 %v2838_v25 }
 0x873   :  { %3284 = vmatmul.mubr.bf16.vlgmr.msra.gmra.mrb[48].mxu0 %v2837_v7  ;;  %3357 = vmatmul.mubr.bf16.vlgmr.msra.gmra.mrb[48].mxu1 %v2837_v7 }
 0x874   :  { %3293 = vmatprep.mubr.bf16.mxu0 %v2840_v52  ;;  %3366 = vmatprep.mubr.bf16.mxu1 %v2840_v52 }
 0x875   :  { %3626 = vmatpush1.bf16.msra.mxu0 %v6512_v22  ;;  %3667 = vmatpush1.bf16.msra.mxu1 %v6514_v59 }
 0x876   :  { %3627 = vmatprep.subr.bf16.mxu0 %v6518_v12  ;;  %3668 = vmatprep.subr.bf16.mxu1 %v6520_v15 }
 0x879   :  { %3628 = vmatpush1.bf16.msra.mxu0 %v6524_v17  ;;  %3669 = vmatpush1.bf16.msra.mxu1 %v6526_v34 }
 0x87a   :  { %3629 = vmatprep.subr.bf16.mxu0 %v6530_v50  ;;  %3670 = vmatprep.subr.bf16.mxu1 %v6532_v53 }
 0x87b   :  { %3294 = vmatmul.mubr.bf16.gmra.mrb[52].mxu0 %v2839_v36  ;;  %3367 = vmatmul.mubr.bf16.gmra.mrb[52].mxu1 %v2839_v36 }
 0x87c   :  { %3303 = vmatprep.mubr.bf16.mxu0 %v2842_v24  ;;  %3376 = vmatprep.mubr.bf16.mxu1 %v2842_v24 }
 0x87d   :  { %3630 = vmatpush1.bf16.msra.mxu0 %v6538_v19  ;;  %3671 = vmatpush1.bf16.msra.mxu1 %v6540_v20 }
 0x87e   :  { %3631 = vmatprep.subr.bf16.mxu0 %v6546_v26  ;;  %3672 = vmatprep.subr.bf16.mxu1 %v6548_v44 }
 0x881   :  { %3632 = vmatpush1.bf16.msra.mxu0 %v6552_v54  ;;  %3673 = vmatpush1.bf16.msra.mxu1 %v6554_v28 }
 0x882   :  { %3633 = vmatprep.subr.bf16.mxu0 %v6558_v32  ;;  %3674 = vmatprep.subr.bf16.mxu1 %v6560_v27 }
 0x883   :  { %3304 = vmatmul.mubr.bf16.gmra.mrb[56].mxu0 %v2841_v51  ;;  %3377 = vmatmul.mubr.bf16.gmra.mrb[56].mxu1 %v2841_v51 }
 0x884   :  { %3313 = vmatprep.mubr.bf16.mxu0 %v2844_v37  ;;  %3386 = vmatprep.mubr.bf16.mxu1 %v2844_v37 }
 0x885   :  { %3634 = vmatpush1.bf16.msra.mxu0 %v6566_v31  ;;  %3675 = vmatpush1.bf16.msra.mxu1 %v6568_v35 }
 0x886   :  { %3635 = vmatprep.subr.bf16.mxu0 %v6574_v39  ;;  %3676 = vmatprep.subr.bf16.mxu1 %v6576_v23 }
 0x889   :  { %3636 = vmatpush1.bf16.msra.mxu0 %v6580_v38  ;;  %3677 = vmatpush1.bf16.msra.mxu1 %v6582_v47 }
 0x88a   :  { %3637 = vmatprep.subr.bf16.mxu0 %v6586_v49  ;;  %3678 = vmatprep.subr.bf16.mxu1 %v6588_v1 }
 0x88b   :  { %3314 = vmatmul.mubr.bf16.gmra.mrb[60].mxu0 %v2843_v40  ;;  %3387 = vmatmul.mubr.bf16.gmra.mrb[60].mxu1 %v2843_v40 }
 0x88c   :  { %3657 = vmatprep.mubr.bf16.mxu0 %v7037_v56  ;;  %3698 = vmatprep.mubr.bf16.mxu1 %v7037_v56 }
 0x88d   :  { %3638 = vmatpush1.bf16.msra.mxu0 %v6594_v41  ;;  %3679 = vmatpush1.bf16.msra.mxu1 %v6596_v42 }
 0x88e   :  { %3639 = vmatprep.subr.bf16.mxu0 %v6600_v45  ;;  %3680 = vmatprep.subr.bf16.mxu1 %v6602_v46 }
 0x891   :  { %3640 = vmatpush1.bf16.msra.mxu0 %v6608_v18  ;;  %3681 = vmatpush1.bf16.msra.mxu1 %v6610_v48 }
 0x892   :  { %3740 = vmatprep.subr.bf16.mxu0 %v6495_v29  ;;  %3781 = vmatprep.subr.bf16.mxu1 %v6497_v30 }
 0x894   :  { %3658 = vmatmul.mubr.bf16.vlgmr.msra.gmra.mrb[64].mxu0 %v7037_v56  ;;  %3699 = vmatmul.mubr.bf16.vlgmr.msra.gmra.mrb[64].mxu1 %v7037_v56 }
 0x895   :  { %3741 = vmatpush1.bf16.msra.mxu0 %v6512_v22  ;;  %3782 = vmatpush1.bf16.msra.mxu1 %v6514_v59 }
 0x896   :  { %3742 = vmatprep.subr.bf16.mxu0 %v6518_v12  ;;  %3783 = vmatprep.subr.bf16.mxu1 %v6520_v15 }
 0x897   :  { %3772 = vmatprep.mubr.bf16.mxu0 %v7037_v56  ;;  %3813 = vmatprep.mubr.bf16.mxu1 %v7037_v56 }
 0x899   :  { %3743 = vmatpush1.bf16.msra.mxu0 %v6524_v17  ;;  %3784 = vmatpush1.bf16.msra.mxu1 %v6526_v34 }
 0x89a   :  { %3744 = vmatprep.subr.bf16.mxu0 %v6530_v50  ;;  %3785 = vmatprep.subr.bf16.mxu1 %v6532_v53 }
 0x89d   :  { %3745 = vmatpush1.bf16.msra.mxu0 %v6538_v19  ;;  %3786 = vmatpush1.bf16.msra.mxu1 %v6540_v20 }
 0x89e   :  { %3746 = vmatprep.subr.bf16.mxu0 %v6546_v26  ;;  %3787 = vmatprep.subr.bf16.mxu1 %v6548_v44 }
 0x8a1   :  { %3747 = vmatpush1.bf16.msra.mxu0 %v6552_v54  ;;  %3788 = vmatpush1.bf16.msra.mxu1 %v6554_v28 }
 0x8a2   :  { %3748 = vmatprep.subr.bf16.mxu0 %v6558_v32  ;;  %3789 = vmatprep.subr.bf16.mxu1 %v6560_v27 }
 0x8a5   :  { %3749 = vmatpush1.bf16.msra.mxu0 %v6566_v31  ;;  %3790 = vmatpush1.bf16.msra.mxu1 %v6568_v35 }
 0x8a6   :  { %3750 = vmatprep.subr.bf16.mxu0 %v6574_v39  ;;  %3791 = vmatprep.subr.bf16.mxu1 %v6576_v23 }
 0x8a9   :  { %3751 = vmatpush1.bf16.msra.mxu0 %v6580_v38  ;;  %3792 = vmatpush1.bf16.msra.mxu1 %v6582_v47 }
 0x8aa   :  { %3752 = vmatprep.subr.bf16.mxu0 %v6586_v49  ;;  %3793 = vmatprep.subr.bf16.mxu1 %v6588_v1 }
 0x8ad   :  { %3753 = vmatpush1.bf16.msra.mxu0 %v6594_v41  ;;  %3794 = vmatpush1.bf16.msra.mxu1 %v6596_v42 }
 0x8ae   :  { %3754 = vmatprep.subr.bf16.mxu0 %v6600_v45  ;;  %3795 = vmatprep.subr.bf16.mxu1 %v6602_v46 }
 0x8b1   :  { %3755 = vmatpush1.bf16.msra.mxu0 %v6608_v18  ;;  %3796 = vmatpush1.bf16.msra.mxu1 %v6610_v48 }
 0x8b2   :  { %3855 = vmatprep.subr.bf16.mxu0 %v6495_v29  ;;  %3896 = vmatprep.subr.bf16.mxu1 %v6497_v30 }
 0x946   :  { %v6657_v57 = vpop.f32.mrb[48].mxu0  ;;  %v6659_v43 = vpop.f32.mrb[48].mxu1 }
 0x947   :  { %v3287_v55 = vpop.f32.mrb[49].mxu0  ;;  %v3360_v60 = vpop.f32.mrb[49].mxu1 }
 0x948   :  { %v3289_v8 = vpop.f32.mrb[50].mxu0  ;;  %v3362_v10 = vpop.f32.mrb[50].mxu1 }
 0x949   :  { %v6669_v13 = vadd.f32 %v3289_v8, %v2914_v63  ;;  %v6671_v58 = vadd.f32 %v3362_v10, %v2922_v0  ;;  %v3291_v21 = vpop.f32.mrb[51].mxu0  ;;  %v3364_v5 = vpop.f32.mrb[51].mxu1 }
 0x94a   :  { %v6673_v6 = vadd.f32 %v3291_v21, %v2918_v16  ;;  %v6675_v33 = vadd.f32 %v3364_v5, %v2926_v4 }
 0x94e   :  { %v3295_v9 = vpop.f32.mrb[52].mxu0  ;;  %v3368_v25 = vpop.f32.mrb[52].mxu1 }
 0x94f   :  { %v6677_v7 = vadd.f32 %v3295_v9, %v2914_v63  ;;  %v6679_v52 = vadd.f32 %v3368_v25, %v2922_v0  ;;  %v3297_v36 = vpop.f32.mrb[53].mxu0  ;;  %v3370_v24 = vpop.f32.mrb[53].mxu1 }
 0x950   :  { %v6681_v51 = vadd.f32 %v3297_v36, %v2918_v16  ;;  %v6683_v37 = vadd.f32 %v3370_v24, %v2926_v4  ;;  %v3299_v40 = vpop.f32.mrb[54].mxu0  ;;  %v3372_v11 = vpop.f32.mrb[54].mxu1 }
 0x951   :  { %7064 = vst [vmem:[#allocation12_spill] sm:$0xff] %v6679_v52  ;;  %v6685_v62 = vadd.f32 %v3299_v40, %v2914_v63  ;;  %v6687_v61 = vadd.f32 %v3372_v11, %v2922_v0  ;;  %v3301_v2 = vpop.f32.mrb[55].mxu0  ;;  %v3374_v14 = vpop.f32.mrb[55].mxu1 }
 0x952   :  { %7065 = vst [vmem:[#allocation13_spill] sm:$0xff] %v6681_v51  ;;  %7066 = vst [vmem:[#allocation14_spill] sm:$0xff] %v6683_v37  ;;  %v6689_v3 = vadd.f32 %v3301_v2, %v2918_v16  ;;  %v6691_v8 = vadd.f32 %v3374_v14, %v2926_v4 }
 0x953   :  { %7067 = vst [vmem:[#allocation15_spill] sm:$0xff] %v6685_v62  ;;  %7068 = vst [vmem:[#allocation16_spill] sm:$0xff] %v6687_v61 }
 0x954   :  { %7069 = vst [vmem:[#allocation17_spill] sm:$0xff] %v6689_v3  ;;  %7070 = vst [vmem:[#allocation18_spill] sm:$0xff] %v6691_v8 }
 0x956   :  { %v3305_v10 = vpop.f32.mrb[56].mxu0  ;;  %v3378_v21 = vpop.f32.mrb[56].mxu1 }
 0x957   :  { %v6693_v5 = vadd.f32 %v3305_v10, %v2914_v63  ;;  %v6695_v9 = vadd.f32 %v3378_v21, %v2922_v0  ;;  %v3307_v25 = vpop.f32.mrb[57].mxu0  ;;  %v3380_v36 = vpop.f32.mrb[57].mxu1 }
 0x958   :  { %v6697_v24 = vadd.f32 %v3307_v25, %v2918_v16  ;;  %v6699_v40 = vadd.f32 %v3380_v36, %v2926_v4  ;;  %v3309_v11 = vpop.f32.mrb[58].mxu0  ;;  %v3382_v61 = vpop.f32.mrb[58].mxu1 }
 0x959   :  { %7071 = vst [vmem:[#allocation19_spill] sm:$0xff] %v6693_v5  ;;  %7072 = vst [vmem:[#allocation20_spill] sm:$0xff] %v6695_v9  ;;  %v6701_v62 = vadd.f32 %v3309_v11, %v2914_v63  ;;  %v6703_v2 = vadd.f32 %v3382_v61, %v2922_v0  ;;  %v3311_v14 = vpop.f32.mrb[59].mxu0  ;;  %v3384_v8 = vpop.f32.mrb[59].mxu1 }
 0x95a   :  { %7073 = vst [vmem:[#allocation21_spill] sm:$0xff] %v6697_v24  ;;  %7074 = vst [vmem:[#allocation22_spill] sm:$0xff] %v6699_v40  ;;  %v6705_v3 = vadd.f32 %v3311_v14, %v2918_v16  ;;  %v6707_v10 = vadd.f32 %v3384_v8, %v2926_v4 }
 0x95b   :  { %7075 = vst [vmem:[#allocation23_spill] sm:$0xff] %v6701_v62  ;;  %7076 = vst [vmem:[#allocation24_spill] sm:$0xff] %v6703_v2 }
 0x95c   :  { %7077 = vst [vmem:[#allocation25_spill] sm:$0xff] %v6705_v3  ;;  %7078 = vst [vmem:[#allocation26_spill] sm:$0xff] %v6707_v10 }
 0x95e   :  { %v3315_v21 = vpop.f32.mrb[60].mxu0  ;;  %v3388_v9 = vpop.f32.mrb[60].mxu1 }
 0x95f   :  { %v6709_v5 = vadd.f32 %v3315_v21, %v2914_v63  ;;  %v6711_v25 = vadd.f32 %v3388_v9, %v2922_v0  ;;  %v3317_v36 = vpop.f32.mrb[61].mxu0  ;;  %v3390_v40 = vpop.f32.mrb[61].mxu1  ;;  %v3286_v9 = vadd.f32 %v6657_v57, %v2914_v63 }
 0x960   :  { %v6713_v24 = vadd.f32 %v3317_v36, %v2918_v16  ;;  %v6715_v11 = vadd.f32 %v3390_v40, %v2926_v4  ;;  %v3319_v61 = vpop.f32.mrb[62].mxu0  ;;  %v3392_v2 = vpop.f32.mrb[62].mxu1  ;;  %v3288_v36 = vadd.f32 %v3287_v55, %v2918_v16 }
 0x961   :  { %7079 = vst [vmem:[#allocation27_spill] sm:$0xff] %v6709_v5  ;;  %7080 = vst [vmem:[#allocation28_spill] sm:$0xff] %v6711_v25  ;;  %v6717_v62 = vadd.f32 %v3319_v61, %v2914_v63  ;;  %v6719_v14 = vadd.f32 %v3392_v2, %v2922_v0  ;;  %v3321_v8 = vpop.f32.mrb[63].mxu0  ;;  %v3394_v10 = vpop.f32.mrb[63].mxu1  ;;  %v3359_v25 = vadd.f32 %v6659_v43, %v2922_v0 }
 0x962   :  { %7081 = vst [vmem:[#allocation29_spill] sm:$0xff] %v6713_v24  ;;  %7082 = vst [vmem:[#allocation30_spill] sm:$0xff] %v6715_v11  ;;  %v6721_v3 = vadd.f32 %v3321_v8, %v2918_v16  ;;  %v6723_v21 = vadd.f32 %v3394_v10, %v2926_v4  ;;  %v3361_v24 = vadd.f32 %v3360_v60, %v2926_v4 }
 0x963   :  { %7083 = vst [vmem:[#allocation31_spill] sm:$0xff] %v6717_v62  ;;  %7084 = vst [vmem:[#allocation32_spill] sm:$0xff] %v6719_v14 }
 0x964   :  { %7085 = vst [vmem:[#allocation11_spill] sm:$0xff] %v6721_v3  ;;  %7086 = vst [vmem:[#allocation33_spill] sm:$0xff] %v6723_v21 }
 0x967   :  { %v3659_v40 = vpop.f32.mrb[64].mxu0  ;;  %v3700_v11 = vpop.f32.mrb[64].mxu1 }
 0x968   :  { %v3707_v5 = vadd.f32 %v3659_v40, %v3286_v9  ;;  %v3709_v37 = vadd.f32 %v3700_v11, %v3359_v25  ;;  %v3661_v61 = vpop.f32.mrb[65].mxu0  ;;  %v3702_v62 = vpop.f32.mrb[65].mxu1 }
 0x969   :  { %v3708_v2 = vadd.f32 %v3661_v61, %v3288_v36  ;;  %v3710_v14 = vadd.f32 %v3702_v62, %v3361_v24  ;;  %v3663_v51 = vpop.f32.mrb[66].mxu0  ;;  %v3704_v52 = vpop.f32.mrb[66].mxu1 }
 0x96a   :  { %v4958_v8 = vmul.f32 -1.442695, %v3707_v5  ;;  %v3664_v3 = vpop.f32.mrb[67].mxu0  ;;  %v3705_v10 = vpop.f32.mrb[67].mxu1  ;;  %v4960_v57 = vmul.f32 -1.442695, %v3709_v37 }
 0x96b   :  { %v4959_v21 = vmul.f32 -1.442695, %v3708_v2 }
 0x96c   :  { %5369 = vpow2.f32 %v4958_v8 }
 0x96d   :  { %5371 = vpow2.f32 %v4959_v21 }
 0x96e   :  { %5373 = vtanh.f32 %v3710_v14 }
 0x96f   :  { %5375 = vpow2.f32 %v4960_v57 }
 0x976   :  { %v5370_v43 = vpop.eup %5369 }
 0x977   :  { %v3720_v63 = vadd.f32 1.0, %v5370_v43  ;;  %v5372_v0 = vpop.eup %5371 }
 0x978   :  { %v3721_v55 = vadd.f32 1.0, %v5372_v0  ;;  %v5374_v60 = vpop.eup %5373 }
 0x979   :  { %5377 = vrcp.f32 %v3720_v63  ;;  %v5376_v16 = vpop.eup %5375 }
 0x97a   :  { %5379 = vrcp.f32 %v3721_v55  ;;  %v3722_v62 = vadd.f32 1.0, %v5376_v16 }
 0x97c   :  { %5381 = vrcp.f32 %v3722_v62 }
 0x983   :  { %v5378_v4 = vpop.eup %5377 }
 0x984   :  { %v3731_v51 = vmul.f32 %v5378_v4, %v5374_v60  ;;  %v5380_v52 = vpop.eup %5379 }
 0x985   :  { %v3730_v3 = vmul.f32 0.0, %v5380_v52 }
 0x986   :  { %v5382_v37 = vpop.eup %5381 }
 0x987   :  { %v6727_v5 = vadd.f32 %v3731_v51, %v3730_v3 }
 0x989   :  { %5383 = vtanh.f32 %v6727_v5 }
 0x993   :  { %v5384_v24 = vpop.eup %5383 }
 0x994   :  { %v3734_v25 = vmul.f32 %v5384_v24, %v5382_v37 }
 0x996   :  { %v3739_v11 = vpack.c.bf16 %v3734_v25, %v3734_v25 }
 0x998   :  { %3773 = vmatmul.mubr.bf16.vlgmr.msra.gmra.mrb[68].mxu0 %v3739_v11  ;;  %3814 = vmatmul.mubr.bf16.vlgmr.msra.gmra.mrb[68].mxu1 %v3739_v11 }
 0x999   :  { %3856 = vmatpush1.bf16.msra.mxu0 %v6512_v22  ;;  %3897 = vmatpush1.bf16.msra.mxu1 %v6514_v59 }
 0x99a   :  { %3857 = vmatprep.subr.bf16.mxu0 %v6518_v12  ;;  %3898 = vmatprep.subr.bf16.mxu1 %v6520_v15 }
 0x99b   :  { %3887 = vmatprep.mubr.bf16.mxu0 %v7037_v56  ;;  %3928 = vmatprep.mubr.bf16.mxu1 %v7037_v56 }
 0x99d   :  { %3858 = vmatpush1.bf16.msra.mxu0 %v6524_v17  ;;  %3899 = vmatpush1.bf16.msra.mxu1 %v6526_v34 }
 0x99e   :  { %3859 = vmatprep.subr.bf16.mxu0 %v6530_v50  ;;  %3900 = vmatprep.subr.bf16.mxu1 %v6532_v53 }
 0x9a1   :  { %3860 = vmatpush1.bf16.msra.mxu0 %v6538_v19  ;;  %3901 = vmatpush1.bf16.msra.mxu1 %v6540_v20 }
 0x9a2   :  { %3861 = vmatprep.subr.bf16.mxu0 %v6546_v26  ;;  %3902 = vmatprep.subr.bf16.mxu1 %v6548_v44 }
 0x9a5   :  { %3862 = vmatpush1.bf16.msra.mxu0 %v6552_v54  ;;  %3903 = vmatpush1.bf16.msra.mxu1 %v6554_v28 }
 0x9a6   :  { %3863 = vmatprep.subr.bf16.mxu0 %v6558_v32  ;;  %3904 = vmatprep.subr.bf16.mxu1 %v6560_v27 }
 0x9a9   :  { %3864 = vmatpush1.bf16.msra.mxu0 %v6566_v31  ;;  %3905 = vmatpush1.bf16.msra.mxu1 %v6568_v35 }
 0x9aa   :  { %3865 = vmatprep.subr.bf16.mxu0 %v6574_v39  ;;  %3906 = vmatprep.subr.bf16.mxu1 %v6576_v23 }
 0x9ad   :  { %3866 = vmatpush1.bf16.msra.mxu0 %v6580_v38  ;;  %3907 = vmatpush1.bf16.msra.mxu1 %v6582_v47 }
 0x9ae   :  { %3867 = vmatprep.subr.bf16.mxu0 %v6586_v49  ;;  %3908 = vmatprep.subr.bf16.mxu1 %v6588_v1 }
 0x9b1   :  { %3868 = vmatpush1.bf16.msra.mxu0 %v6594_v41  ;;  %3909 = vmatpush1.bf16.msra.mxu1 %v6596_v42 }
 0x9b2   :  { %3869 = vmatprep.subr.bf16.mxu0 %v6600_v45  ;;  %3910 = vmatprep.subr.bf16.mxu1 %v6602_v46 }
 0x9b5   :  { %3870 = vmatpush1.bf16.msra.mxu0 %v6608_v18  ;;  %3911 = vmatpush1.bf16.msra.mxu1 %v6610_v48 }
 0x9b6   :  { %3970 = vmatprep.subr.bf16.mxu0 %v6495_v29  ;;  %4011 = vmatprep.subr.bf16.mxu1 %v6497_v30 }
 0xa6b   :  { %v3774_v14 = vpop.f32.mrb[68].mxu0  ;;  %v3815_v21 = vpop.f32.mrb[68].mxu1 }
 0xa6c   :  { %v3822_v9 = vadd.f32 %v3774_v14, %v6669_v13  ;;  %v3824_v36 = vadd.f32 %v3815_v21, %v6671_v58  ;;  %v3776_v40 = vpop.f32.mrb[69].mxu0  ;;  %v3817_v61 = vpop.f32.mrb[69].mxu1 }
 0xa6d   :  { %v3823_v2 = vadd.f32 %v3776_v40, %v6673_v6  ;;  %v3825_v8 = vadd.f32 %v3817_v61, %v6675_v33  ;;  %v3778_v10 = vpop.f32.mrb[70].mxu0  ;;  %v3819_v57 = vpop.f32.mrb[70].mxu1  ;;  %v7087_v40 = vld [vmem:[#allocation12_spill] sm:$0xff] }
 0xa6e   :  { %v4961_v43 = vmul.f32 -1.442695, %v3822_v9  ;;  %v3779_v63 = vpop.f32.mrb[71].mxu0  ;;  %v3820_v0 = vpop.f32.mrb[71].mxu1  ;;  %v4963_v60 = vmul.f32 -1.442695, %v3824_v36 }
 0xa6f   :  { %v4962_v55 = vmul.f32 -1.442695, %v3823_v2  ;;  %v7088_v10 = vld [vmem:[#allocation13_spill] sm:$0xff] }
 0xa70   :  { %5385 = vpow2.f32 %v4961_v43  ;;  %v7089_v43 = vld [vmem:[#allocation14_spill] sm:$0xff] }
 0xa71   :  { %5387 = vpow2.f32 %v4962_v55 }
 0xa72   :  { %5389 = vtanh.f32 %v3825_v8 }
 0xa73   :  { %5391 = vpow2.f32 %v4963_v60 }
 0xa7a   :  { %v5386_v16 = vpop.eup %5385 }
 0xa7b   :  { %v3835_v4 = vadd.f32 1.0, %v5386_v16  ;;  %v5388_v13 = vpop.eup %5387 }
 0xa7c   :  { %v3836_v58 = vadd.f32 1.0, %v5388_v13  ;;  %v5390_v6 = vpop.eup %5389 }
 0xa7d   :  { %5393 = vrcp.f32 %v3835_v4  ;;  %v5392_v51 = vpop.eup %5391 }
 0xa7e   :  { %5395 = vrcp.f32 %v3836_v58  ;;  %v3837_v3 = vadd.f32 1.0, %v5392_v51 }
 0xa80   :  { %5397 = vrcp.f32 %v3837_v3 }
 0xa87   :  { %v5394_v33 = vpop.eup %5393 }
 0xa88   :  { %v3846_v52 = vmul.f32 %v5394_v33, %v5390_v6  ;;  %v5396_v62 = vpop.eup %5395 }
 0xa89   :  { %v3845_v37 = vmul.f32 %v5396_v62, %v6727_v5 }
 0xa8a   :  { %v5398_v25 = vpop.eup %5397 }
 0xa8b   :  { %v6769_v24 = vadd.f32 %v3846_v52, %v3845_v37 }
 0xa8d   :  { %5399 = vtanh.f32 %v6769_v24 }
 0xa97   :  { %v5400_v11 = vpop.eup %5399 }
 0xa98   :  { %v3849_v14 = vmul.f32 %v5400_v11, %v5398_v25 }
 0xa9a   :  { %v3854_v21 = vpack.c.bf16 %v3849_v14, %v3849_v14 }
 0xa9c   :  { %3888 = vmatmul.mubr.bf16.vlgmr.msra.gmra.mrb[72].mxu0 %v3854_v21  ;;  %3929 = vmatmul.mubr.bf16.vlgmr.msra.gmra.mrb[72].mxu1 %v3854_v21 }
 0xa9d   :  { %3971 = vmatpush1.bf16.msra.mxu0 %v6512_v22  ;;  %4012 = vmatpush1.bf16.msra.mxu1 %v6514_v59 }
 0xa9e   :  { %3972 = vmatprep.subr.bf16.mxu0 %v6518_v12  ;;  %4013 = vmatprep.subr.bf16.mxu1 %v6520_v15 }
 0xa9f   :  { %4002 = vmatprep.mubr.bf16.mxu0 %v7037_v56  ;;  %4043 = vmatprep.mubr.bf16.mxu1 %v7037_v56 }
 0xaa1   :  { %3973 = vmatpush1.bf16.msra.mxu0 %v6524_v17  ;;  %4014 = vmatpush1.bf16.msra.mxu1 %v6526_v34 }
 0xaa2   :  { %3974 = vmatprep.subr.bf16.mxu0 %v6530_v50  ;;  %4015 = vmatprep.subr.bf16.mxu1 %v6532_v53 }
 0xaa5   :  { %3975 = vmatpush1.bf16.msra.mxu0 %v6538_v19  ;;  %4016 = vmatpush1.bf16.msra.mxu1 %v6540_v20 }
 0xaa6   :  { %3976 = vmatprep.subr.bf16.mxu0 %v6546_v26  ;;  %4017 = vmatprep.subr.bf16.mxu1 %v6548_v44 }
 0xaa9   :  { %3977 = vmatpush1.bf16.msra.mxu0 %v6552_v54  ;;  %4018 = vmatpush1.bf16.msra.mxu1 %v6554_v28 }
 0xaaa   :  { %3978 = vmatprep.subr.bf16.mxu0 %v6558_v32  ;;  %4019 = vmatprep.subr.bf16.mxu1 %v6560_v27 }
 0xaad   :  { %3979 = vmatpush1.bf16.msra.mxu0 %v6566_v31  ;;  %4020 = vmatpush1.bf16.msra.mxu1 %v6568_v35 }
 0xaae   :  { %3980 = vmatprep.subr.bf16.mxu0 %v6574_v39  ;;  %4021 = vmatprep.subr.bf16.mxu1 %v6576_v23 }
 0xab1   :  { %3981 = vmatpush1.bf16.msra.mxu0 %v6580_v38  ;;  %4022 = vmatpush1.bf16.msra.mxu1 %v6582_v47 }
 0xab2   :  { %3982 = vmatprep.subr.bf16.mxu0 %v6586_v49  ;;  %4023 = vmatprep.subr.bf16.mxu1 %v6588_v1 }
 0xab5   :  { %3983 = vmatpush1.bf16.msra.mxu0 %v6594_v41  ;;  %4024 = vmatpush1.bf16.msra.mxu1 %v6596_v42 }
 0xab6   :  { %3984 = vmatprep.subr.bf16.mxu0 %v6600_v45  ;;  %4025 = vmatprep.subr.bf16.mxu1 %v6602_v46 }
 0xab9   :  { %3985 = vmatpush1.bf16.msra.mxu0 %v6608_v18  ;;  %4026 = vmatpush1.bf16.msra.mxu1 %v6610_v48 }
 0xaba   :  { %4085 = vmatprep.subr.bf16.mxu0 %v6495_v29  ;;  %4126 = vmatprep.subr.bf16.mxu1 %v6497_v30 }
 0xb6f   :  { %v3889_v5 = vpop.f32.mrb[72].mxu0  ;;  %v3930_v9 = vpop.f32.mrb[72].mxu1 }
 0xb70   :  { %v3937_v36 = vadd.f32 %v3889_v5, %v6677_v7  ;;  %v3939_v61 = vadd.f32 %v3930_v9, %v7087_v40  ;;  %v3891_v2 = vpop.f32.mrb[73].mxu0  ;;  %v3932_v8 = vpop.f32.mrb[73].mxu1 }
 0xb71   :  { %v3938_v57 = vadd.f32 %v3891_v2, %v7088_v10  ;;  %v3940_v63 = vadd.f32 %v3932_v8, %v7089_v43  ;;  %v3893_v0 = vpop.f32.mrb[74].mxu0  ;;  %v3934_v55 = vpop.f32.mrb[74].mxu1  ;;  %v7090_v2 = vld [vmem:[#allocation15_spill] sm:$0xff]  ;;  %v7091_v10 = vld [vmem:[#allocation16_spill] sm:$0xff] }
 0xb72   :  { %v4964_v60 = vmul.f32 -1.442695, %v3937_v36  ;;  %v3894_v16 = vpop.f32.mrb[75].mxu0  ;;  %v3935_v4 = vpop.f32.mrb[75].mxu1  ;;  %v4966_v58 = vmul.f32 -1.442695, %v3939_v61 }
 0xb73   :  { %v4965_v13 = vmul.f32 -1.442695, %v3938_v57  ;;  %v7092_v0 = vld [vmem:[#allocation17_spill] sm:$0xff] }
 0xb74   :  { %5401 = vpow2.f32 %v4964_v60  ;;  %v7093_v60 = vld [vmem:[#allocation18_spill] sm:$0xff] }
 0xb75   :  { %5403 = vpow2.f32 %v4965_v13 }
 0xb76   :  { %5405 = vtanh.f32 %v3940_v63 }
 0xb77   :  { %5407 = vpow2.f32 %v4966_v58 }
 0xb7e   :  { %v5402_v6 = vpop.eup %5401 }
 0xb7f   :  { %v3950_v51 = vadd.f32 1.0, %v5402_v6  ;;  %v5404_v7 = vpop.eup %5403 }
 0xb80   :  { %v3951_v33 = vadd.f32 1.0, %v5404_v7  ;;  %v5406_v52 = vpop.eup %5405 }
 0xb81   :  { %5409 = vrcp.f32 %v3950_v51  ;;  %v5408_v62 = vpop.eup %5407 }
 0xb82   :  { %5411 = vrcp.f32 %v3951_v33  ;;  %v3952_v11 = vadd.f32 1.0, %v5408_v62 }
 0xb84   :  { %5413 = vrcp.f32 %v3952_v11 }
 0xb8b   :  { %v5410_v3 = vpop.eup %5409 }
 0xb8c   :  { %v3961_v37 = vmul.f32 %v5410_v3, %v5406_v52  ;;  %v5412_v25 = vpop.eup %5411 }
 0xb8d   :  { %v3960_v14 = vmul.f32 %v5412_v25, %v6769_v24 }
 0xb8e   :  { %v5414_v5 = vpop.eup %5413 }
 0xb8f   :  { %v6811_v21 = vadd.f32 %v3961_v37, %v3960_v14 }
 0xb91   :  { %5415 = vtanh.f32 %v6811_v21 }
 0xb9b   :  { %v5416_v9 = vpop.eup %5415 }
 0xb9c   :  { %v3964_v36 = vmul.f32 %v5416_v9, %v5414_v5 }
 0xb9e   :  { %v3969_v40 = vpack.c.bf16 %v3964_v36, %v3964_v36 }
 0xba0   :  { %4003 = vmatmul.mubr.bf16.vlgmr.msra.gmra.mrb[76].mxu0 %v3969_v40  ;;  %4044 = vmatmul.mubr.bf16.vlgmr.msra.gmra.mrb[76].mxu1 %v3969_v40 }
 0xba1   :  { %4086 = vmatpush1.bf16.msra.mxu0 %v6512_v22  ;;  %4127 = vmatpush1.bf16.msra.mxu1 %v6514_v59 }
 0xba2   :  { %4087 = vmatprep.subr.bf16.mxu0 %v6518_v12  ;;  %4128 = vmatprep.subr.bf16.mxu1 %v6520_v15 }
 0xba3   :  { %4117 = vmatprep.mubr.bf16.mxu0 %v7037_v56  ;;  %4158 = vmatprep.mubr.bf16.mxu1 %v7037_v56 }
 0xba5   :  { %4088 = vmatpush1.bf16.msra.mxu0 %v6524_v17  ;;  %4129 = vmatpush1.bf16.msra.mxu1 %v6526_v34 }
 0xba6   :  { %4089 = vmatprep.subr.bf16.mxu0 %v6530_v50  ;;  %4130 = vmatprep.subr.bf16.mxu1 %v6532_v53 }
 0xba9   :  { %4090 = vmatpush1.bf16.msra.mxu0 %v6538_v19  ;;  %4131 = vmatpush1.bf16.msra.mxu1 %v6540_v20 }
 0xbaa   :  { %4091 = vmatprep.subr.bf16.mxu0 %v6546_v26  ;;  %4132 = vmatprep.subr.bf16.mxu1 %v6548_v44 }
 0xbad   :  { %4092 = vmatpush1.bf16.msra.mxu0 %v6552_v54  ;;  %4133 = vmatpush1.bf16.msra.mxu1 %v6554_v28 }
 0xbae   :  { %4093 = vmatprep.subr.bf16.mxu0 %v6558_v32  ;;  %4134 = vmatprep.subr.bf16.mxu1 %v6560_v27 }
 0xbb1   :  { %4094 = vmatpush1.bf16.msra.mxu0 %v6566_v31  ;;  %4135 = vmatpush1.bf16.msra.mxu1 %v6568_v35 }
 0xbb2   :  { %4095 = vmatprep.subr.bf16.mxu0 %v6574_v39  ;;  %4136 = vmatprep.subr.bf16.mxu1 %v6576_v23 }
 0xbb5   :  { %4096 = vmatpush1.bf16.msra.mxu0 %v6580_v38  ;;  %4137 = vmatpush1.bf16.msra.mxu1 %v6582_v47 }
 0xbb6   :  { %4097 = vmatprep.subr.bf16.mxu0 %v6586_v49  ;;  %4138 = vmatprep.subr.bf16.mxu1 %v6588_v1 }
 0xbb9   :  { %4098 = vmatpush1.bf16.msra.mxu0 %v6594_v41  ;;  %4139 = vmatpush1.bf16.msra.mxu1 %v6596_v42 }
 0xbba   :  { %4099 = vmatprep.subr.bf16.mxu0 %v6600_v45  ;;  %4140 = vmatprep.subr.bf16.mxu1 %v6602_v46 }
 0xbbd   :  { %4100 = vmatpush1.bf16.msra.mxu0 %v6608_v18  ;;  %4141 = vmatpush1.bf16.msra.mxu1 %v6610_v48 }
 0xbbe   :  { %4200 = vmatprep.subr.bf16.mxu0 %v6495_v29  ;;  %4241 = vmatprep.subr.bf16.mxu1 %v6497_v30 }
 0xc73   :  { %v4004_v24 = vpop.f32.mrb[76].mxu0  ;;  %v4045_v61 = vpop.f32.mrb[76].mxu1 }
 0xc74   :  { %v4052_v8 = vadd.f32 %v4004_v24, %v7090_v2  ;;  %v4054_v57 = vadd.f32 %v4045_v61, %v7091_v10  ;;  %v4006_v43 = vpop.f32.mrb[77].mxu0  ;;  %v4047_v63 = vpop.f32.mrb[77].mxu1 }
 0xc75   :  { %v4053_v55 = vadd.f32 %v4006_v43, %v7092_v0  ;;  %v4055_v16 = vadd.f32 %v4047_v63, %v7093_v60  ;;  %v4008_v4 = vpop.f32.mrb[78].mxu0  ;;  %v4049_v13 = vpop.f32.mrb[78].mxu1 }
 0xc76   :  { %v4967_v58 = vmul.f32 -1.442695, %v4052_v8  ;;  %v4009_v6 = vpop.f32.mrb[79].mxu0  ;;  %v4050_v51 = vpop.f32.mrb[79].mxu1  ;;  %v4969_v30 = vmul.f32 -1.442695, %v4054_v57 }
 0xc77   :  { %v4968_v29 = vmul.f32 -1.442695, %v4053_v55 }
 0xc78   :  { %5417 = vpow2.f32 %v4967_v58 }
 0xc79   :  { %5419 = vpow2.f32 %v4968_v29 }
 0xc7a   :  { %5421 = vtanh.f32 %v4055_v16 }
 0xc7b   :  { %5423 = vpow2.f32 %v4969_v30 }
 0xc82   :  { %v5418_v7 = vpop.eup %5417 }
 0xc83   :  { %v4065_v33 = vadd.f32 1.0, %v5418_v7  ;;  %v5420_v52 = vpop.eup %5419 }
 0xc84   :  { %v4066_v62 = vadd.f32 1.0, %v5420_v52  ;;  %v5422_v3 = vpop.eup %5421 }
 0xc85   :  { %5425 = vrcp.f32 %v4065_v33  ;;  %v5424_v37 = vpop.eup %5423 }
 0xc86   :  { %5427 = vrcp.f32 %v4066_v62  ;;  %v4067_v5 = vadd.f32 1.0, %v5424_v37 }
 0xc88   :  { %5429 = vrcp.f32 %v4067_v5  ;;  %v6905_v5 = vld [vmem:[#allocation7 + $0x8] ss:$16 sps:$4 sm:$0xff]  }
 0xc8f   :  { %v5426_v25 = vpop.eup %5425 }
 0xc90   :  { %v4076_v11 = vmul.f32 %v5426_v25, %v5422_v3  ;;  %v5428_v14 = vpop.eup %5427 }
 0xc91   :  { %v4075_v9 = vmul.f32 %v5428_v14, %v6811_v21  ;;  %v7097_v21 = vld [vmem:[#allocation22_spill] sm:$0xff]  ;;  %v6902_v14 = vld [vmem:[#allocation7] ss:$16 sps:$4 sm:$0xff]  }
 0xc92   :  { %v5430_v40 = vpop.eup %5429 }
 0xc93   :  { %v6853_v36 = vadd.f32 %v4076_v11, %v4075_v9  ;;  %v6908_v9 = vld [vmem:[#allocation7 + $0x24] ss:$16 sps:$4 sm:$0xff]  }
 0xc95   :  { %5431 = vtanh.f32 %v6853_v36 }
 0xc9f   :  { %v5432_v24 = vpop.eup %5431 }
 0xca0   :  { %v4079_v61 = vmul.f32 %v5432_v24, %v5430_v40  ;;  %v6916_v40 = vld [vmem:[#allocation7 + $0x20] ss:$16 sps:$4 sm:$0xff]   ;;  %v6919_v24 = vld [vmem:[#allocation7 + $0x28] ss:$16 sps:$4 sm:$0xff]  }
 0xca2   :  { %v4084_v2 = vpack.c.bf16 %v4079_v61, %v4079_v61  ;;  %v6922_v61 = vld [vmem:[#allocation7 + $0x44] ss:$16 sps:$4 sm:$0xff]  }
 0xca4   :  { %4118 = vmatmul.mubr.bf16.vlgmr.msra.gmra.mrb[80].mxu0 %v4084_v2  ;;  %4159 = vmatmul.mubr.bf16.vlgmr.msra.gmra.mrb[80].mxu1 %v4084_v2  ;;  %v6925_v2 = vld [vmem:[#allocation7 + $0x4c] ss:$16 sps:$4 sm:$0xff]  }
 0xca5   :  { %4201 = vmatpush1.bf16.msra.mxu0 %v6512_v22  ;;  %4242 = vmatpush1.bf16.msra.mxu1 %v6514_v59  ;;  %v6888_v22 = vld [vmem:[#allocation7 + $0x4] ss:$16 sps:$4 sm:$0xff]   ;;  %v6891_v59 = vld [vmem:[#allocation7 + $0xc] ss:$16 sps:$4 sm:$0xff]  }
 0xca6   :  { %4202 = vmatprep.subr.bf16.mxu0 %v6518_v12  ;;  %4243 = vmatprep.subr.bf16.mxu1 %v6520_v15 }
 0xca7   :  { %4232 = vmatprep.mubr.bf16.mxu0 %v7037_v56  ;;  %4273 = vmatprep.mubr.bf16.mxu1 %v7037_v56 }
 0xca9   :  { %4203 = vmatpush1.bf16.msra.mxu0 %v6524_v17  ;;  %4244 = vmatpush1.bf16.msra.mxu1 %v6526_v34  ;;  %v7094_v17 = vld [vmem:[#allocation19_spill] sm:$0xff] }
 0xcaa   :  { %4204 = vmatprep.subr.bf16.mxu0 %v6530_v50  ;;  %4245 = vmatprep.subr.bf16.mxu1 %v6532_v53  ;;  %v7095_v50 = vld [vmem:[#allocation20_spill] sm:$0xff] }
 0xcad   :  { %4205 = vmatpush1.bf16.msra.mxu0 %v6538_v19  ;;  %4246 = vmatpush1.bf16.msra.mxu1 %v6540_v20 }
 0xcae   :  { %4206 = vmatprep.subr.bf16.mxu0 %v6546_v26  ;;  %4247 = vmatprep.subr.bf16.mxu1 %v6548_v44  ;;  %v7096_v26 = vld [vmem:[#allocation21_spill] sm:$0xff] }
 0xcb1   :  { %4207 = vmatpush1.bf16.msra.mxu0 %v6552_v54  ;;  %4248 = vmatpush1.bf16.msra.mxu1 %v6554_v28 }
 0xcb2   :  { %4208 = vmatprep.subr.bf16.mxu0 %v6558_v32  ;;  %4249 = vmatprep.subr.bf16.mxu1 %v6560_v27 }
 0xcb5   :  { %4209 = vmatpush1.bf16.msra.mxu0 %v6566_v31  ;;  %4250 = vmatpush1.bf16.msra.mxu1 %v6568_v35 }
 0xcb6   :  { %4210 = vmatprep.subr.bf16.mxu0 %v6574_v39  ;;  %4251 = vmatprep.subr.bf16.mxu1 %v6576_v23 }
 0xcb9   :  { %4211 = vmatpush1.bf16.msra.mxu0 %v6580_v38  ;;  %4252 = vmatpush1.bf16.msra.mxu1 %v6582_v47 }
 0xcba   :  { %4212 = vmatprep.subr.bf16.mxu0 %v6586_v49  ;;  %4253 = vmatprep.subr.bf16.mxu1 %v6588_v1 }
 0xcbd   :  { %4213 = vmatpush1.bf16.msra.mxu0 %v6594_v41  ;;  %4254 = vmatpush1.bf16.msra.mxu1 %v6596_v42 }
 0xcbe   :  { %4214 = vmatprep.subr.bf16.mxu0 %v6600_v45  ;;  %4255 = vmatprep.subr.bf16.mxu1 %v6602_v46 }
 0xcc1   :  { %4215 = vmatpush1.bf16.msra.mxu0 %v6608_v18  ;;  %4256 = vmatpush1.bf16.msra.mxu1 %v6610_v48 }
 0xcc2   :  { %4315 = vmatprep.subr.bf16.mxu0 %v6888_v22  ;;  %4356 = vmatprep.subr.bf16.mxu1 %v6891_v59 }
 0xd77   :  { %v4119_v12 = vpop.f32.mrb[80].mxu0  ;;  %v4160_v15 = vpop.f32.mrb[80].mxu1 }
 0xd78   :  { %v4167_v34 = vadd.f32 %v4119_v12, %v7094_v17  ;;  %v4169_v53 = vadd.f32 %v4160_v15, %v7095_v50  ;;  %v4121_v19 = vpop.f32.mrb[81].mxu0  ;;  %v4162_v20 = vpop.f32.mrb[81].mxu1  ;;  %v6928_v12 = vld [vmem:[#allocation7 + $0x40] ss:$16 sps:$4 sm:$0xff]   ;;  %v6931_v15 = vld [vmem:[#allocation7 + $0x48] ss:$16 sps:$4 sm:$0xff]  }
 0xd79   :  { %v4168_v44 = vadd.f32 %v4121_v19, %v7096_v26  ;;  %v4170_v8 = vadd.f32 %v4162_v20, %v7097_v21  ;;  %v4123_v10 = vpop.f32.mrb[82].mxu0  ;;  %v4164_v57 = vpop.f32.mrb[82].mxu1  ;;  %v6934_v17 = vld [vmem:[#allocation7 + $0x64] ss:$16 sps:$4 sm:$0xff]  }
 0xd7a   :  { %v4970_v43 = vmul.f32 -1.442695, %v4167_v34  ;;  %v4124_v63 = vpop.f32.mrb[83].mxu0  ;;  %v4165_v0 = vpop.f32.mrb[83].mxu1  ;;  %v4972_v60 = vmul.f32 -1.442695, %v4169_v53 }
 0xd7b   :  { %v4971_v55 = vmul.f32 -1.442695, %v4168_v44  ;;  %v6937_v34 = vld [vmem:[#allocation7 + $0x6c] ss:$16 sps:$4 sm:$0xff]  }
 0xd7c   :  { %5433 = vpow2.f32 %v4970_v43 }
 0xd7d   :  { %5435 = vpow2.f32 %v4971_v55 }
 0xd7e   :  { %5437 = vtanh.f32 %v4170_v8 }
 0xd7f   :  { %5439 = vpow2.f32 %v4972_v60 }
 0xd86   :  { %v5434_v16 = vpop.eup %5433 }
 0xd87   :  { %v4180_v4 = vadd.f32 1.0, %v5434_v16  ;;  %v5436_v13 = vpop.eup %5435  ;;  %v5511_v16 = vld [vmem:[#allocation7 + $0x60] ss:$16 sps:$4 sm:$0xff]  }
 0xd88   :  { %v4181_v58 = vadd.f32 1.0, %v5436_v13  ;;  %v5438_v6 = vpop.eup %5437  ;;  %v5514_v13 = vld [vmem:[#allocation7 + $0x8c] ss:$16 sps:$4 sm:$0xff]  }
 0xd89   :  { %5441 = vrcp.f32 %v4180_v4  ;;  %v5440_v51 = vpop.eup %5439  ;;  %v5512_v4 = vld [vmem:[#allocation7 + $0x68] ss:$16 sps:$4 sm:$0xff]  }
 0xd8a   :  { %5443 = vrcp.f32 %v4181_v58  ;;  %v4182_v33 = vadd.f32 1.0, %v5440_v51  ;;  %v5515_v58 = vld [vmem:[#allocation7 + $0x80] ss:$16 sps:$4 sm:$0xff]   ;;  %v5517_v51 = vld [vmem:[#allocation7 + $0xa4] ss:$16 sps:$4 sm:$0xff]  }
 0xd8c   :  { %5445 = vrcp.f32 %v4182_v33  ;;  %v5521_v33 = vld [vmem:[#allocation7 + $0xc4] ss:$16 sps:$4 sm:$0xff]  }
 0xd93   :  { %v5442_v29 = vpop.eup %5441 }
 0xd94   :  { %v4191_v30 = vmul.f32 %v5442_v29, %v5438_v6  ;;  %v5444_v7 = vpop.eup %5443  ;;  %v5516_v6 = vld [vmem:[#allocation7 + $0x88] ss:$16 sps:$4 sm:$0xff]   ;;  %v5518_v29 = vld [vmem:[#allocation7 + $0xac] ss:$16 sps:$4 sm:$0xff]  }
 0xd95   :  { %v4190_v52 = vmul.f32 %v5444_v7, %v6853_v36  ;;  %v6911_v36 = vld [vmem:[#allocation7 + $0x2c] ss:$16 sps:$4 sm:$0xff]   ;;  %v5520_v7 = vld [vmem:[#allocation7 + $0xa8] ss:$16 sps:$4 sm:$0xff]  }
 0xd96   :  { %v5446_v3 = vpop.eup %5445 }
 0xd97   :  { %v6899_v62 = vadd.f32 %v4191_v30, %v4190_v52  ;;  %v5519_v30 = vld [vmem:[#allocation7 + $0xa0] ss:$16 sps:$4 sm:$0xff]   ;;  %v5522_v52 = vld [vmem:[#allocation7 + $0xcc] ss:$16 sps:$4 sm:$0xff]  }
 0xd99   :  { %5447 = vtanh.f32 %v6899_v62 }
 0xda3   :  { %v5448_v37 = vpop.eup %5447 }
 0xda4   :  { %v4194_v25 = vmul.f32 %v5448_v37, %v5446_v3  ;;  %v5524_v3 = vld [vmem:[#allocation7 + $0xc8] ss:$16 sps:$4 sm:$0xff]   ;;  %v5525_v37 = vld [vmem:[#allocation7 + $0xe4] ss:$16 sps:$4 sm:$0xff]  }
 0xda6   :  { %v4199_v11 = vpack.c.bf16 %v4194_v25, %v4194_v25  ;;  %v5526_v25 = vld [vmem:[#allocation7 + $0xec] ss:$16 sps:$4 sm:$0xff]  }
 0xda8   :  { %4233 = vmatmul.mubr.bf16.vlgmr.msra.gmra.mrb[84].mxu0 %v4199_v11  ;;  %4274 = vmatmul.mubr.bf16.vlgmr.msra.gmra.mrb[84].mxu1 %v4199_v11  ;;  %v5527_v11 = vld [vmem:[#allocation7 + $0xe0] ss:$16 sps:$4 sm:$0xff]  }
 0xda9   :  { %4316 = vmatpush1.bf16.msra.mxu0 %v6902_v14  ;;  %4357 = vmatpush1.bf16.msra.mxu1 %v6905_v5 }
 0xdaa   :  { %4317 = vmatprep.subr.bf16.mxu0 %v6908_v9  ;;  %4358 = vmatprep.subr.bf16.mxu1 %v6911_v36 }
 0xdab   :  { %4347 = vmatprep.mubr.bf16.mxu0 %v7037_v56  ;;  %4388 = vmatprep.mubr.bf16.mxu1 %v7037_v56 }
 0xdad   :  { %4318 = vmatpush1.bf16.msra.mxu0 %v6916_v40  ;;  %4359 = vmatpush1.bf16.msra.mxu1 %v6919_v24 }
 0xdae   :  { %4319 = vmatprep.subr.bf16.mxu0 %v6922_v61  ;;  %4360 = vmatprep.subr.bf16.mxu1 %v6925_v2 }
 0xdb1   :  { %4320 = vmatpush1.bf16.msra.mxu0 %v6928_v12  ;;  %4361 = vmatpush1.bf16.msra.mxu1 %v6931_v15 }
 0xdb2   :  { %4321 = vmatprep.subr.bf16.mxu0 %v6934_v17  ;;  %4362 = vmatprep.subr.bf16.mxu1 %v6937_v34 }
 0xdb5   :  { %4322 = vmatpush1.bf16.msra.mxu0 %v6552_v54  ;;  %4363 = vmatpush1.bf16.msra.mxu1 %v6554_v28 }
 0xdb6   :  { %4323 = vmatprep.subr.bf16.mxu0 %v6558_v32  ;;  %4364 = vmatprep.subr.bf16.mxu1 %v6560_v27  ;;  %v7098_v32 = vld [vmem:[#allocation23_spill] sm:$0xff] }
 0xdb9   :  { %4324 = vmatpush1.bf16.msra.mxu0 %v6566_v31  ;;  %4365 = vmatpush1.bf16.msra.mxu1 %v6568_v35  ;;  %v7099_v31 = vld [vmem:[#allocation24_spill] sm:$0xff] }
 0xdba   :  { %4325 = vmatprep.subr.bf16.mxu0 %v6574_v39  ;;  %4366 = vmatprep.subr.bf16.mxu1 %v6576_v23 }
 0xdbd   :  { %4326 = vmatpush1.bf16.msra.mxu0 %v6580_v38  ;;  %4367 = vmatpush1.bf16.msra.mxu1 %v6582_v47  ;;  %v7100_v38 = vld [vmem:[#allocation25_spill] sm:$0xff] }
 0xdbe   :  { %4327 = vmatprep.subr.bf16.mxu0 %v6586_v49  ;;  %4368 = vmatprep.subr.bf16.mxu1 %v6588_v1  ;;  %v7101_v49 = vld [vmem:[#allocation26_spill] sm:$0xff] }
 0xdc1   :  { %4328 = vmatpush1.bf16.msra.mxu0 %v6594_v41  ;;  %4369 = vmatpush1.bf16.msra.mxu1 %v6596_v42 }
 0xdc2   :  { %4329 = vmatprep.subr.bf16.mxu0 %v6600_v45  ;;  %4370 = vmatprep.subr.bf16.mxu1 %v6602_v46 }
 0xdc5   :  { %4330 = vmatpush1.bf16.msra.mxu0 %v6608_v18  ;;  %4371 = vmatpush1.bf16.msra.mxu1 %v6610_v48 }
 0xdc6   :  { %4430 = vmatprep.subr.bf16.mxu0 %v6888_v22  ;;  %4471 = vmatprep.subr.bf16.mxu1 %v6891_v59 }
 0xe7b   :  { %v4234_v54 = vpop.f32.mrb[84].mxu0  ;;  %v4275_v28 = vpop.f32.mrb[84].mxu1 }
 0xe7c   :  { %v4282_v27 = vadd.f32 %v4234_v54, %v7098_v32  ;;  %v4284_v35 = vadd.f32 %v4275_v28, %v7099_v31  ;;  %v4236_v39 = vpop.f32.mrb[85].mxu0  ;;  %v4277_v23 = vpop.f32.mrb[85].mxu1 }
 0xe7d   :  { %v4283_v47 = vadd.f32 %v4236_v39, %v7100_v38  ;;  %v4285_v1 = vadd.f32 %v4277_v23, %v7101_v49  ;;  %v4238_v41 = vpop.f32.mrb[86].mxu0  ;;  %v4279_v42 = vpop.f32.mrb[86].mxu1 }
 0xe7e   :  { %v4973_v45 = vmul.f32 -1.442695, %v4282_v27  ;;  %v4239_v46 = vpop.f32.mrb[87].mxu0  ;;  %v4280_v18 = vpop.f32.mrb[87].mxu1  ;;  %v4975_v22 = vmul.f32 -1.442695, %v4284_v35 }
 0xe7f   :  { %v4974_v48 = vmul.f32 -1.442695, %v4283_v47 }
 0xe80   :  { %5449 = vpow2.f32 %v4973_v45 }
 0xe81   :  { %5451 = vpow2.f32 %v4974_v48 }
 0xe82   :  { %5453 = vtanh.f32 %v4285_v1 }
 0xe83   :  { %5455 = vpow2.f32 %v4975_v22 }
 0xe8a   :  { %v5450_v59 = vpop.eup %5449 }
 0xe8b   :  { %v4295_v50 = vadd.f32 1.0, %v5450_v59  ;;  %v5452_v53 = vpop.eup %5451 }
 0xe8c   :  { %v4296_v19 = vadd.f32 1.0, %v5452_v53  ;;  %v5454_v20 = vpop.eup %5453 }
 0xe8d   :  { %5457 = vrcp.f32 %v4295_v50  ;;  %v5456_v26 = vpop.eup %5455 }
 0xe8e   :  { %5459 = vrcp.f32 %v4296_v19  ;;  %v4297_v10 = vadd.f32 1.0, %v5456_v26 }
 0xe90   :  { %5461 = vrcp.f32 %v4297_v10  ;;  %v7107_v10 = vld [vmem:[#allocation32_spill] sm:$0xff] }
 0xe97   :  { %v5458_v44 = vpop.eup %5457 }
 0xe98   :  { %v4306_v21 = vmul.f32 %v5458_v44, %v5454_v20  ;;  %v5460_v8 = vpop.eup %5459 }
 0xe99   :  { %v4305_v57 = vmul.f32 %v5460_v8, %v6899_v62  ;;  %v5523_v62 = vld [vmem:[#allocation7 + $0xc0] ss:$16 sps:$4 sm:$0xff]  }
 0xe9a   :  { %v5462_v63 = vpop.eup %5461 }
 0xe9b   :  { %v6965_v43 = vadd.f32 %v4306_v21, %v4305_v57  ;;  %v7106_v21 = vld [vmem:[#allocation31_spill] sm:$0xff] }
 0xe9d   :  { %5463 = vtanh.f32 %v6965_v43 }
 0xea7   :  { %v5464_v0 = vpop.eup %5463 }
 0xea8   :  { %v4309_v55 = vmul.f32 %v5464_v0, %v5462_v63 }
 0xeaa   :  { %v4314_v60 = vpack.c.bf16 %v4309_v55, %v4309_v55  ;;  %v7108_v55 = vld [vmem:[#allocation11_spill] sm:$0xff] }
 0xeac   :  { %4348 = vmatmul.mubr.bf16.vlgmr.msra.gmra.mrb[88].mxu0 %v4314_v60  ;;  %4389 = vmatmul.mubr.bf16.vlgmr.msra.gmra.mrb[88].mxu1 %v4314_v60 }
 0xead   :  { %4431 = vmatpush1.bf16.msra.mxu0 %v6902_v14  ;;  %4472 = vmatpush1.bf16.msra.mxu1 %v6905_v5  ;;  %v5528_v14 = vld [vmem:[#allocation7 + $0xe8] ss:$16 sps:$4 sm:$0xff]  }
 0xeae   :  { %4432 = vmatprep.subr.bf16.mxu0 %v6908_v9  ;;  %4473 = vmatprep.subr.bf16.mxu1 %v6911_v36  ;;  %v7102_v36 = vld [vmem:[#allocation27_spill] sm:$0xff] }
 0xeaf   :  { %4462 = vmatprep.mubr.bf16.mxu0 %v7037_v56  ;;  %4503 = vmatprep.mubr.bf16.mxu1 %v7037_v56  ;;  %v5513_v56 = vld [vmem:[#allocation7 + $0x84] ss:$16 sps:$4 sm:$0xff]  }
 0xeb1   :  { %4433 = vmatpush1.bf16.msra.mxu0 %v6916_v40  ;;  %4474 = vmatpush1.bf16.msra.mxu1 %v6919_v24  ;;  %v7103_v24 = vld [vmem:[#allocation28_spill] sm:$0xff] }
 0xeb2   :  { %4434 = vmatprep.subr.bf16.mxu0 %v6922_v61  ;;  %4475 = vmatprep.subr.bf16.mxu1 %v6925_v2 }
 0xeb5   :  { %4435 = vmatpush1.bf16.msra.mxu0 %v6928_v12  ;;  %4476 = vmatpush1.bf16.msra.mxu1 %v6931_v15  ;;  %v7104_v15 = vld [vmem:[#allocation29_spill] sm:$0xff] }
 0xeb6   :  { %4436 = vmatprep.subr.bf16.mxu0 %v6934_v17  ;;  %4477 = vmatprep.subr.bf16.mxu1 %v6937_v34  ;;  %v7105_v34 = vld [vmem:[#allocation30_spill] sm:$0xff] }
 0xeb9   :  { %4437 = vmatpush1.bf16.msra.mxu0 %v5511_v16  ;;  %4478 = vmatpush1.bf16.msra.mxu1 %v5512_v4 }
 0xeba   :  { %4438 = vmatprep.subr.bf16.mxu0 %v5513_v56  ;;  %4479 = vmatprep.subr.bf16.mxu1 %v5514_v13 }
 0xebd   :  { %4439 = vmatpush1.bf16.msra.mxu0 %v5515_v58  ;;  %4480 = vmatpush1.bf16.msra.mxu1 %v5516_v6 }
 0xebe   :  { %4440 = vmatprep.subr.bf16.mxu0 %v5517_v51  ;;  %4481 = vmatprep.subr.bf16.mxu1 %v5518_v29 }
 0xec1   :  { %4441 = vmatpush1.bf16.msra.mxu0 %v5519_v30  ;;  %4482 = vmatpush1.bf16.msra.mxu1 %v5520_v7 }
 0xec2   :  { %4442 = vmatprep.subr.bf16.mxu0 %v5521_v33  ;;  %4483 = vmatprep.subr.bf16.mxu1 %v5522_v52 }
 0xec5   :  { %4443 = vmatpush1.bf16.msra.mxu0 %v5523_v62  ;;  %4484 = vmatpush1.bf16.msra.mxu1 %v5524_v3 }
 0xec6   :  { %4444 = vmatprep.subr.bf16.mxu0 %v5525_v37  ;;  %4485 = vmatprep.subr.bf16.mxu1 %v5526_v25 }
 0xec9   :  { %4445 = vmatpush1.bf16.msra.mxu0 %v5527_v11  ;;  %4486 = vmatpush1.bf16.msra.mxu1 %v5528_v14 }
 0xf7f   :  { %v4349_v5 = vpop.f32.mrb[88].mxu0  ;;  %v4390_v9 = vpop.f32.mrb[88].mxu1 }
 0xf80   :  { %v4397_v40 = vadd.f32 %v4349_v5, %v7102_v36  ;;  %v4399_v61 = vadd.f32 %v4390_v9, %v7103_v24  ;;  %v4351_v2 = vpop.f32.mrb[89].mxu0  ;;  %v4392_v12 = vpop.f32.mrb[89].mxu1  ;;  %v4982_v24 = vld [vmem:[%s7004_s7] ss:$0 sm:$0xff] }
 0xf81   :  { %v4398_v17 = vadd.f32 %v4351_v2, %v7104_v15  ;;  %v4400_v54 = vadd.f32 %v4392_v12, %v7105_v34  ;;  %v4353_v28 = vpop.f32.mrb[90].mxu0  ;;  %v4394_v32 = vpop.f32.mrb[90].mxu1  ;;  %v4983_v12 = vld [vmem:[#allocation4] ss:$0 sm:$0xff] }
 0xf82   :  { %v4976_v27 = vmul.f32 -1.442695, %v4397_v40  ;;  %v4354_v31 = vpop.f32.mrb[91].mxu0  ;;  %v4395_v35 = vpop.f32.mrb[91].mxu1  ;;  %v4978_v23 = vmul.f32 -1.442695, %v4399_v61 }
 0xf83   :  { %v4977_v39 = vmul.f32 -1.442695, %v4398_v17 }
 0xf84   :  { %5465 = vpow2.f32 %v4976_v27 }
 0xf85   :  { %5467 = vpow2.f32 %v4977_v39 }
 0xf86   :  { %5469 = vtanh.f32 %v4400_v54 }
 0xf87   :  { %5471 = vpow2.f32 %v4978_v23 }
 0xf8e   :  { %v5466_v38 = vpop.eup %5465 }
 0xf8f   :  { %v4410_v47 = vadd.f32 1.0, %v5466_v38  ;;  %v5468_v49 = vpop.eup %5467 }
 0xf90   :  { %v4411_v1 = vadd.f32 1.0, %v5468_v49  ;;  %v5470_v41 = vpop.eup %5469 }
 0xf91   :  { %5473 = vrcp.f32 %v4410_v47  ;;  %v5472_v42 = vpop.eup %5471 }
 0xf92   :  { %5475 = vrcp.f32 %v4411_v1  ;;  %v4412_v48 = vadd.f32 1.0, %v5472_v42 }
 0xf94   :  { %5477 = vrcp.f32 %v4412_v48 }
 0xf9b   :  { %v5474_v45 = vpop.eup %5473 }
 0xf9c   :  { %v4421_v46 = vmul.f32 %v5474_v45, %v5470_v41  ;;  %v5476_v18 = vpop.eup %5475 }
 0xf9d   :  { %v4420_v22 = vmul.f32 %v5476_v18, %v6965_v43  ;;  %v7109_v43 = vld [vmem:[#allocation33_spill] sm:$0xff] }
 0xf9e   :  { %v5478_v50 = vpop.eup %5477 }
 0xf9f   :  { %v4422_v59 = vadd.f32 %v4421_v46, %v4420_v22 }
 0xfa1   :  { %5479 = vtanh.f32 %v4422_v59 }
 0xfab   :  { %v5480_v53 = vpop.eup %5479 }
 0xfac   :  { %v4424_v19 = vmul.f32 %v5480_v53, %v5478_v50 }
 0xfae   :  { %v4429_v20 = vpack.c.bf16 %v4424_v19, %v4424_v19 }
 0xfb0   :  { %4463 = vmatmul.mubr.bf16.vlgmr.msra.gmra.mrb[92].mxu0 %v4429_v20  ;;  %4504 = vmatmul.mubr.bf16.vlgmr.msra.gmra.mrb[92].mxu1 %v4429_v20 }
0x1083   :  { %v4464_v26 = vpop.f32.mrb[92].mxu0  ;;  %v4505_v44 = vpop.f32.mrb[92].mxu1 }
0x1084   :  { %v4512_v8 = vadd.f32 %v4464_v26, %v7106_v21  ;;  %v4514_v57 = vadd.f32 %v4505_v44, %v7107_v10  ;;  %v4466_v63 = vpop.f32.mrb[93].mxu0  ;;  %v4507_v0 = vpop.f32.mrb[93].mxu1 }
0x1085   :  { %v4513_v60 = vadd.f32 %v4466_v63, %v7108_v55  ;;  %v4515_v16 = vadd.f32 %v4507_v0, %v7109_v43  ;;  %v4468_v4 = vpop.f32.mrb[94].mxu0  ;;  %v4509_v56 = vpop.f32.mrb[94].mxu1 }
0x1086   :  { %v4979_v13 = vmul.f32 -1.442695, %v4512_v8  ;;  %v4469_v58 = vpop.f32.mrb[95].mxu0  ;;  %v4510_v6 = vpop.f32.mrb[95].mxu1  ;;  %v4981_v29 = vmul.f32 -1.442695, %v4514_v57 }
0x1087   :  { %v4980_v51 = vmul.f32 -1.442695, %v4513_v60 }
0x1088   :  { %5481 = vpow2.f32 %v4979_v13 }
0x1089   :  { %5483 = vpow2.f32 %v4980_v51 }
0x108a   :  { %5485 = vtanh.f32 %v4515_v16 }
0x108b   :  { %5487 = vpow2.f32 %v4981_v29 }
0x1092   :  { %v5482_v30 = vpop.eup %5481 }
0x1093   :  { %v4525_v7 = vadd.f32 1.0, %v5482_v30  ;;  %v5484_v33 = vpop.eup %5483 }
0x1094   :  { %v4526_v52 = vadd.f32 1.0, %v5484_v33  ;;  %v5486_v62 = vpop.eup %5485 }
0x1095   :  { %5489 = vrcp.f32 %v4525_v7  ;;  %v5488_v3 = vpop.eup %5487 }
0x1096   :  { %5491 = vrcp.f32 %v4526_v52  ;;  %v4527_v14 = vadd.f32 1.0, %v5488_v3 }
0x1098   :  { %5493 = vrcp.f32 %v4527_v14 }
0x109f   :  { %v5490_v37 = vpop.eup %5489 }
0x10a0   :  { %v4536_v25 = vmul.f32 %v5490_v37, %v5486_v62  ;;  %v5492_v11 = vpop.eup %5491 }
0x10a1   :  { %v4535_v5 = vmul.f32 %v5492_v11, %v4422_v59 }
0x10a2   :  { %v5494_v36 = vpop.eup %5493 }
0x10a3   :  { %v4537_v9 = vadd.f32 %v4536_v25, %v4535_v5 }
0x10a5   :  { %5495 = vtanh.f32 %v4537_v9 }
0x10af   :  { %v5496_v40 = vpop.eup %5495 }
0x10b0   :  { %v4539_v61 = vmul.f32 %v5496_v40, %v5494_v36 }
0x10b2   :  { %v4547_v2 = vmul.f32 %v4982_v24, %v4539_v61 }
0x10b4   :  { %4548 = vadd.xlane.f32.xlu0 %v4547_v2 }
0x1141   :  { %v4549_v15 = vpop.xlane.xlu0 %4548 }
0x1142   :  { %v4557_v17 = vadd.f32 %v4983_v12, %v4549_v15 }
0x1144   :  { %4559 = vst.msk [vmem:[%s7006_s9] sm:$0xff] %vm4558_vm1, %v4557_v17 }
0x1145   :  { %4564 = vsyncpa [#allocation6], 1 }
0x1146   :  { %4565 = vsyncpa [#allocation8], 1 }

</bundles_post_ra>
